<compile_context>
chip_gen: v5e
topology: v5e:2x2
jax: 0.10.0
libtpu: 0.0.40
codegen_flags: <defaults>
</compile_context>

<pallas_src>
import functools

import jax
import jax.numpy as jnp
from jax import lax
from jax.experimental import pallas as pl
from jax.experimental.pallas import tpu as pltpu


# --------------------------------------------------------------------------
# Pallas kernel
# --------------------------------------------------------------------------
def _spatial_attention_kernel(x_ref, w_ref, b_ref, o_ref, pool_ref, att_ref,
                              *, ks, H, W, c_chunk):
    """Fused channel mean/max pool -> ks*ks conv (2->1) -> sigmoid -> x*att.

    x_ref / o_ref : (1, C, H*W) lane-dense blocks (VMEM).
    w_ref         : (2*ks*ks,) f32 conv weights (SMEM scalars).
    b_ref         : (1,) f32 conv bias (SMEM scalar).
    pool_ref      : (2, H+2p, W+2p) f32 scratch, zero halo (VMEM).
    att_ref       : (1, H*W) f32 scratch holding the flat attention map.
    """
    _, C, HW = x_ref.shape
    pad = ks // 2
    Hp = H + 2 * pad
    Wp = W + 2 * pad
    num_chunks = C // c_chunk

    # ---- 1) Channel pooling: single pass over x, f32 accumulation. --------
    def pool_body(i, carry):
        s, m = carry
        start = pl.multiple_of(i * c_chunk, c_chunk)
        chunk = x_ref[0, pl.ds(start, c_chunk), :].astype(jnp.float32)
        s = s + jnp.sum(chunk, axis=0, keepdims=True)
        m = jnp.maximum(m, jnp.max(chunk, axis=0, keepdims=True))
        return s, m

    s0 = jnp.zeros((1, HW), jnp.float32)
    m0 = jnp.full((1, HW), -jnp.inf, jnp.float32)
    ssum, mx = lax.fori_loop(0, num_chunks, pool_body, (s0, m0),
                             unroll=min(num_chunks, 4))
    avg = ssum * (1.0 / C)

    # ---- 2) Zero only the halo ring, then scatter the pooled rows into the
    #         padded 2-D scratch (interior is fully overwritten every step).
    if pad > 0:
        zrow = jnp.zeros((2, pad, Wp), jnp.float32)
        zcol = jnp.zeros((2, H, pad), jnp.float32)
        pool_ref[:, 0:pad, :] = zrow
        pool_ref[:, pad + H:Hp, :] = zrow
        pool_ref[:, pad:pad + H, 0:pad] = zcol
        pool_ref[:, pad:pad + H, pad + W:Wp] = zcol

    for y in range(H):
        pool_ref[0, pad + y:pad + y + 1, pad:pad + W] = avg[:, y * W:(y + 1) * W]
        pool_ref[1, pad + y:pad + y + 1, pad:pad + W] = mx[:, y * W:(y + 1) * W]

    # ---- 3) ks x ks conv, 2 in -> 1 out channel: scalar-weighted shifted
    #         adds on the small (H, W) maps (VPU; MXU would be idle here).
    acc = jnp.zeros((H, W), jnp.float32)
    for ci in range(2):
        plane = pool_ref[ci]                           # (Hp, Wp)
        for dy in range(ks):
            rows = plane[dy:dy + H, :]                 # hoist sublane slice
            for dx in range(ks):
                wgt = w_ref[ci * ks * ks + dy * ks + dx]
                acc = acc + wgt * rows[:, dx:dx + W]
    conv = acc + b_ref[0]

    # ---- 4) Sigmoid: EUP exp + approx EUP reciprocal + one NR refinement. --
    denom = 1.0 + jnp.exp(-conv)
    r = pl.reciprocal(denom, approx=True)
    att2d = r * (2.0 - denom * r)                      # ~f32 accurate

    # ---- 5) Re-flatten attention to (1, HW), broadcast over C, one dense
    #         lane-aligned store of the output block.
    for y in range(H):
        att_ref[0:1, y * W:(y + 1) * W] = att2d[y:y + 1, :]
    o_ref[0] = x_ref[0] * att_ref[...].astype(o_ref.dtype)


# --------------------------------------------------------------------------
# Wrapper
# --------------------------------------------------------------------------
@functools.partial(jax.jit, static_argnames=("kernel_size",))
def spatial_attention_forward(x_nchw, params, kernel_size=7):
    """SpatialAttention.forward.  x_nchw: (N, C, H, W) -> (N, C, H, W)."""
    N, C, H, W = x_nchw.shape
    ks = kernel_size
    pad = ks // 2
    HW = H * W

    # Lane-dense view of x (free: contiguous trailing dims).
    x_flat = x_nchw.reshape(N, C, HW)

    # Conv2d(2, 1, ks) weight (1, 2, ks, ks) flattened to SMEM scalars
    # (index = ci*ks*ks + ky*ks + kx), plus bias scalar.
    w_flat = params["conv_w"].reshape(-1).astype(jnp.float32)   # (2*ks*ks,)
    b = params["conv_b"].astype(jnp.float32)                    # (1,)

    # Largest channel-chunk <= 32 that divides C (single-pass pooling loop).
    c_chunk = max(d for d in (32, 16, 8, 4, 2, 1) if C % d == 0)

    # Explicit VMEM budget: 2x double-buffered input + 2x output + scratch.
    itemsize = x_nchw.dtype.itemsize
    block_bytes = C * HW * itemsize
    scratch_bytes = (2 * (H + 2 * pad) * (W + 2 * pad) + HW) * 4
    vmem_needed = 4 * block_bytes + scratch_bytes + (2 << 20)
    vmem_limit = int(min(max(vmem_needed, 32 * 1024 * 1024),
                         56 * 1024 * 1024))   # stay under v7x's 64 MiB

    cost = pl.CostEstimate(
        flops=int(N * HW * (3 * C + 4 * ks * ks + 6)),
        transcendentals=int(N * HW),
        bytes_accessed=int(2 * N * block_bytes + (2 * ks * ks + 1) * 4),
    )

    kernel = functools.partial(_spatial_attention_kernel,
                               ks=ks, H=H, W=W, c_chunk=c_chunk)
    out_flat = pl.pallas_call(
        kernel,
        out_shape=jax.ShapeDtypeStruct((N, C, HW), x_nchw.dtype),
        grid=(N,),
        in_specs=[
            pl.BlockSpec((1, C, HW), lambda n: (n, 0, 0)),
            pl.BlockSpec(memory_space=pltpu.MemorySpace.SMEM),
            pl.BlockSpec(memory_space=pltpu.MemorySpace.SMEM),
        ],
        out_specs=pl.BlockSpec((1, C, HW), lambda n: (n, 0, 0)),
        scratch_shapes=[
            pltpu.VMEM((2, H + 2 * pad, W + 2 * pad), jnp.float32),
            pltpu.VMEM((1, HW), jnp.float32),
        ],
        compiler_params=pltpu.CompilerParams(
            dimension_semantics=("parallel",),
            vmem_limit_bytes=vmem_limit,
        ),
        cost_estimate=cost,
    )(x_flat, w_flat, b)

    return out_flat.reshape(N, C, H, W)


# --------------------------------------------------------------------------
# Params + pure-JAX reference
# --------------------------------------------------------------------------
def init_spatial_attention_params(key, kernel_size=7):
    k_w, k_b = jax.random.split(key)
    return {
        "conv_w": 0.1 * jax.random.normal(
            k_w, (1, 2, kernel_size, kernel_size), jnp.float32),
        "conv_b": 0.1 * jax.random.normal(k_b, (1,), jnp.float32),
    }


def _reference_forward(x, params, kernel_size=7):
    pad = kernel_size // 2
    avg = jnp.mean(x, axis=1, keepdims=True)
    mx = jnp.max(x, axis=1, keepdims=True)
    pooled = jnp.concatenate([avg, mx], axis=1)            # (N, 2, H, W)
    conv = jax.lax.conv_general_dilated(
        pooled, params["conv_w"], window_strides=(1, 1),
        padding=((pad, pad), (pad, pad)),
        dimension_numbers=("NCHW", "OIHW", "NCHW"))
    conv = conv + params["conv_b"].reshape(1, 1, 1, 1)
    return x * jax.nn.sigmoid(conv)


if __name__ == "__main__":
    key = jax.random.PRNGKey(0)
    k_x, k_p = jax.random.split(key)

    N, C, H, W = 2, 4, 16, 16
    x = jax.random.normal(k_x, (N, C, H, W), jnp.float32)
    params = init_spatial_attention_params(k_p, kernel_size=7)

    out = spatial_attention_forward(x, params, kernel_size=7)
    out = jax.block_until_ready(out)

    ref = _reference_forward(x, params, kernel_size=7)
    assert out.shape == (N, C, H, W), out.shape
    # 1e-4 tolerance: the approx EUP reciprocal (+1 Newton step) in the
    # sigmoid is ~f32 accurate but not bit-identical to an exact divide.
    assert jnp.allclose(out, ref, atol=1e-4, rtol=1e-4), float(
        jnp.max(jnp.abs(out - ref)))

    print("KERNEL_OK")
</pallas_src>

<mosaic_0001>
module attributes {stable_mosaic.version = 11 : i64} {
  func.func @_spatial_attention_kernel(%arg0: i32, %arg1: memref<1x4x256xf32, #tpu.memory_space<vmem>>, %arg2: memref<98xf32, #tpu.memory_space<smem>>, %arg3: memref<1xf32, #tpu.memory_space<smem>>, %arg4: memref<1x4x256xf32, #tpu.memory_space<vmem>>, %arg5: memref<2x22x22xf32, #tpu.memory_space<vmem>>, %arg6: memref<1x256xf32, #tpu.memory_space<vmem>>) attributes {dimension_semantics = [#tpu.dimension_semantics<parallel>], iteration_bounds = array<i64: 2>, scalar_prefetch = 0 : i64, scratch_operands = 2 : i64, tpu.core_type = #tpu.core_type<tc>, window_params = [{transform_indices = @transform_0, window_bounds = array<i64: 1, 4, 256>}, {transform_indices = @transform_1, window_bounds = array<i64: 98>}, {transform_indices = @transform_2, window_bounds = array<i64: 1>}, {transform_indices = @transform_3, window_bounds = array<i64: 1, 4, 256>}]} {
    %cst = arith.constant 0.000000e+00 : f32
    %0 = vector.broadcast %cst : f32 to vector<1x256xf32>
    %cst_0 = arith.constant 0xFF800000 : f32
    %1 = vector.broadcast %cst_0 : f32 to vector<1x256xf32>
    %c0_i32 = arith.constant 0 : i32
    %c4_i32 = arith.constant 4 : i32
    %2 = arith.muli %c0_i32, %c4_i32 : i32
    %3 = tpu.assume_multiple %2, 4 : i32
    %c0 = arith.constant 0 : index
    %4 = arith.index_cast %3 : i32 to index
    %c0_1 = arith.constant 0 : index
    %5 = vector.load %arg1[%c0, %4, %c0_1] : memref<1x4x256xf32, #tpu.memory_space<vmem>>, vector<1x4x256xf32>
    %6 = vector.shape_cast %5 : vector<1x4x256xf32> to vector<4x256xf32>
    %cst_2 = arith.constant dense<0.000000e+00> : vector<256xf32>
    %7 = vector.multi_reduction <add>, %6, %cst_2 [0] : vector<4x256xf32> to vector<256xf32>
    %8 = vector.shape_cast %7 : vector<256xf32> to vector<1x256xf32>
    %9 = arith.addf %0, %8 : vector<1x256xf32>
    %cst_3 = arith.constant dense<0xFF800000> : vector<256xf32>
    %10 = vector.multi_reduction <maximumf>, %6, %cst_3 [0] : vector<4x256xf32> to vector<256xf32>
    %11 = vector.shape_cast %10 : vector<256xf32> to vector<1x256xf32>
    %12 = arith.maximumf %1, %11 : vector<1x256xf32>
    %c1_i32 = arith.constant 1 : i32
    %cst_4 = arith.constant 2.500000e-01 : f32
    %13 = vector.broadcast %cst_4 : f32 to vector<1x256xf32>
    %14 = arith.mulf %9, %13 : vector<1x256xf32>
    %cst_5 = arith.constant 0.000000e+00 : f32
    %15 = vector.broadcast %cst_5 : f32 to vector<2x3x22xf32>
    %cst_6 = arith.constant 0.000000e+00 : f32
    %16 = vector.broadcast %cst_6 : f32 to vector<2x16x3xf32>
    %c0_7 = arith.constant 0 : index
    %c0_8 = arith.constant 0 : index
    %c0_9 = arith.constant 0 : index
    %17 = vector.load %arg5[%c0_7, %c0_8, %c0_9] : memref<2x22x22xf32, #tpu.memory_space<vmem>>, vector<2x3x22xf32>
    tpu.vector_store %arg5[%c0_7, %c0_8, %c0_9], %15 {strides = array<i32>} : memref<2x22x22xf32, #tpu.memory_space<vmem>>, vector<2x3x22xf32>,
    %c0_10 = arith.constant 0 : index
    %c19 = arith.constant 19 : index
    %c0_11 = arith.constant 0 : index
    %18 = vector.load %arg5[%c0_10, %c19, %c0_11] : memref<2x22x22xf32, #tpu.memory_space<vmem>>, vector<2x3x22xf32>
    tpu.vector_store %arg5[%c0_10, %c19, %c0_11], %15 {strides = array<i32>} : memref<2x22x22xf32, #tpu.memory_space<vmem>>, vector<2x3x22xf32>,
    %c0_12 = arith.constant 0 : index
    %c3 = arith.constant 3 : index
    %c0_13 = arith.constant 0 : index
    %19 = vector.load %arg5[%c0_12, %c3, %c0_13] : memref<2x22x22xf32, #tpu.memory_space<vmem>>, vector<2x16x3xf32>
    tpu.vector_store %arg5[%c0_12, %c3, %c0_13], %16 {strides = array<i32>} : memref<2x22x22xf32, #tpu.memory_space<vmem>>, vector<2x16x3xf32>,
    %c0_14 = arith.constant 0 : index
    %c3_15 = arith.constant 3 : index
    %c19_16 = arith.constant 19 : index
    %20 = vector.load %arg5[%c0_14, %c3_15, %c19_16] : memref<2x22x22xf32, #tpu.memory_space<vmem>>, vector<2x16x3xf32>
    tpu.vector_store %arg5[%c0_14, %c3_15, %c19_16], %16 {strides = array<i32>} : memref<2x22x22xf32, #tpu.memory_space<vmem>>, vector<2x16x3xf32>,
    %21 = vector.extract_strided_slice %14 {offsets = [0, 0], sizes = [1, 16], strides = [1, 1]} : vector<1x256xf32> to vector<1x16xf32>
    %c0_17 = arith.constant 0 : index
    %c3_18 = arith.constant 3 : index
    %c3_19 = arith.constant 3 : index
    %22 = vector.load %arg5[%c0_17, %c3_18, %c3_19] : memref<2x22x22xf32, #tpu.memory_space<vmem>>, vector<1x1x16xf32>
    %23 = vector.shape_cast %22 : vector<1x1x16xf32> to vector<1x16xf32>
    %24 = vector.shape_cast %21 : vector<1x16xf32> to vector<1x1x16xf32>
    tpu.vector_store %arg5[%c0_17, %c3_18, %c3_19], %24 {strides = array<i32>} : memref<2x22x22xf32, #tpu.memory_space<vmem>>, vector<1x1x16xf32>,
    %25 = vector.extract_strided_slice %12 {offsets = [0, 0], sizes = [1, 16], strides = [1, 1]} : vector<1x256xf32> to vector<1x16xf32>
    %c1 = arith.constant 1 : index
    %c3_20 = arith.constant 3 : index
    %c3_21 = arith.constant 3 : index
    %26 = vector.load %arg5[%c1, %c3_20, %c3_21] : memref<2x22x22xf32, #tpu.memory_space<vmem>>, vector<1x1x16xf32>
    %27 = vector.shape_cast %26 : vector<1x1x16xf32> to vector<1x16xf32>
    %28 = vector.shape_cast %25 : vector<1x16xf32> to vector<1x1x16xf32>
    tpu.vector_store %arg5[%c1, %c3_20, %c3_21], %28 {strides = array<i32>} : memref<2x22x22xf32, #tpu.memory_space<vmem>>, vector<1x1x16xf32>,
    %29 = vector.extract_strided_slice %14 {offsets = [0, 16], sizes = [1, 16], strides = [1, 1]} : vector<1x256xf32> to vector<1x16xf32>
    %c0_22 = arith.constant 0 : index
    %c4 = arith.constant 4 : index
    %c3_23 = arith.constant 3 : index
    %30 = vector.load %arg5[%c0_22, %c4, %c3_23] : memref<2x22x22xf32, #tpu.memory_space<vmem>>, vector<1x1x16xf32>
    %31 = vector.shape_cast %30 : vector<1x1x16xf32> to vector<1x16xf32>
    %32 = vector.shape_cast %29 : vector<1x16xf32> to vector<1x1x16xf32>
    tpu.vector_store %arg5[%c0_22, %c4, %c3_23], %32 {strides = array<i32>} : memref<2x22x22xf32, #tpu.memory_space<vmem>>, vector<1x1x16xf32>,
    %33 = vector.extract_strided_slice %12 {offsets = [0, 16], sizes = [1, 16], strides = [1, 1]} : vector<1x256xf32> to vector<1x16xf32>
    %c1_24 = arith.constant 1 : index
    %c4_25 = arith.constant 4 : index
    %c3_26 = arith.constant 3 : index
    %34 = vector.load %arg5[%c1_24, %c4_25, %c3_26] : memref<2x22x22xf32, #tpu.memory_space<vmem>>, vector<1x1x16xf32>
    %35 = vector.shape_cast %34 : vector<1x1x16xf32> to vector<1x16xf32>
    %36 = vector.shape_cast %33 : vector<1x16xf32> to vector<1x1x16xf32>
    tpu.vector_store %arg5[%c1_24, %c4_25, %c3_26], %36 {strides = array<i32>} : memref<2x22x22xf32, #tpu.memory_space<vmem>>, vector<1x1x16xf32>,
    %37 = vector.extract_strided_slice %14 {offsets = [0, 32], sizes = [1, 16], strides = [1, 1]} : vector<1x256xf32> to vector<1x16xf32>
    %c0_27 = arith.constant 0 : index
    %c5 = arith.constant 5 : index
    %c3_28 = arith.constant 3 : index
    %38 = vector.load %arg5[%c0_27, %c5, %c3_28] : memref<2x22x22xf32, #tpu.memory_space<vmem>>, vector<1x1x16xf32>
    %39 = vector.shape_cast %38 : vector<1x1x16xf32> to vector<1x16xf32>
    %40 = vector.shape_cast %37 : vector<1x16xf32> to vector<1x1x16xf32>
    tpu.vector_store %arg5[%c0_27, %c5, %c3_28], %40 {strides = array<i32>} : memref<2x22x22xf32, #tpu.memory_space<vmem>>, vector<1x1x16xf32>,
    %41 = vector.extract_strided_slice %12 {offsets = [0, 32], sizes = [1, 16], strides = [1, 1]} : vector<1x256xf32> to vector<1x16xf32>
    %c1_29 = arith.constant 1 : index
    %c5_30 = arith.constant 5 : index
    %c3_31 = arith.constant 3 : index
    %42 = vector.load %arg5[%c1_29, %c5_30, %c3_31] : memref<2x22x22xf32, #tpu.memory_space<vmem>>, vector<1x1x16xf32>
    %43 = vector.shape_cast %42 : vector<1x1x16xf32> to vector<1x16xf32>
    %44 = vector.shape_cast %41 : vector<1x16xf32> to vector<1x1x16xf32>
    tpu.vector_store %arg5[%c1_29, %c5_30, %c3_31], %44 {strides = array<i32>} : memref<2x22x22xf32, #tpu.memory_space<vmem>>, vector<1x1x16xf32>,
    %45 = vector.extract_strided_slice %14 {offsets = [0, 48], sizes = [1, 16], strides = [1, 1]} : vector<1x256xf32> to vector<1x16xf32>
    %c0_32 = arith.constant 0 : index
    %c6 = arith.constant 6 : index
    %c3_33 = arith.constant 3 : index
    %46 = vector.load %arg5[%c0_32, %c6, %c3_33] : memref<2x22x22xf32, #tpu.memory_space<vmem>>, vector<1x1x16xf32>
    %47 = vector.shape_cast %46 : vector<1x1x16xf32> to vector<1x16xf32>
    %48 = vector.shape_cast %45 : vector<1x16xf32> to vector<1x1x16xf32>
    tpu.vector_store %arg5[%c0_32, %c6, %c3_33], %48 {strides = array<i32>} : memref<2x22x22xf32, #tpu.memory_space<vmem>>, vector<1x1x16xf32>,
    %49 = vector.extract_strided_slice %12 {offsets = [0, 48], sizes = [1, 16], strides = [1, 1]} : vector<1x256xf32> to vector<1x16xf32>
    %c1_34 = arith.constant 1 : index
    %c6_35 = arith.constant 6 : index
    %c3_36 = arith.constant 3 : index
    %50 = vector.load %arg5[%c1_34, %c6_35, %c3_36] : memref<2x22x22xf32, #tpu.memory_space<vmem>>, vector<1x1x16xf32>
    %51 = vector.shape_cast %50 : vector<1x1x16xf32> to vector<1x16xf32>
    %52 = vector.shape_cast %49 : vector<1x16xf32> to vector<1x1x16xf32>
    tpu.vector_store %arg5[%c1_34, %c6_35, %c3_36], %52 {strides = array<i32>} : memref<2x22x22xf32, #tpu.memory_space<vmem>>, vector<1x1x16xf32>,
    %53 = vector.extract_strided_slice %14 {offsets = [0, 64], sizes = [1, 16], strides = [1, 1]} : vector<1x256xf32> to vector<1x16xf32>
    %c0_37 = arith.constant 0 : index
    %c7 = arith.constant 7 : index
    %c3_38 = arith.constant 3 : index
    %54 = vector.load %arg5[%c0_37, %c7, %c3_38] : memref<2x22x22xf32, #tpu.memory_space<vmem>>, vector<1x1x16xf32>
    %55 = vector.shape_cast %54 : vector<1x1x16xf32> to vector<1x16xf32>
    %56 = vector.shape_cast %53 : vector<1x16xf32> to vector<1x1x16xf32>
    tpu.vector_store %arg5[%c0_37, %c7, %c3_38], %56 {strides = array<i32>} : memref<2x22x22xf32, #tpu.memory_space<vmem>>, vector<1x1x16xf32>,
    %57 = vector.extract_strided_slice %12 {offsets = [0, 64], sizes = [1, 16], strides = [1, 1]} : vector<1x256xf32> to vector<1x16xf32>
    %c1_39 = arith.constant 1 : index
    %c7_40 = arith.constant 7 : index
    %c3_41 = arith.constant 3 : index
    %58 = vector.load %arg5[%c1_39, %c7_40, %c3_41] : memref<2x22x22xf32, #tpu.memory_space<vmem>>, vector<1x1x16xf32>
    %59 = vector.shape_cast %58 : vector<1x1x16xf32> to vector<1x16xf32>
    %60 = vector.shape_cast %57 : vector<1x16xf32> to vector<1x1x16xf32>
    tpu.vector_store %arg5[%c1_39, %c7_40, %c3_41], %60 {strides = array<i32>} : memref<2x22x22xf32, #tpu.memory_space<vmem>>, vector<1x1x16xf32>,
    %61 = vector.extract_strided_slice %14 {offsets = [0, 80], sizes = [1, 16], strides = [1, 1]} : vector<1x256xf32> to vector<1x16xf32>
    %c0_42 = arith.constant 0 : index
    %c8 = arith.constant 8 : index
    %c3_43 = arith.constant 3 : index
    %62 = vector.load %arg5[%c0_42, %c8, %c3_43] : memref<2x22x22xf32, #tpu.memory_space<vmem>>, vector<1x1x16xf32>
    %63 = vector.shape_cast %62 : vector<1x1x16xf32> to vector<1x16xf32>
    %64 = vector.shape_cast %61 : vector<1x16xf32> to vector<1x1x16xf32>
    tpu.vector_store %arg5[%c0_42, %c8, %c3_43], %64 {strides = array<i32>} : memref<2x22x22xf32, #tpu.memory_space<vmem>>, vector<1x1x16xf32>,
    %65 = vector.extract_strided_slice %12 {offsets = [0, 80], sizes = [1, 16], strides = [1, 1]} : vector<1x256xf32> to vector<1x16xf32>
    %c1_44 = arith.constant 1 : index
    %c8_45 = arith.constant 8 : index
    %c3_46 = arith.constant 3 : index
    %66 = vector.load %arg5[%c1_44, %c8_45, %c3_46] : memref<2x22x22xf32, #tpu.memory_space<vmem>>, vector<1x1x16xf32>
    %67 = vector.shape_cast %66 : vector<1x1x16xf32> to vector<1x16xf32>
    %68 = vector.shape_cast %65 : vector<1x16xf32> to vector<1x1x16xf32>
    tpu.vector_store %arg5[%c1_44, %c8_45, %c3_46], %68 {strides = array<i32>} : memref<2x22x22xf32, #tpu.memory_space<vmem>>, vector<1x1x16xf32>,
    %69 = vector.extract_strided_slice %14 {offsets = [0, 96], sizes = [1, 16], strides = [1, 1]} : vector<1x256xf32> to vector<1x16xf32>
    %c0_47 = arith.constant 0 : index
    %c9 = arith.constant 9 : index
    %c3_48 = arith.constant 3 : index
    %70 = vector.load %arg5[%c0_47, %c9, %c3_48] : memref<2x22x22xf32, #tpu.memory_space<vmem>>, vector<1x1x16xf32>
    %71 = vector.shape_cast %70 : vector<1x1x16xf32> to vector<1x16xf32>
    %72 = vector.shape_cast %69 : vector<1x16xf32> to vector<1x1x16xf32>
    tpu.vector_store %arg5[%c0_47, %c9, %c3_48], %72 {strides = array<i32>} : memref<2x22x22xf32, #tpu.memory_space<vmem>>, vector<1x1x16xf32>,
    %73 = vector.extract_strided_slice %12 {offsets = [0, 96], sizes = [1, 16], strides = [1, 1]} : vector<1x256xf32> to vector<1x16xf32>
    %c1_49 = arith.constant 1 : index
    %c9_50 = arith.constant 9 : index
    %c3_51 = arith.constant 3 : index
    %74 = vector.load %arg5[%c1_49, %c9_50, %c3_51] : memref<2x22x22xf32, #tpu.memory_space<vmem>>, vector<1x1x16xf32>
    %75 = vector.shape_cast %74 : vector<1x1x16xf32> to vector<1x16xf32>
    %76 = vector.shape_cast %73 : vector<1x16xf32> to vector<1x1x16xf32>
    tpu.vector_store %arg5[%c1_49, %c9_50, %c3_51], %76 {strides = array<i32>} : memref<2x22x22xf32, #tpu.memory_space<vmem>>, vector<1x1x16xf32>,
    %77 = vector.extract_strided_slice %14 {offsets = [0, 112], sizes = [1, 16], strides = [1, 1]} : vector<1x256xf32> to vector<1x16xf32>
    %c0_52 = arith.constant 0 : index
    %c10 = arith.constant 10 : index
    %c3_53 = arith.constant 3 : index
    %78 = vector.load %arg5[%c0_52, %c10, %c3_53] : memref<2x22x22xf32, #tpu.memory_space<vmem>>, vector<1x1x16xf32>
    %79 = vector.shape_cast %78 : vector<1x1x16xf32> to vector<1x16xf32>
    %80 = vector.shape_cast %77 : vector<1x16xf32> to vector<1x1x16xf32>
    tpu.vector_store %arg5[%c0_52, %c10, %c3_53], %80 {strides = array<i32>} : memref<2x22x22xf32, #tpu.memory_space<vmem>>, vector<1x1x16xf32>,
    %81 = vector.extract_strided_slice %12 {offsets = [0, 112], sizes = [1, 16], strides = [1, 1]} : vector<1x256xf32> to vector<1x16xf32>
    %c1_54 = arith.constant 1 : index
    %c10_55 = arith.constant 10 : index
    %c3_56 = arith.constant 3 : index
    %82 = vector.load %arg5[%c1_54, %c10_55, %c3_56] : memref<2x22x22xf32, #tpu.memory_space<vmem>>, vector<1x1x16xf32>
    %83 = vector.shape_cast %82 : vector<1x1x16xf32> to vector<1x16xf32>
    %84 = vector.shape_cast %81 : vector<1x16xf32> to vector<1x1x16xf32>
    tpu.vector_store %arg5[%c1_54, %c10_55, %c3_56], %84 {strides = array<i32>} : memref<2x22x22xf32, #tpu.memory_space<vmem>>, vector<1x1x16xf32>,
    %85 = vector.extract_strided_slice %14 {offsets = [0, 128], sizes = [1, 16], strides = [1, 1]} : vector<1x256xf32> to vector<1x16xf32>
    %c0_57 = arith.constant 0 : index
    %c11 = arith.constant 11 : index
    %c3_58 = arith.constant 3 : index
    %86 = vector.load %arg5[%c0_57, %c11, %c3_58] : memref<2x22x22xf32, #tpu.memory_space<vmem>>, vector<1x1x16xf32>
    %87 = vector.shape_cast %86 : vector<1x1x16xf32> to vector<1x16xf32>
    %88 = vector.shape_cast %85 : vector<1x16xf32> to vector<1x1x16xf32>
    tpu.vector_store %arg5[%c0_57, %c11, %c3_58], %88 {strides = array<i32>} : memref<2x22x22xf32, #tpu.memory_space<vmem>>, vector<1x1x16xf32>,
    %89 = vector.extract_strided_slice %12 {offsets = [0, 128], sizes = [1, 16], strides = [1, 1]} : vector<1x256xf32> to vector<1x16xf32>
    %c1_59 = arith.constant 1 : index
    %c11_60 = arith.constant 11 : index
    %c3_61 = arith.constant 3 : index
    %90 = vector.load %arg5[%c1_59, %c11_60, %c3_61] : memref<2x22x22xf32, #tpu.memory_space<vmem>>, vector<1x1x16xf32>
    %91 = vector.shape_cast %90 : vector<1x1x16xf32> to vector<1x16xf32>
    %92 = vector.shape_cast %89 : vector<1x16xf32> to vector<1x1x16xf32>
    tpu.vector_store %arg5[%c1_59, %c11_60, %c3_61], %92 {strides = array<i32>} : memref<2x22x22xf32, #tpu.memory_space<vmem>>, vector<1x1x16xf32>,
    %93 = vector.extract_strided_slice %14 {offsets = [0, 144], sizes = [1, 16], strides = [1, 1]} : vector<1x256xf32> to vector<1x16xf32>
    %c0_62 = arith.constant 0 : index
    %c12 = arith.constant 12 : index
    %c3_63 = arith.constant 3 : index
    %94 = vector.load %arg5[%c0_62, %c12, %c3_63] : memref<2x22x22xf32, #tpu.memory_space<vmem>>, vector<1x1x16xf32>
    %95 = vector.shape_cast %94 : vector<1x1x16xf32> to vector<1x16xf32>
    %96 = vector.shape_cast %93 : vector<1x16xf32> to vector<1x1x16xf32>
    tpu.vector_store %arg5[%c0_62, %c12, %c3_63], %96 {strides = array<i32>} : memref<2x22x22xf32, #tpu.memory_space<vmem>>, vector<1x1x16xf32>,
    %97 = vector.extract_strided_slice %12 {offsets = [0, 144], sizes = [1, 16], strides = [1, 1]} : vector<1x256xf32> to vector<1x16xf32>
    %c1_64 = arith.constant 1 : index
    %c12_65 = arith.constant 12 : index
    %c3_66 = arith.constant 3 : index
    %98 = vector.load %arg5[%c1_64, %c12_65, %c3_66] : memref<2x22x22xf32, #tpu.memory_space<vmem>>, vector<1x1x16xf32>
    %99 = vector.shape_cast %98 : vector<1x1x16xf32> to vector<1x16xf32>
    %100 = vector.shape_cast %97 : vector<1x16xf32> to vector<1x1x16xf32>
    tpu.vector_store %arg5[%c1_64, %c12_65, %c3_66], %100 {strides = array<i32>} : memref<2x22x22xf32, #tpu.memory_space<vmem>>, vector<1x1x16xf32>,
    %101 = vector.extract_strided_slice %14 {offsets = [0, 160], sizes = [1, 16], strides = [1, 1]} : vector<1x256xf32> to vector<1x16xf32>
    %c0_67 = arith.constant 0 : index
    %c13 = arith.constant 13 : index
    %c3_68 = arith.constant 3 : index
    %102 = vector.load %arg5[%c0_67, %c13, %c3_68] : memref<2x22x22xf32, #tpu.memory_space<vmem>>, vector<1x1x16xf32>
    %103 = vector.shape_cast %102 : vector<1x1x16xf32> to vector<1x16xf32>
    %104 = vector.shape_cast %101 : vector<1x16xf32> to vector<1x1x16xf32>
    tpu.vector_store %arg5[%c0_67, %c13, %c3_68], %104 {strides = array<i32>} : memref<2x22x22xf32, #tpu.memory_space<vmem>>, vector<1x1x16xf32>,
    %105 = vector.extract_strided_slice %12 {offsets = [0, 160], sizes = [1, 16], strides = [1, 1]} : vector<1x256xf32> to vector<1x16xf32>
    %c1_69 = arith.constant 1 : index
    %c13_70 = arith.constant 13 : index
    %c3_71 = arith.constant 3 : index
    %106 = vector.load %arg5[%c1_69, %c13_70, %c3_71] : memref<2x22x22xf32, #tpu.memory_space<vmem>>, vector<1x1x16xf32>
    %107 = vector.shape_cast %106 : vector<1x1x16xf32> to vector<1x16xf32>
    %108 = vector.shape_cast %105 : vector<1x16xf32> to vector<1x1x16xf32>
    tpu.vector_store %arg5[%c1_69, %c13_70, %c3_71], %108 {strides = array<i32>} : memref<2x22x22xf32, #tpu.memory_space<vmem>>, vector<1x1x16xf32>,
    %109 = vector.extract_strided_slice %14 {offsets = [0, 176], sizes = [1, 16], strides = [1, 1]} : vector<1x256xf32> to vector<1x16xf32>
    %c0_72 = arith.constant 0 : index
    %c14 = arith.constant 14 : index
    %c3_73 = arith.constant 3 : index
    %110 = vector.load %arg5[%c0_72, %c14, %c3_73] : memref<2x22x22xf32, #tpu.memory_space<vmem>>, vector<1x1x16xf32>
    %111 = vector.shape_cast %110 : vector<1x1x16xf32> to vector<1x16xf32>
    %112 = vector.shape_cast %109 : vector<1x16xf32> to vector<1x1x16xf32>
    tpu.vector_store %arg5[%c0_72, %c14, %c3_73], %112 {strides = array<i32>} : memref<2x22x22xf32, #tpu.memory_space<vmem>>, vector<1x1x16xf32>,
    %113 = vector.extract_strided_slice %12 {offsets = [0, 176], sizes = [1, 16], strides = [1, 1]} : vector<1x256xf32> to vector<1x16xf32>
    %c1_74 = arith.constant 1 : index
    %c14_75 = arith.constant 14 : index
    %c3_76 = arith.constant 3 : index
    %114 = vector.load %arg5[%c1_74, %c14_75, %c3_76] : memref<2x22x22xf32, #tpu.memory_space<vmem>>, vector<1x1x16xf32>
    %115 = vector.shape_cast %114 : vector<1x1x16xf32> to vector<1x16xf32>
    %116 = vector.shape_cast %113 : vector<1x16xf32> to vector<1x1x16xf32>
    tpu.vector_store %arg5[%c1_74, %c14_75, %c3_76], %116 {strides = array<i32>} : memref<2x22x22xf32, #tpu.memory_space<vmem>>, vector<1x1x16xf32>,
    %117 = vector.extract_strided_slice %14 {offsets = [0, 192], sizes = [1, 16], strides = [1, 1]} : vector<1x256xf32> to vector<1x16xf32>
    %c0_77 = arith.constant 0 : index
    %c15 = arith.constant 15 : index
    %c3_78 = arith.constant 3 : index
    %118 = vector.load %arg5[%c0_77, %c15, %c3_78] : memref<2x22x22xf32, #tpu.memory_space<vmem>>, vector<1x1x16xf32>
    %119 = vector.shape_cast %118 : vector<1x1x16xf32> to vector<1x16xf32>
    %120 = vector.shape_cast %117 : vector<1x16xf32> to vector<1x1x16xf32>
    tpu.vector_store %arg5[%c0_77, %c15, %c3_78], %120 {strides = array<i32>} : memref<2x22x22xf32, #tpu.memory_space<vmem>>, vector<1x1x16xf32>,
    %121 = vector.extract_strided_slice %12 {offsets = [0, 192], sizes = [1, 16], strides = [1, 1]} : vector<1x256xf32> to vector<1x16xf32>
    %c1_79 = arith.constant 1 : index
    %c15_80 = arith.constant 15 : index
    %c3_81 = arith.constant 3 : index
    %122 = vector.load %arg5[%c1_79, %c15_80, %c3_81] : memref<2x22x22xf32, #tpu.memory_space<vmem>>, vector<1x1x16xf32>
    %123 = vector.shape_cast %122 : vector<1x1x16xf32> to vector<1x16xf32>
    %124 = vector.shape_cast %121 : vector<1x16xf32> to vector<1x1x16xf32>
    tpu.vector_store %arg5[%c1_79, %c15_80, %c3_81], %124 {strides = array<i32>} : memref<2x22x22xf32, #tpu.memory_space<vmem>>, vector<1x1x16xf32>,
    %125 = vector.extract_strided_slice %14 {offsets = [0, 208], sizes = [1, 16], strides = [1, 1]} : vector<1x256xf32> to vector<1x16xf32>
    %c0_82 = arith.constant 0 : index
    %c16 = arith.constant 16 : index
    %c3_83 = arith.constant 3 : index
    %126 = vector.load %arg5[%c0_82, %c16, %c3_83] : memref<2x22x22xf32, #tpu.memory_space<vmem>>, vector<1x1x16xf32>
    %127 = vector.shape_cast %126 : vector<1x1x16xf32> to vector<1x16xf32>
    %128 = vector.shape_cast %125 : vector<1x16xf32> to vector<1x1x16xf32>
    tpu.vector_store %arg5[%c0_82, %c16, %c3_83], %128 {strides = array<i32>} : memref<2x22x22xf32, #tpu.memory_space<vmem>>, vector<1x1x16xf32>,
    %129 = vector.extract_strided_slice %12 {offsets = [0, 208], sizes = [1, 16], strides = [1, 1]} : vector<1x256xf32> to vector<1x16xf32>
    %c1_84 = arith.constant 1 : index
    %c16_85 = arith.constant 16 : index
    %c3_86 = arith.constant 3 : index
    %130 = vector.load %arg5[%c1_84, %c16_85, %c3_86] : memref<2x22x22xf32, #tpu.memory_space<vmem>>, vector<1x1x16xf32>
    %131 = vector.shape_cast %130 : vector<1x1x16xf32> to vector<1x16xf32>
    %132 = vector.shape_cast %129 : vector<1x16xf32> to vector<1x1x16xf32>
    tpu.vector_store %arg5[%c1_84, %c16_85, %c3_86], %132 {strides = array<i32>} : memref<2x22x22xf32, #tpu.memory_space<vmem>>, vector<1x1x16xf32>,
    %133 = vector.extract_strided_slice %14 {offsets = [0, 224], sizes = [1, 16], strides = [1, 1]} : vector<1x256xf32> to vector<1x16xf32>
    %c0_87 = arith.constant 0 : index
    %c17 = arith.constant 17 : index
    %c3_88 = arith.constant 3 : index
    %134 = vector.load %arg5[%c0_87, %c17, %c3_88] : memref<2x22x22xf32, #tpu.memory_space<vmem>>, vector<1x1x16xf32>
    %135 = vector.shape_cast %134 : vector<1x1x16xf32> to vector<1x16xf32>
    %136 = vector.shape_cast %133 : vector<1x16xf32> to vector<1x1x16xf32>
    tpu.vector_store %arg5[%c0_87, %c17, %c3_88], %136 {strides = array<i32>} : memref<2x22x22xf32, #tpu.memory_space<vmem>>, vector<1x1x16xf32>,
    %137 = vector.extract_strided_slice %12 {offsets = [0, 224], sizes = [1, 16], strides = [1, 1]} : vector<1x256xf32> to vector<1x16xf32>
    %c1_89 = arith.constant 1 : index
    %c17_90 = arith.constant 17 : index
    %c3_91 = arith.constant 3 : index
    %138 = vector.load %arg5[%c1_89, %c17_90, %c3_91] : memref<2x22x22xf32, #tpu.memory_space<vmem>>, vector<1x1x16xf32>
    %139 = vector.shape_cast %138 : vector<1x1x16xf32> to vector<1x16xf32>
    %140 = vector.shape_cast %137 : vector<1x16xf32> to vector<1x1x16xf32>
    tpu.vector_store %arg5[%c1_89, %c17_90, %c3_91], %140 {strides = array<i32>} : memref<2x22x22xf32, #tpu.memory_space<vmem>>, vector<1x1x16xf32>,
    %141 = vector.extract_strided_slice %14 {offsets = [0, 240], sizes = [1, 16], strides = [1, 1]} : vector<1x256xf32> to vector<1x16xf32>
    %c0_92 = arith.constant 0 : index
    %c18 = arith.constant 18 : index
    %c3_93 = arith.constant 3 : index
    %142 = vector.load %arg5[%c0_92, %c18, %c3_93] : memref<2x22x22xf32, #tpu.memory_space<vmem>>, vector<1x1x16xf32>
    %143 = vector.shape_cast %142 : vector<1x1x16xf32> to vector<1x16xf32>
    %144 = vector.shape_cast %141 : vector<1x16xf32> to vector<1x1x16xf32>
    tpu.vector_store %arg5[%c0_92, %c18, %c3_93], %144 {strides = array<i32>} : memref<2x22x22xf32, #tpu.memory_space<vmem>>, vector<1x1x16xf32>,
    %145 = vector.extract_strided_slice %12 {offsets = [0, 240], sizes = [1, 16], strides = [1, 1]} : vector<1x256xf32> to vector<1x16xf32>
    %c1_94 = arith.constant 1 : index
    %c18_95 = arith.constant 18 : index
    %c3_96 = arith.constant 3 : index
    %146 = vector.load %arg5[%c1_94, %c18_95, %c3_96] : memref<2x22x22xf32, #tpu.memory_space<vmem>>, vector<1x1x16xf32>
    %147 = vector.shape_cast %146 : vector<1x1x16xf32> to vector<1x16xf32>
    %148 = vector.shape_cast %145 : vector<1x16xf32> to vector<1x1x16xf32>
    tpu.vector_store %arg5[%c1_94, %c18_95, %c3_96], %148 {strides = array<i32>} : memref<2x22x22xf32, #tpu.memory_space<vmem>>, vector<1x1x16xf32>,
    %cst_97 = arith.constant 0.000000e+00 : f32
    %149 = vector.broadcast %cst_97 : f32 to vector<16x16xf32>
    %c0_98 = arith.constant 0 : index
    %c0_99 = arith.constant 0 : index
    %c0_100 = arith.constant 0 : index
    %150 = vector.load %arg5[%c0_98, %c0_99, %c0_100] : memref<2x22x22xf32, #tpu.memory_space<vmem>>, vector<1x22x22xf32>
    %151 = vector.shape_cast %150 : vector<1x22x22xf32> to vector<22x22xf32>
    %152 = vector.extract_strided_slice %151 {offsets = [0, 0], sizes = [16, 22], strides = [1, 1]} : vector<22x22xf32> to vector<16x22xf32>
    %c0_101 = arith.constant 0 : index
    %153 = memref.load %arg2[%c0_101] : memref<98xf32, #tpu.memory_space<smem>>
    %154 = vector.extract_strided_slice %152 {offsets = [0, 0], sizes = [16, 16], strides = [1, 1]} : vector<16x22xf32> to vector<16x16xf32>
    %155 = vector.broadcast %153 : f32 to vector<16x16xf32>
    %156 = arith.mulf %155, %154 : vector<16x16xf32>
    %157 = arith.addf %149, %156 : vector<16x16xf32>
    %c1_102 = arith.constant 1 : index
    %158 = memref.load %arg2[%c1_102] : memref<98xf32, #tpu.memory_space<smem>>
    %159 = vector.extract_strided_slice %152 {offsets = [0, 1], sizes = [16, 16], strides = [1, 1]} : vector<16x22xf32> to vector<16x16xf32>
    %160 = vector.broadcast %158 : f32 to vector<16x16xf32>
    %161 = arith.mulf %160, %159 : vector<16x16xf32>
    %162 = arith.addf %157, %161 : vector<16x16xf32>
    %c2 = arith.constant 2 : index
    %163 = memref.load %arg2[%c2] : memref<98xf32, #tpu.memory_space<smem>>
    %164 = vector.extract_strided_slice %152 {offsets = [0, 2], sizes = [16, 16], strides = [1, 1]} : vector<16x22xf32> to vector<16x16xf32>
    %165 = vector.broadcast %163 : f32 to vector<16x16xf32>
    %166 = arith.mulf %165, %164 : vector<16x16xf32>
    %167 = arith.addf %162, %166 : vector<16x16xf32>
    %c3_103 = arith.constant 3 : index
    %168 = memref.load %arg2[%c3_103] : memref<98xf32, #tpu.memory_space<smem>>
    %169 = vector.extract_strided_slice %152 {offsets = [0, 3], sizes = [16, 16], strides = [1, 1]} : vector<16x22xf32> to vector<16x16xf32>
    %170 = vector.broadcast %168 : f32 to vector<16x16xf32>
    %171 = arith.mulf %170, %169 : vector<16x16xf32>
    %172 = arith.addf %167, %171 : vector<16x16xf32>
    %c4_104 = arith.constant 4 : index
    %173 = memref.load %arg2[%c4_104] : memref<98xf32, #tpu.memory_space<smem>>
    %174 = vector.extract_strided_slice %152 {offsets = [0, 4], sizes = [16, 16], strides = [1, 1]} : vector<16x22xf32> to vector<16x16xf32>
    %175 = vector.broadcast %173 : f32 to vector<16x16xf32>
    %176 = arith.mulf %175, %174 : vector<16x16xf32>
    %177 = arith.addf %172, %176 : vector<16x16xf32>
    %c5_105 = arith.constant 5 : index
    %178 = memref.load %arg2[%c5_105] : memref<98xf32, #tpu.memory_space<smem>>
    %179 = vector.extract_strided_slice %152 {offsets = [0, 5], sizes = [16, 16], strides = [1, 1]} : vector<16x22xf32> to vector<16x16xf32>
    %180 = vector.broadcast %178 : f32 to vector<16x16xf32>
    %181 = arith.mulf %180, %179 : vector<16x16xf32>
    %182 = arith.addf %177, %181 : vector<16x16xf32>
    %c6_106 = arith.constant 6 : index
    %183 = memref.load %arg2[%c6_106] : memref<98xf32, #tpu.memory_space<smem>>
    %184 = vector.extract_strided_slice %152 {offsets = [0, 6], sizes = [16, 16], strides = [1, 1]} : vector<16x22xf32> to vector<16x16xf32>
    %185 = vector.broadcast %183 : f32 to vector<16x16xf32>
    %186 = arith.mulf %185, %184 : vector<16x16xf32>
    %187 = arith.addf %182, %186 : vector<16x16xf32>
    %188 = vector.extract_strided_slice %151 {offsets = [1, 0], sizes = [16, 22], strides = [1, 1]} : vector<22x22xf32> to vector<16x22xf32>
    %c7_107 = arith.constant 7 : index
    %189 = memref.load %arg2[%c7_107] : memref<98xf32, #tpu.memory_space<smem>>
    %190 = vector.extract_strided_slice %188 {offsets = [0, 0], sizes = [16, 16], strides = [1, 1]} : vector<16x22xf32> to vector<16x16xf32>
    %191 = vector.broadcast %189 : f32 to vector<16x16xf32>
    %192 = arith.mulf %191, %190 : vector<16x16xf32>
    %193 = arith.addf %187, %192 : vector<16x16xf32>
    %c8_108 = arith.constant 8 : index
    %194 = memref.load %arg2[%c8_108] : memref<98xf32, #tpu.memory_space<smem>>
    %195 = vector.extract_strided_slice %188 {offsets = [0, 1], sizes = [16, 16], strides = [1, 1]} : vector<16x22xf32> to vector<16x16xf32>
    %196 = vector.broadcast %194 : f32 to vector<16x16xf32>
    %197 = arith.mulf %196, %195 : vector<16x16xf32>
    %198 = arith.addf %193, %197 : vector<16x16xf32>
    %c9_109 = arith.constant 9 : index
    %199 = memref.load %arg2[%c9_109] : memref<98xf32, #tpu.memory_space<smem>>
    %200 = vector.extract_strided_slice %188 {offsets = [0, 2], sizes = [16, 16], strides = [1, 1]} : vector<16x22xf32> to vector<16x16xf32>
    %201 = vector.broadcast %199 : f32 to vector<16x16xf32>
    %202 = arith.mulf %201, %200 : vector<16x16xf32>
    %203 = arith.addf %198, %202 : vector<16x16xf32>
    %c10_110 = arith.constant 10 : index
    %204 = memref.load %arg2[%c10_110] : memref<98xf32, #tpu.memory_space<smem>>
    %205 = vector.extract_strided_slice %188 {offsets = [0, 3], sizes = [16, 16], strides = [1, 1]} : vector<16x22xf32> to vector<16x16xf32>
    %206 = vector.broadcast %204 : f32 to vector<16x16xf32>
    %207 = arith.mulf %206, %205 : vector<16x16xf32>
    %208 = arith.addf %203, %207 : vector<16x16xf32>
    %c11_111 = arith.constant 11 : index
    %209 = memref.load %arg2[%c11_111] : memref<98xf32, #tpu.memory_space<smem>>
    %210 = vector.extract_strided_slice %188 {offsets = [0, 4], sizes = [16, 16], strides = [1, 1]} : vector<16x22xf32> to vector<16x16xf32>
    %211 = vector.broadcast %209 : f32 to vector<16x16xf32>
    %212 = arith.mulf %211, %210 : vector<16x16xf32>
    %213 = arith.addf %208, %212 : vector<16x16xf32>
    %c12_112 = arith.constant 12 : index
    %214 = memref.load %arg2[%c12_112] : memref<98xf32, #tpu.memory_space<smem>>
    %215 = vector.extract_strided_slice %188 {offsets = [0, 5], sizes = [16, 16], strides = [1, 1]} : vector<16x22xf32> to vector<16x16xf32>
    %216 = vector.broadcast %214 : f32 to vector<16x16xf32>
    %217 = arith.mulf %216, %215 : vector<16x16xf32>
    %218 = arith.addf %213, %217 : vector<16x16xf32>
    %c13_113 = arith.constant 13 : index
    %219 = memref.load %arg2[%c13_113] : memref<98xf32, #tpu.memory_space<smem>>
    %220 = vector.extract_strided_slice %188 {offsets = [0, 6], sizes = [16, 16], strides = [1, 1]} : vector<16x22xf32> to vector<16x16xf32>
    %221 = vector.broadcast %219 : f32 to vector<16x16xf32>
    %222 = arith.mulf %221, %220 : vector<16x16xf32>
    %223 = arith.addf %218, %222 : vector<16x16xf32>
    %224 = vector.extract_strided_slice %151 {offsets = [2, 0], sizes = [16, 22], strides = [1, 1]} : vector<22x22xf32> to vector<16x22xf32>
    %c14_114 = arith.constant 14 : index
    %225 = memref.load %arg2[%c14_114] : memref<98xf32, #tpu.memory_space<smem>>
    %226 = vector.extract_strided_slice %224 {offsets = [0, 0], sizes = [16, 16], strides = [1, 1]} : vector<16x22xf32> to vector<16x16xf32>
    %227 = vector.broadcast %225 : f32 to vector<16x16xf32>
    %228 = arith.mulf %227, %226 : vector<16x16xf32>
    %229 = arith.addf %223, %228 : vector<16x16xf32>
    %c15_115 = arith.constant 15 : index
    %230 = memref.load %arg2[%c15_115] : memref<98xf32, #tpu.memory_space<smem>>
    %231 = vector.extract_strided_slice %224 {offsets = [0, 1], sizes = [16, 16], strides = [1, 1]} : vector<16x22xf32> to vector<16x16xf32>
    %232 = vector.broadcast %230 : f32 to vector<16x16xf32>
    %233 = arith.mulf %232, %231 : vector<16x16xf32>
    %234 = arith.addf %229, %233 : vector<16x16xf32>
    %c16_116 = arith.constant 16 : index
    %235 = memref.load %arg2[%c16_116] : memref<98xf32, #tpu.memory_space<smem>>
    %236 = vector.extract_strided_slice %224 {offsets = [0, 2], sizes = [16, 16], strides = [1, 1]} : vector<16x22xf32> to vector<16x16xf32>
    %237 = vector.broadcast %235 : f32 to vector<16x16xf32>
    %238 = arith.mulf %237, %236 : vector<16x16xf32>
    %239 = arith.addf %234, %238 : vector<16x16xf32>
    %c17_117 = arith.constant 17 : index
    %240 = memref.load %arg2[%c17_117] : memref<98xf32, #tpu.memory_space<smem>>
    %241 = vector.extract_strided_slice %224 {offsets = [0, 3], sizes = [16, 16], strides = [1, 1]} : vector<16x22xf32> to vector<16x16xf32>
    %242 = vector.broadcast %240 : f32 to vector<16x16xf32>
    %243 = arith.mulf %242, %241 : vector<16x16xf32>
    %244 = arith.addf %239, %243 : vector<16x16xf32>
    %c18_118 = arith.constant 18 : index
    %245 = memref.load %arg2[%c18_118] : memref<98xf32, #tpu.memory_space<smem>>
    %246 = vector.extract_strided_slice %224 {offsets = [0, 4], sizes = [16, 16], strides = [1, 1]} : vector<16x22xf32> to vector<16x16xf32>
    %247 = vector.broadcast %245 : f32 to vector<16x16xf32>
    %248 = arith.mulf %247, %246 : vector<16x16xf32>
    %249 = arith.addf %244, %248 : vector<16x16xf32>
    %c19_119 = arith.constant 19 : index
    %250 = memref.load %arg2[%c19_119] : memref<98xf32, #tpu.memory_space<smem>>
    %251 = vector.extract_strided_slice %224 {offsets = [0, 5], sizes = [16, 16], strides = [1, 1]} : vector<16x22xf32> to vector<16x16xf32>
    %252 = vector.broadcast %250 : f32 to vector<16x16xf32>
    %253 = arith.mulf %252, %251 : vector<16x16xf32>
    %254 = arith.addf %249, %253 : vector<16x16xf32>
    %c20 = arith.constant 20 : index
    %255 = memref.load %arg2[%c20] : memref<98xf32, #tpu.memory_space<smem>>
    %256 = vector.extract_strided_slice %224 {offsets = [0, 6], sizes = [16, 16], strides = [1, 1]} : vector<16x22xf32> to vector<16x16xf32>
    %257 = vector.broadcast %255 : f32 to vector<16x16xf32>
    %258 = arith.mulf %257, %256 : vector<16x16xf32>
    %259 = arith.addf %254, %258 : vector<16x16xf32>
    %260 = vector.extract_strided_slice %151 {offsets = [3, 0], sizes = [16, 22], strides = [1, 1]} : vector<22x22xf32> to vector<16x22xf32>
    %c21 = arith.constant 21 : index
    %261 = memref.load %arg2[%c21] : memref<98xf32, #tpu.memory_space<smem>>
    %262 = vector.extract_strided_slice %260 {offsets = [0, 0], sizes = [16, 16], strides = [1, 1]} : vector<16x22xf32> to vector<16x16xf32>
    %263 = vector.broadcast %261 : f32 to vector<16x16xf32>
    %264 = arith.mulf %263, %262 : vector<16x16xf32>
    %265 = arith.addf %259, %264 : vector<16x16xf32>
    %c22 = arith.constant 22 : index
    %266 = memref.load %arg2[%c22] : memref<98xf32, #tpu.memory_space<smem>>
    %267 = vector.extract_strided_slice %260 {offsets = [0, 1], sizes = [16, 16], strides = [1, 1]} : vector<16x22xf32> to vector<16x16xf32>
    %268 = vector.broadcast %266 : f32 to vector<16x16xf32>
    %269 = arith.mulf %268, %267 : vector<16x16xf32>
    %270 = arith.addf %265, %269 : vector<16x16xf32>
    %c23 = arith.constant 23 : index
    %271 = memref.load %arg2[%c23] : memref<98xf32, #tpu.memory_space<smem>>
    %272 = vector.extract_strided_slice %260 {offsets = [0, 2], sizes = [16, 16], strides = [1, 1]} : vector<16x22xf32> to vector<16x16xf32>
    %273 = vector.broadcast %271 : f32 to vector<16x16xf32>
    %274 = arith.mulf %273, %272 : vector<16x16xf32>
    %275 = arith.addf %270, %274 : vector<16x16xf32>
    %c24 = arith.constant 24 : index
    %276 = memref.load %arg2[%c24] : memref<98xf32, #tpu.memory_space<smem>>
    %277 = vector.extract_strided_slice %260 {offsets = [0, 3], sizes = [16, 16], strides = [1, 1]} : vector<16x22xf32> to vector<16x16xf32>
    %278 = vector.broadcast %276 : f32 to vector<16x16xf32>
    %279 = arith.mulf %278, %277 : vector<16x16xf32>
    %280 = arith.addf %275, %279 : vector<16x16xf32>
    %c25 = arith.constant 25 : index
    %281 = memref.load %arg2[%c25] : memref<98xf32, #tpu.memory_space<smem>>
    %282 = vector.extract_strided_slice %260 {offsets = [0, 4], sizes = [16, 16], strides = [1, 1]} : vector<16x22xf32> to vector<16x16xf32>
    %283 = vector.broadcast %281 : f32 to vector<16x16xf32>
    %284 = arith.mulf %283, %282 : vector<16x16xf32>
    %285 = arith.addf %280, %284 : vector<16x16xf32>
    %c26 = arith.constant 26 : index
    %286 = memref.load %arg2[%c26] : memref<98xf32, #tpu.memory_space<smem>>
    %287 = vector.extract_strided_slice %260 {offsets = [0, 5], sizes = [16, 16], strides = [1, 1]} : vector<16x22xf32> to vector<16x16xf32>
    %288 = vector.broadcast %286 : f32 to vector<16x16xf32>
    %289 = arith.mulf %288, %287 : vector<16x16xf32>
    %290 = arith.addf %285, %289 : vector<16x16xf32>
    %c27 = arith.constant 27 : index
    %291 = memref.load %arg2[%c27] : memref<98xf32, #tpu.memory_space<smem>>
    %292 = vector.extract_strided_slice %260 {offsets = [0, 6], sizes = [16, 16], strides = [1, 1]} : vector<16x22xf32> to vector<16x16xf32>
    %293 = vector.broadcast %291 : f32 to vector<16x16xf32>
    %294 = arith.mulf %293, %292 : vector<16x16xf32>
    %295 = arith.addf %290, %294 : vector<16x16xf32>
    %296 = vector.extract_strided_slice %151 {offsets = [4, 0], sizes = [16, 22], strides = [1, 1]} : vector<22x22xf32> to vector<16x22xf32>
    %c28 = arith.constant 28 : index
    %297 = memref.load %arg2[%c28] : memref<98xf32, #tpu.memory_space<smem>>
    %298 = vector.extract_strided_slice %296 {offsets = [0, 0], sizes = [16, 16], strides = [1, 1]} : vector<16x22xf32> to vector<16x16xf32>
    %299 = vector.broadcast %297 : f32 to vector<16x16xf32>
    %300 = arith.mulf %299, %298 : vector<16x16xf32>
    %301 = arith.addf %295, %300 : vector<16x16xf32>
    %c29 = arith.constant 29 : index
    %302 = memref.load %arg2[%c29] : memref<98xf32, #tpu.memory_space<smem>>
    %303 = vector.extract_strided_slice %296 {offsets = [0, 1], sizes = [16, 16], strides = [1, 1]} : vector<16x22xf32> to vector<16x16xf32>
    %304 = vector.broadcast %302 : f32 to vector<16x16xf32>
    %305 = arith.mulf %304, %303 : vector<16x16xf32>
    %306 = arith.addf %301, %305 : vector<16x16xf32>
    %c30 = arith.constant 30 : index
    %307 = memref.load %arg2[%c30] : memref<98xf32, #tpu.memory_space<smem>>
    %308 = vector.extract_strided_slice %296 {offsets = [0, 2], sizes = [16, 16], strides = [1, 1]} : vector<16x22xf32> to vector<16x16xf32>
    %309 = vector.broadcast %307 : f32 to vector<16x16xf32>
    %310 = arith.mulf %309, %308 : vector<16x16xf32>
    %311 = arith.addf %306, %310 : vector<16x16xf32>
    %c31 = arith.constant 31 : index
    %312 = memref.load %arg2[%c31] : memref<98xf32, #tpu.memory_space<smem>>
    %313 = vector.extract_strided_slice %296 {offsets = [0, 3], sizes = [16, 16], strides = [1, 1]} : vector<16x22xf32> to vector<16x16xf32>
    %314 = vector.broadcast %312 : f32 to vector<16x16xf32>
    %315 = arith.mulf %314, %313 : vector<16x16xf32>
    %316 = arith.addf %311, %315 : vector<16x16xf32>
    %c32 = arith.constant 32 : index
    %317 = memref.load %arg2[%c32] : memref<98xf32, #tpu.memory_space<smem>>
    %318 = vector.extract_strided_slice %296 {offsets = [0, 4], sizes = [16, 16], strides = [1, 1]} : vector<16x22xf32> to vector<16x16xf32>
    %319 = vector.broadcast %317 : f32 to vector<16x16xf32>
    %320 = arith.mulf %319, %318 : vector<16x16xf32>
    %321 = arith.addf %316, %320 : vector<16x16xf32>
    %c33 = arith.constant 33 : index
    %322 = memref.load %arg2[%c33] : memref<98xf32, #tpu.memory_space<smem>>
    %323 = vector.extract_strided_slice %296 {offsets = [0, 5], sizes = [16, 16], strides = [1, 1]} : vector<16x22xf32> to vector<16x16xf32>
    %324 = vector.broadcast %322 : f32 to vector<16x16xf32>
    %325 = arith.mulf %324, %323 : vector<16x16xf32>
    %326 = arith.addf %321, %325 : vector<16x16xf32>
    %c34 = arith.constant 34 : index
    %327 = memref.load %arg2[%c34] : memref<98xf32, #tpu.memory_space<smem>>
    %328 = vector.extract_strided_slice %296 {offsets = [0, 6], sizes = [16, 16], strides = [1, 1]} : vector<16x22xf32> to vector<16x16xf32>
    %329 = vector.broadcast %327 : f32 to vector<16x16xf32>
    %330 = arith.mulf %329, %328 : vector<16x16xf32>
    %331 = arith.addf %326, %330 : vector<16x16xf32>
    %332 = vector.extract_strided_slice %151 {offsets = [5, 0], sizes = [16, 22], strides = [1, 1]} : vector<22x22xf32> to vector<16x22xf32>
    %c35 = arith.constant 35 : index
    %333 = memref.load %arg2[%c35] : memref<98xf32, #tpu.memory_space<smem>>
    %334 = vector.extract_strided_slice %332 {offsets = [0, 0], sizes = [16, 16], strides = [1, 1]} : vector<16x22xf32> to vector<16x16xf32>
    %335 = vector.broadcast %333 : f32 to vector<16x16xf32>
    %336 = arith.mulf %335, %334 : vector<16x16xf32>
    %337 = arith.addf %331, %336 : vector<16x16xf32>
    %c36 = arith.constant 36 : index
    %338 = memref.load %arg2[%c36] : memref<98xf32, #tpu.memory_space<smem>>
    %339 = vector.extract_strided_slice %332 {offsets = [0, 1], sizes = [16, 16], strides = [1, 1]} : vector<16x22xf32> to vector<16x16xf32>
    %340 = vector.broadcast %338 : f32 to vector<16x16xf32>
    %341 = arith.mulf %340, %339 : vector<16x16xf32>
    %342 = arith.addf %337, %341 : vector<16x16xf32>
    %c37 = arith.constant 37 : index
    %343 = memref.load %arg2[%c37] : memref<98xf32, #tpu.memory_space<smem>>
    %344 = vector.extract_strided_slice %332 {offsets = [0, 2], sizes = [16, 16], strides = [1, 1]} : vector<16x22xf32> to vector<16x16xf32>
    %345 = vector.broadcast %343 : f32 to vector<16x16xf32>
    %346 = arith.mulf %345, %344 : vector<16x16xf32>
    %347 = arith.addf %342, %346 : vector<16x16xf32>
    %c38 = arith.constant 38 : index
    %348 = memref.load %arg2[%c38] : memref<98xf32, #tpu.memory_space<smem>>
    %349 = vector.extract_strided_slice %332 {offsets = [0, 3], sizes = [16, 16], strides = [1, 1]} : vector<16x22xf32> to vector<16x16xf32>
    %350 = vector.broadcast %348 : f32 to vector<16x16xf32>
    %351 = arith.mulf %350, %349 : vector<16x16xf32>
    %352 = arith.addf %347, %351 : vector<16x16xf32>
    %c39 = arith.constant 39 : index
    %353 = memref.load %arg2[%c39] : memref<98xf32, #tpu.memory_space<smem>>
    %354 = vector.extract_strided_slice %332 {offsets = [0, 4], sizes = [16, 16], strides = [1, 1]} : vector<16x22xf32> to vector<16x16xf32>
    %355 = vector.broadcast %353 : f32 to vector<16x16xf32>
    %356 = arith.mulf %355, %354 : vector<16x16xf32>
    %357 = arith.addf %352, %356 : vector<16x16xf32>
    %c40 = arith.constant 40 : index
    %358 = memref.load %arg2[%c40] : memref<98xf32, #tpu.memory_space<smem>>
    %359 = vector.extract_strided_slice %332 {offsets = [0, 5], sizes = [16, 16], strides = [1, 1]} : vector<16x22xf32> to vector<16x16xf32>
    %360 = vector.broadcast %358 : f32 to vector<16x16xf32>
    %361 = arith.mulf %360, %359 : vector<16x16xf32>
    %362 = arith.addf %357, %361 : vector<16x16xf32>
    %c41 = arith.constant 41 : index
    %363 = memref.load %arg2[%c41] : memref<98xf32, #tpu.memory_space<smem>>
    %364 = vector.extract_strided_slice %332 {offsets = [0, 6], sizes = [16, 16], strides = [1, 1]} : vector<16x22xf32> to vector<16x16xf32>
    %365 = vector.broadcast %363 : f32 to vector<16x16xf32>
    %366 = arith.mulf %365, %364 : vector<16x16xf32>
    %367 = arith.addf %362, %366 : vector<16x16xf32>
    %368 = vector.extract_strided_slice %151 {offsets = [6, 0], sizes = [16, 22], strides = [1, 1]} : vector<22x22xf32> to vector<16x22xf32>
    %c42 = arith.constant 42 : index
    %369 = memref.load %arg2[%c42] : memref<98xf32, #tpu.memory_space<smem>>
    %370 = vector.extract_strided_slice %368 {offsets = [0, 0], sizes = [16, 16], strides = [1, 1]} : vector<16x22xf32> to vector<16x16xf32>
    %371 = vector.broadcast %369 : f32 to vector<16x16xf32>
    %372 = arith.mulf %371, %370 : vector<16x16xf32>
    %373 = arith.addf %367, %372 : vector<16x16xf32>
    %c43 = arith.constant 43 : index
    %374 = memref.load %arg2[%c43] : memref<98xf32, #tpu.memory_space<smem>>
    %375 = vector.extract_strided_slice %368 {offsets = [0, 1], sizes = [16, 16], strides = [1, 1]} : vector<16x22xf32> to vector<16x16xf32>
    %376 = vector.broadcast %374 : f32 to vector<16x16xf32>
    %377 = arith.mulf %376, %375 : vector<16x16xf32>
    %378 = arith.addf %373, %377 : vector<16x16xf32>
    %c44 = arith.constant 44 : index
    %379 = memref.load %arg2[%c44] : memref<98xf32, #tpu.memory_space<smem>>
    %380 = vector.extract_strided_slice %368 {offsets = [0, 2], sizes = [16, 16], strides = [1, 1]} : vector<16x22xf32> to vector<16x16xf32>
    %381 = vector.broadcast %379 : f32 to vector<16x16xf32>
    %382 = arith.mulf %381, %380 : vector<16x16xf32>
    %383 = arith.addf %378, %382 : vector<16x16xf32>
    %c45 = arith.constant 45 : index
    %384 = memref.load %arg2[%c45] : memref<98xf32, #tpu.memory_space<smem>>
    %385 = vector.extract_strided_slice %368 {offsets = [0, 3], sizes = [16, 16], strides = [1, 1]} : vector<16x22xf32> to vector<16x16xf32>
    %386 = vector.broadcast %384 : f32 to vector<16x16xf32>
    %387 = arith.mulf %386, %385 : vector<16x16xf32>
    %388 = arith.addf %383, %387 : vector<16x16xf32>
    %c46 = arith.constant 46 : index
    %389 = memref.load %arg2[%c46] : memref<98xf32, #tpu.memory_space<smem>>
    %390 = vector.extract_strided_slice %368 {offsets = [0, 4], sizes = [16, 16], strides = [1, 1]} : vector<16x22xf32> to vector<16x16xf32>
    %391 = vector.broadcast %389 : f32 to vector<16x16xf32>
    %392 = arith.mulf %391, %390 : vector<16x16xf32>
    %393 = arith.addf %388, %392 : vector<16x16xf32>
    %c47 = arith.constant 47 : index
    %394 = memref.load %arg2[%c47] : memref<98xf32, #tpu.memory_space<smem>>
    %395 = vector.extract_strided_slice %368 {offsets = [0, 5], sizes = [16, 16], strides = [1, 1]} : vector<16x22xf32> to vector<16x16xf32>
    %396 = vector.broadcast %394 : f32 to vector<16x16xf32>
    %397 = arith.mulf %396, %395 : vector<16x16xf32>
    %398 = arith.addf %393, %397 : vector<16x16xf32>
    %c48 = arith.constant 48 : index
    %399 = memref.load %arg2[%c48] : memref<98xf32, #tpu.memory_space<smem>>
    %400 = vector.extract_strided_slice %368 {offsets = [0, 6], sizes = [16, 16], strides = [1, 1]} : vector<16x22xf32> to vector<16x16xf32>
    %401 = vector.broadcast %399 : f32 to vector<16x16xf32>
    %402 = arith.mulf %401, %400 : vector<16x16xf32>
    %403 = arith.addf %398, %402 : vector<16x16xf32>
    %c1_120 = arith.constant 1 : index
    %c0_121 = arith.constant 0 : index
    %c0_122 = arith.constant 0 : index
    %404 = vector.load %arg5[%c1_120, %c0_121, %c0_122] : memref<2x22x22xf32, #tpu.memory_space<vmem>>, vector<1x22x22xf32>
    %405 = vector.shape_cast %404 : vector<1x22x22xf32> to vector<22x22xf32>
    %406 = vector.extract_strided_slice %405 {offsets = [0, 0], sizes = [16, 22], strides = [1, 1]} : vector<22x22xf32> to vector<16x22xf32>
    %c49 = arith.constant 49 : index
    %407 = memref.load %arg2[%c49] : memref<98xf32, #tpu.memory_space<smem>>
    %408 = vector.extract_strided_slice %406 {offsets = [0, 0], sizes = [16, 16], strides = [1, 1]} : vector<16x22xf32> to vector<16x16xf32>
    %409 = vector.broadcast %407 : f32 to vector<16x16xf32>
    %410 = arith.mulf %409, %408 : vector<16x16xf32>
    %411 = arith.addf %403, %410 : vector<16x16xf32>
    %c50 = arith.constant 50 : index
    %412 = memref.load %arg2[%c50] : memref<98xf32, #tpu.memory_space<smem>>
    %413 = vector.extract_strided_slice %406 {offsets = [0, 1], sizes = [16, 16], strides = [1, 1]} : vector<16x22xf32> to vector<16x16xf32>
    %414 = vector.broadcast %412 : f32 to vector<16x16xf32>
    %415 = arith.mulf %414, %413 : vector<16x16xf32>
    %416 = arith.addf %411, %415 : vector<16x16xf32>
    %c51 = arith.constant 51 : index
    %417 = memref.load %arg2[%c51] : memref<98xf32, #tpu.memory_space<smem>>
    %418 = vector.extract_strided_slice %406 {offsets = [0, 2], sizes = [16, 16], strides = [1, 1]} : vector<16x22xf32> to vector<16x16xf32>
    %419 = vector.broadcast %417 : f32 to vector<16x16xf32>
    %420 = arith.mulf %419, %418 : vector<16x16xf32>
    %421 = arith.addf %416, %420 : vector<16x16xf32>
    %c52 = arith.constant 52 : index
    %422 = memref.load %arg2[%c52] : memref<98xf32, #tpu.memory_space<smem>>
    %423 = vector.extract_strided_slice %406 {offsets = [0, 3], sizes = [16, 16], strides = [1, 1]} : vector<16x22xf32> to vector<16x16xf32>
    %424 = vector.broadcast %422 : f32 to vector<16x16xf32>
    %425 = arith.mulf %424, %423 : vector<16x16xf32>
    %426 = arith.addf %421, %425 : vector<16x16xf32>
    %c53 = arith.constant 53 : index
    %427 = memref.load %arg2[%c53] : memref<98xf32, #tpu.memory_space<smem>>
    %428 = vector.extract_strided_slice %406 {offsets = [0, 4], sizes = [16, 16], strides = [1, 1]} : vector<16x22xf32> to vector<16x16xf32>
    %429 = vector.broadcast %427 : f32 to vector<16x16xf32>
    %430 = arith.mulf %429, %428 : vector<16x16xf32>
    %431 = arith.addf %426, %430 : vector<16x16xf32>
    %c54 = arith.constant 54 : index
    %432 = memref.load %arg2[%c54] : memref<98xf32, #tpu.memory_space<smem>>
    %433 = vector.extract_strided_slice %406 {offsets = [0, 5], sizes = [16, 16], strides = [1, 1]} : vector<16x22xf32> to vector<16x16xf32>
    %434 = vector.broadcast %432 : f32 to vector<16x16xf32>
    %435 = arith.mulf %434, %433 : vector<16x16xf32>
    %436 = arith.addf %431, %435 : vector<16x16xf32>
    %c55 = arith.constant 55 : index
    %437 = memref.load %arg2[%c55] : memref<98xf32, #tpu.memory_space<smem>>
    %438 = vector.extract_strided_slice %406 {offsets = [0, 6], sizes = [16, 16], strides = [1, 1]} : vector<16x22xf32> to vector<16x16xf32>
    %439 = vector.broadcast %437 : f32 to vector<16x16xf32>
    %440 = arith.mulf %439, %438 : vector<16x16xf32>
    %441 = arith.addf %436, %440 : vector<16x16xf32>
    %442 = vector.extract_strided_slice %405 {offsets = [1, 0], sizes = [16, 22], strides = [1, 1]} : vector<22x22xf32> to vector<16x22xf32>
    %c56 = arith.constant 56 : index
    %443 = memref.load %arg2[%c56] : memref<98xf32, #tpu.memory_space<smem>>
    %444 = vector.extract_strided_slice %442 {offsets = [0, 0], sizes = [16, 16], strides = [1, 1]} : vector<16x22xf32> to vector<16x16xf32>
    %445 = vector.broadcast %443 : f32 to vector<16x16xf32>
    %446 = arith.mulf %445, %444 : vector<16x16xf32>
    %447 = arith.addf %441, %446 : vector<16x16xf32>
    %c57 = arith.constant 57 : index
    %448 = memref.load %arg2[%c57] : memref<98xf32, #tpu.memory_space<smem>>
    %449 = vector.extract_strided_slice %442 {offsets = [0, 1], sizes = [16, 16], strides = [1, 1]} : vector<16x22xf32> to vector<16x16xf32>
    %450 = vector.broadcast %448 : f32 to vector<16x16xf32>
    %451 = arith.mulf %450, %449 : vector<16x16xf32>
    %452 = arith.addf %447, %451 : vector<16x16xf32>
    %c58 = arith.constant 58 : index
    %453 = memref.load %arg2[%c58] : memref<98xf32, #tpu.memory_space<smem>>
    %454 = vector.extract_strided_slice %442 {offsets = [0, 2], sizes = [16, 16], strides = [1, 1]} : vector<16x22xf32> to vector<16x16xf32>
    %455 = vector.broadcast %453 : f32 to vector<16x16xf32>
    %456 = arith.mulf %455, %454 : vector<16x16xf32>
    %457 = arith.addf %452, %456 : vector<16x16xf32>
    %c59 = arith.constant 59 : index
    %458 = memref.load %arg2[%c59] : memref<98xf32, #tpu.memory_space<smem>>
    %459 = vector.extract_strided_slice %442 {offsets = [0, 3], sizes = [16, 16], strides = [1, 1]} : vector<16x22xf32> to vector<16x16xf32>
    %460 = vector.broadcast %458 : f32 to vector<16x16xf32>
    %461 = arith.mulf %460, %459 : vector<16x16xf32>
    %462 = arith.addf %457, %461 : vector<16x16xf32>
    %c60 = arith.constant 60 : index
    %463 = memref.load %arg2[%c60] : memref<98xf32, #tpu.memory_space<smem>>
    %464 = vector.extract_strided_slice %442 {offsets = [0, 4], sizes = [16, 16], strides = [1, 1]} : vector<16x22xf32> to vector<16x16xf32>
    %465 = vector.broadcast %463 : f32 to vector<16x16xf32>
    %466 = arith.mulf %465, %464 : vector<16x16xf32>
    %467 = arith.addf %462, %466 : vector<16x16xf32>
    %c61 = arith.constant 61 : index
    %468 = memref.load %arg2[%c61] : memref<98xf32, #tpu.memory_space<smem>>
    %469 = vector.extract_strided_slice %442 {offsets = [0, 5], sizes = [16, 16], strides = [1, 1]} : vector<16x22xf32> to vector<16x16xf32>
    %470 = vector.broadcast %468 : f32 to vector<16x16xf32>
    %471 = arith.mulf %470, %469 : vector<16x16xf32>
    %472 = arith.addf %467, %471 : vector<16x16xf32>
    %c62 = arith.constant 62 : index
    %473 = memref.load %arg2[%c62] : memref<98xf32, #tpu.memory_space<smem>>
    %474 = vector.extract_strided_slice %442 {offsets = [0, 6], sizes = [16, 16], strides = [1, 1]} : vector<16x22xf32> to vector<16x16xf32>
    %475 = vector.broadcast %473 : f32 to vector<16x16xf32>
    %476 = arith.mulf %475, %474 : vector<16x16xf32>
    %477 = arith.addf %472, %476 : vector<16x16xf32>
    %478 = vector.extract_strided_slice %405 {offsets = [2, 0], sizes = [16, 22], strides = [1, 1]} : vector<22x22xf32> to vector<16x22xf32>
    %c63 = arith.constant 63 : index
    %479 = memref.load %arg2[%c63] : memref<98xf32, #tpu.memory_space<smem>>
    %480 = vector.extract_strided_slice %478 {offsets = [0, 0], sizes = [16, 16], strides = [1, 1]} : vector<16x22xf32> to vector<16x16xf32>
    %481 = vector.broadcast %479 : f32 to vector<16x16xf32>
    %482 = arith.mulf %481, %480 : vector<16x16xf32>
    %483 = arith.addf %477, %482 : vector<16x16xf32>
    %c64 = arith.constant 64 : index
    %484 = memref.load %arg2[%c64] : memref<98xf32, #tpu.memory_space<smem>>
    %485 = vector.extract_strided_slice %478 {offsets = [0, 1], sizes = [16, 16], strides = [1, 1]} : vector<16x22xf32> to vector<16x16xf32>
    %486 = vector.broadcast %484 : f32 to vector<16x16xf32>
    %487 = arith.mulf %486, %485 : vector<16x16xf32>
    %488 = arith.addf %483, %487 : vector<16x16xf32>
    %c65 = arith.constant 65 : index
    %489 = memref.load %arg2[%c65] : memref<98xf32, #tpu.memory_space<smem>>
    %490 = vector.extract_strided_slice %478 {offsets = [0, 2], sizes = [16, 16], strides = [1, 1]} : vector<16x22xf32> to vector<16x16xf32>
    %491 = vector.broadcast %489 : f32 to vector<16x16xf32>
    %492 = arith.mulf %491, %490 : vector<16x16xf32>
    %493 = arith.addf %488, %492 : vector<16x16xf32>
    %c66 = arith.constant 66 : index
    %494 = memref.load %arg2[%c66] : memref<98xf32, #tpu.memory_space<smem>>
    %495 = vector.extract_strided_slice %478 {offsets = [0, 3], sizes = [16, 16], strides = [1, 1]} : vector<16x22xf32> to vector<16x16xf32>
    %496 = vector.broadcast %494 : f32 to vector<16x16xf32>
    %497 = arith.mulf %496, %495 : vector<16x16xf32>
    %498 = arith.addf %493, %497 : vector<16x16xf32>
    %c67 = arith.constant 67 : index
    %499 = memref.load %arg2[%c67] : memref<98xf32, #tpu.memory_space<smem>>
    %500 = vector.extract_strided_slice %478 {offsets = [0, 4], sizes = [16, 16], strides = [1, 1]} : vector<16x22xf32> to vector<16x16xf32>
    %501 = vector.broadcast %499 : f32 to vector<16x16xf32>
    %502 = arith.mulf %501, %500 : vector<16x16xf32>
    %503 = arith.addf %498, %502 : vector<16x16xf32>
    %c68 = arith.constant 68 : index
    %504 = memref.load %arg2[%c68] : memref<98xf32, #tpu.memory_space<smem>>
    %505 = vector.extract_strided_slice %478 {offsets = [0, 5], sizes = [16, 16], strides = [1, 1]} : vector<16x22xf32> to vector<16x16xf32>
    %506 = vector.broadcast %504 : f32 to vector<16x16xf32>
    %507 = arith.mulf %506, %505 : vector<16x16xf32>
    %508 = arith.addf %503, %507 : vector<16x16xf32>
    %c69 = arith.constant 69 : index
    %509 = memref.load %arg2[%c69] : memref<98xf32, #tpu.memory_space<smem>>
    %510 = vector.extract_strided_slice %478 {offsets = [0, 6], sizes = [16, 16], strides = [1, 1]} : vector<16x22xf32> to vector<16x16xf32>
    %511 = vector.broadcast %509 : f32 to vector<16x16xf32>
    %512 = arith.mulf %511, %510 : vector<16x16xf32>
    %513 = arith.addf %508, %512 : vector<16x16xf32>
    %514 = vector.extract_strided_slice %405 {offsets = [3, 0], sizes = [16, 22], strides = [1, 1]} : vector<22x22xf32> to vector<16x22xf32>
    %c70 = arith.constant 70 : index
    %515 = memref.load %arg2[%c70] : memref<98xf32, #tpu.memory_space<smem>>
    %516 = vector.extract_strided_slice %514 {offsets = [0, 0], sizes = [16, 16], strides = [1, 1]} : vector<16x22xf32> to vector<16x16xf32>
    %517 = vector.broadcast %515 : f32 to vector<16x16xf32>
    %518 = arith.mulf %517, %516 : vector<16x16xf32>
    %519 = arith.addf %513, %518 : vector<16x16xf32>
    %c71 = arith.constant 71 : index
    %520 = memref.load %arg2[%c71] : memref<98xf32, #tpu.memory_space<smem>>
    %521 = vector.extract_strided_slice %514 {offsets = [0, 1], sizes = [16, 16], strides = [1, 1]} : vector<16x22xf32> to vector<16x16xf32>
    %522 = vector.broadcast %520 : f32 to vector<16x16xf32>
    %523 = arith.mulf %522, %521 : vector<16x16xf32>
    %524 = arith.addf %519, %523 : vector<16x16xf32>
    %c72 = arith.constant 72 : index
    %525 = memref.load %arg2[%c72] : memref<98xf32, #tpu.memory_space<smem>>
    %526 = vector.extract_strided_slice %514 {offsets = [0, 2], sizes = [16, 16], strides = [1, 1]} : vector<16x22xf32> to vector<16x16xf32>
    %527 = vector.broadcast %525 : f32 to vector<16x16xf32>
    %528 = arith.mulf %527, %526 : vector<16x16xf32>
    %529 = arith.addf %524, %528 : vector<16x16xf32>
    %c73 = arith.constant 73 : index
    %530 = memref.load %arg2[%c73] : memref<98xf32, #tpu.memory_space<smem>>
    %531 = vector.extract_strided_slice %514 {offsets = [0, 3], sizes = [16, 16], strides = [1, 1]} : vector<16x22xf32> to vector<16x16xf32>
    %532 = vector.broadcast %530 : f32 to vector<16x16xf32>
    %533 = arith.mulf %532, %531 : vector<16x16xf32>
    %534 = arith.addf %529, %533 : vector<16x16xf32>
    %c74 = arith.constant 74 : index
    %535 = memref.load %arg2[%c74] : memref<98xf32, #tpu.memory_space<smem>>
    %536 = vector.extract_strided_slice %514 {offsets = [0, 4], sizes = [16, 16], strides = [1, 1]} : vector<16x22xf32> to vector<16x16xf32>
    %537 = vector.broadcast %535 : f32 to vector<16x16xf32>
    %538 = arith.mulf %537, %536 : vector<16x16xf32>
    %539 = arith.addf %534, %538 : vector<16x16xf32>
    %c75 = arith.constant 75 : index
    %540 = memref.load %arg2[%c75] : memref<98xf32, #tpu.memory_space<smem>>
    %541 = vector.extract_strided_slice %514 {offsets = [0, 5], sizes = [16, 16], strides = [1, 1]} : vector<16x22xf32> to vector<16x16xf32>
    %542 = vector.broadcast %540 : f32 to vector<16x16xf32>
    %543 = arith.mulf %542, %541 : vector<16x16xf32>
    %544 = arith.addf %539, %543 : vector<16x16xf32>
    %c76 = arith.constant 76 : index
    %545 = memref.load %arg2[%c76] : memref<98xf32, #tpu.memory_space<smem>>
    %546 = vector.extract_strided_slice %514 {offsets = [0, 6], sizes = [16, 16], strides = [1, 1]} : vector<16x22xf32> to vector<16x16xf32>
    %547 = vector.broadcast %545 : f32 to vector<16x16xf32>
    %548 = arith.mulf %547, %546 : vector<16x16xf32>
    %549 = arith.addf %544, %548 : vector<16x16xf32>
    %550 = vector.extract_strided_slice %405 {offsets = [4, 0], sizes = [16, 22], strides = [1, 1]} : vector<22x22xf32> to vector<16x22xf32>
    %c77 = arith.constant 77 : index
    %551 = memref.load %arg2[%c77] : memref<98xf32, #tpu.memory_space<smem>>
    %552 = vector.extract_strided_slice %550 {offsets = [0, 0], sizes = [16, 16], strides = [1, 1]} : vector<16x22xf32> to vector<16x16xf32>
    %553 = vector.broadcast %551 : f32 to vector<16x16xf32>
    %554 = arith.mulf %553, %552 : vector<16x16xf32>
    %555 = arith.addf %549, %554 : vector<16x16xf32>
    %c78 = arith.constant 78 : index
    %556 = memref.load %arg2[%c78] : memref<98xf32, #tpu.memory_space<smem>>
    %557 = vector.extract_strided_slice %550 {offsets = [0, 1], sizes = [16, 16], strides = [1, 1]} : vector<16x22xf32> to vector<16x16xf32>
    %558 = vector.broadcast %556 : f32 to vector<16x16xf32>
    %559 = arith.mulf %558, %557 : vector<16x16xf32>
    %560 = arith.addf %555, %559 : vector<16x16xf32>
    %c79 = arith.constant 79 : index
    %561 = memref.load %arg2[%c79] : memref<98xf32, #tpu.memory_space<smem>>
    %562 = vector.extract_strided_slice %550 {offsets = [0, 2], sizes = [16, 16], strides = [1, 1]} : vector<16x22xf32> to vector<16x16xf32>
    %563 = vector.broadcast %561 : f32 to vector<16x16xf32>
    %564 = arith.mulf %563, %562 : vector<16x16xf32>
    %565 = arith.addf %560, %564 : vector<16x16xf32>
    %c80 = arith.constant 80 : index
    %566 = memref.load %arg2[%c80] : memref<98xf32, #tpu.memory_space<smem>>
    %567 = vector.extract_strided_slice %550 {offsets = [0, 3], sizes = [16, 16], strides = [1, 1]} : vector<16x22xf32> to vector<16x16xf32>
    %568 = vector.broadcast %566 : f32 to vector<16x16xf32>
    %569 = arith.mulf %568, %567 : vector<16x16xf32>
    %570 = arith.addf %565, %569 : vector<16x16xf32>
    %c81 = arith.constant 81 : index
    %571 = memref.load %arg2[%c81] : memref<98xf32, #tpu.memory_space<smem>>
    %572 = vector.extract_strided_slice %550 {offsets = [0, 4], sizes = [16, 16], strides = [1, 1]} : vector<16x22xf32> to vector<16x16xf32>
    %573 = vector.broadcast %571 : f32 to vector<16x16xf32>
    %574 = arith.mulf %573, %572 : vector<16x16xf32>
    %575 = arith.addf %570, %574 : vector<16x16xf32>
    %c82 = arith.constant 82 : index
    %576 = memref.load %arg2[%c82] : memref<98xf32, #tpu.memory_space<smem>>
    %577 = vector.extract_strided_slice %550 {offsets = [0, 5], sizes = [16, 16], strides = [1, 1]} : vector<16x22xf32> to vector<16x16xf32>
    %578 = vector.broadcast %576 : f32 to vector<16x16xf32>
    %579 = arith.mulf %578, %577 : vector<16x16xf32>
    %580 = arith.addf %575, %579 : vector<16x16xf32>
    %c83 = arith.constant 83 : index
    %581 = memref.load %arg2[%c83] : memref<98xf32, #tpu.memory_space<smem>>
    %582 = vector.extract_strided_slice %550 {offsets = [0, 6], sizes = [16, 16], strides = [1, 1]} : vector<16x22xf32> to vector<16x16xf32>
    %583 = vector.broadcast %581 : f32 to vector<16x16xf32>
    %584 = arith.mulf %583, %582 : vector<16x16xf32>
    %585 = arith.addf %580, %584 : vector<16x16xf32>
    %586 = vector.extract_strided_slice %405 {offsets = [5, 0], sizes = [16, 22], strides = [1, 1]} : vector<22x22xf32> to vector<16x22xf32>
    %c84 = arith.constant 84 : index
    %587 = memref.load %arg2[%c84] : memref<98xf32, #tpu.memory_space<smem>>
    %588 = vector.extract_strided_slice %586 {offsets = [0, 0], sizes = [16, 16], strides = [1, 1]} : vector<16x22xf32> to vector<16x16xf32>
    %589 = vector.broadcast %587 : f32 to vector<16x16xf32>
    %590 = arith.mulf %589, %588 : vector<16x16xf32>
    %591 = arith.addf %585, %590 : vector<16x16xf32>
    %c85 = arith.constant 85 : index
    %592 = memref.load %arg2[%c85] : memref<98xf32, #tpu.memory_space<smem>>
    %593 = vector.extract_strided_slice %586 {offsets = [0, 1], sizes = [16, 16], strides = [1, 1]} : vector<16x22xf32> to vector<16x16xf32>
    %594 = vector.broadcast %592 : f32 to vector<16x16xf32>
    %595 = arith.mulf %594, %593 : vector<16x16xf32>
    %596 = arith.addf %591, %595 : vector<16x16xf32>
    %c86 = arith.constant 86 : index
    %597 = memref.load %arg2[%c86] : memref<98xf32, #tpu.memory_space<smem>>
    %598 = vector.extract_strided_slice %586 {offsets = [0, 2], sizes = [16, 16], strides = [1, 1]} : vector<16x22xf32> to vector<16x16xf32>
    %599 = vector.broadcast %597 : f32 to vector<16x16xf32>
    %600 = arith.mulf %599, %598 : vector<16x16xf32>
    %601 = arith.addf %596, %600 : vector<16x16xf32>
    %c87 = arith.constant 87 : index
    %602 = memref.load %arg2[%c87] : memref<98xf32, #tpu.memory_space<smem>>
    %603 = vector.extract_strided_slice %586 {offsets = [0, 3], sizes = [16, 16], strides = [1, 1]} : vector<16x22xf32> to vector<16x16xf32>
    %604 = vector.broadcast %602 : f32 to vector<16x16xf32>
    %605 = arith.mulf %604, %603 : vector<16x16xf32>
    %606 = arith.addf %601, %605 : vector<16x16xf32>
    %c88 = arith.constant 88 : index
    %607 = memref.load %arg2[%c88] : memref<98xf32, #tpu.memory_space<smem>>
    %608 = vector.extract_strided_slice %586 {offsets = [0, 4], sizes = [16, 16], strides = [1, 1]} : vector<16x22xf32> to vector<16x16xf32>
    %609 = vector.broadcast %607 : f32 to vector<16x16xf32>
    %610 = arith.mulf %609, %608 : vector<16x16xf32>
    %611 = arith.addf %606, %610 : vector<16x16xf32>
    %c89 = arith.constant 89 : index
    %612 = memref.load %arg2[%c89] : memref<98xf32, #tpu.memory_space<smem>>
    %613 = vector.extract_strided_slice %586 {offsets = [0, 5], sizes = [16, 16], strides = [1, 1]} : vector<16x22xf32> to vector<16x16xf32>
    %614 = vector.broadcast %612 : f32 to vector<16x16xf32>
    %615 = arith.mulf %614, %613 : vector<16x16xf32>
    %616 = arith.addf %611, %615 : vector<16x16xf32>
    %c90 = arith.constant 90 : index
    %617 = memref.load %arg2[%c90] : memref<98xf32, #tpu.memory_space<smem>>
    %618 = vector.extract_strided_slice %586 {offsets = [0, 6], sizes = [16, 16], strides = [1, 1]} : vector<16x22xf32> to vector<16x16xf32>
    %619 = vector.broadcast %617 : f32 to vector<16x16xf32>
    %620 = arith.mulf %619, %618 : vector<16x16xf32>
    %621 = arith.addf %616, %620 : vector<16x16xf32>
    %622 = vector.extract_strided_slice %405 {offsets = [6, 0], sizes = [16, 22], strides = [1, 1]} : vector<22x22xf32> to vector<16x22xf32>
    %c91 = arith.constant 91 : index
    %623 = memref.load %arg2[%c91] : memref<98xf32, #tpu.memory_space<smem>>
    %624 = vector.extract_strided_slice %622 {offsets = [0, 0], sizes = [16, 16], strides = [1, 1]} : vector<16x22xf32> to vector<16x16xf32>
    %625 = vector.broadcast %623 : f32 to vector<16x16xf32>
    %626 = arith.mulf %625, %624 : vector<16x16xf32>
    %627 = arith.addf %621, %626 : vector<16x16xf32>
    %c92 = arith.constant 92 : index
    %628 = memref.load %arg2[%c92] : memref<98xf32, #tpu.memory_space<smem>>
    %629 = vector.extract_strided_slice %622 {offsets = [0, 1], sizes = [16, 16], strides = [1, 1]} : vector<16x22xf32> to vector<16x16xf32>
    %630 = vector.broadcast %628 : f32 to vector<16x16xf32>
    %631 = arith.mulf %630, %629 : vector<16x16xf32>
    %632 = arith.addf %627, %631 : vector<16x16xf32>
    %c93 = arith.constant 93 : index
    %633 = memref.load %arg2[%c93] : memref<98xf32, #tpu.memory_space<smem>>
    %634 = vector.extract_strided_slice %622 {offsets = [0, 2], sizes = [16, 16], strides = [1, 1]} : vector<16x22xf32> to vector<16x16xf32>
    %635 = vector.broadcast %633 : f32 to vector<16x16xf32>
    %636 = arith.mulf %635, %634 : vector<16x16xf32>
    %637 = arith.addf %632, %636 : vector<16x16xf32>
    %c94 = arith.constant 94 : index
    %638 = memref.load %arg2[%c94] : memref<98xf32, #tpu.memory_space<smem>>
    %639 = vector.extract_strided_slice %622 {offsets = [0, 3], sizes = [16, 16], strides = [1, 1]} : vector<16x22xf32> to vector<16x16xf32>
    %640 = vector.broadcast %638 : f32 to vector<16x16xf32>
    %641 = arith.mulf %640, %639 : vector<16x16xf32>
    %642 = arith.addf %637, %641 : vector<16x16xf32>
    %c95 = arith.constant 95 : index
    %643 = memref.load %arg2[%c95] : memref<98xf32, #tpu.memory_space<smem>>
    %644 = vector.extract_strided_slice %622 {offsets = [0, 4], sizes = [16, 16], strides = [1, 1]} : vector<16x22xf32> to vector<16x16xf32>
    %645 = vector.broadcast %643 : f32 to vector<16x16xf32>
    %646 = arith.mulf %645, %644 : vector<16x16xf32>
    %647 = arith.addf %642, %646 : vector<16x16xf32>
    %c96 = arith.constant 96 : index
    %648 = memref.load %arg2[%c96] : memref<98xf32, #tpu.memory_space<smem>>
    %649 = vector.extract_strided_slice %622 {offsets = [0, 5], sizes = [16, 16], strides = [1, 1]} : vector<16x22xf32> to vector<16x16xf32>
    %650 = vector.broadcast %648 : f32 to vector<16x16xf32>
    %651 = arith.mulf %650, %649 : vector<16x16xf32>
    %652 = arith.addf %647, %651 : vector<16x16xf32>
    %c97 = arith.constant 97 : index
    %653 = memref.load %arg2[%c97] : memref<98xf32, #tpu.memory_space<smem>>
    %654 = vector.extract_strided_slice %622 {offsets = [0, 6], sizes = [16, 16], strides = [1, 1]} : vector<16x22xf32> to vector<16x16xf32>
    %655 = vector.broadcast %653 : f32 to vector<16x16xf32>
    %656 = arith.mulf %655, %654 : vector<16x16xf32>
    %657 = arith.addf %652, %656 : vector<16x16xf32>
    %c0_123 = arith.constant 0 : index
    %658 = memref.load %arg3[%c0_123] : memref<1xf32, #tpu.memory_space<smem>>
    %659 = vector.broadcast %658 : f32 to vector<16x16xf32>
    %660 = arith.addf %657, %659 : vector<16x16xf32>
    %cst_124 = arith.constant 0.000000e+00 : f32
    %661 = vector.broadcast %cst_124 : f32 to vector<16x16xf32>
    %662 = arith.subf %661, %660 : vector<16x16xf32>
    %663 = math.exp %662 : vector<16x16xf32>
    %cst_125 = arith.constant 1.000000e+00 : f32
    %664 = vector.broadcast %cst_125 : f32 to vector<16x16xf32>
    %665 = arith.addf %664, %663 : vector<16x16xf32>
    %666 = tpu.reciprocal %665 {approx = true} : vector<16x16xf32> -> vector<16x16xf32>
    %667 = arith.mulf %665, %666 : vector<16x16xf32>
    %cst_126 = arith.constant 2.000000e+00 : f32
    %668 = vector.broadcast %cst_126 : f32 to vector<16x16xf32>
    %669 = arith.subf %668, %667 : vector<16x16xf32>
    %670 = arith.mulf %666, %669 : vector<16x16xf32>
    %671 = vector.extract_strided_slice %670 {offsets = [0, 0], sizes = [1, 16], strides = [1, 1]} : vector<16x16xf32> to vector<1x16xf32>
    %c0_127 = arith.constant 0 : index
    %c0_128 = arith.constant 0 : index
    %672 = vector.load %arg6[%c0_127, %c0_128] : memref<1x256xf32, #tpu.memory_space<vmem>>, vector<1x16xf32>
    tpu.vector_store %arg6[%c0_127, %c0_128], %671 {strides = array<i32>} : memref<1x256xf32, #tpu.memory_space<vmem>>, vector<1x16xf32>,
    %673 = vector.extract_strided_slice %670 {offsets = [1, 0], sizes = [1, 16], strides = [1, 1]} : vector<16x16xf32> to vector<1x16xf32>
    %c0_129 = arith.constant 0 : index
    %c16_130 = arith.constant 16 : index
    %674 = vector.load %arg6[%c0_129, %c16_130] : memref<1x256xf32, #tpu.memory_space<vmem>>, vector<1x16xf32>
    tpu.vector_store %arg6[%c0_129, %c16_130], %673 {strides = array<i32>} : memref<1x256xf32, #tpu.memory_space<vmem>>, vector<1x16xf32>,
    %675 = vector.extract_strided_slice %670 {offsets = [2, 0], sizes = [1, 16], strides = [1, 1]} : vector<16x16xf32> to vector<1x16xf32>
    %c0_131 = arith.constant 0 : index
    %c32_132 = arith.constant 32 : index
    %676 = vector.load %arg6[%c0_131, %c32_132] : memref<1x256xf32, #tpu.memory_space<vmem>>, vector<1x16xf32>
    tpu.vector_store %arg6[%c0_131, %c32_132], %675 {strides = array<i32>} : memref<1x256xf32, #tpu.memory_space<vmem>>, vector<1x16xf32>,
    %677 = vector.extract_strided_slice %670 {offsets = [3, 0], sizes = [1, 16], strides = [1, 1]} : vector<16x16xf32> to vector<1x16xf32>
    %c0_133 = arith.constant 0 : index
    %c48_134 = arith.constant 48 : index
    %678 = vector.load %arg6[%c0_133, %c48_134] : memref<1x256xf32, #tpu.memory_space<vmem>>, vector<1x16xf32>
    tpu.vector_store %arg6[%c0_133, %c48_134], %677 {strides = array<i32>} : memref<1x256xf32, #tpu.memory_space<vmem>>, vector<1x16xf32>,
    %679 = vector.extract_strided_slice %670 {offsets = [4, 0], sizes = [1, 16], strides = [1, 1]} : vector<16x16xf32> to vector<1x16xf32>
    %c0_135 = arith.constant 0 : index
    %c64_136 = arith.constant 64 : index
    %680 = vector.load %arg6[%c0_135, %c64_136] : memref<1x256xf32, #tpu.memory_space<vmem>>, vector<1x16xf32>
    tpu.vector_store %arg6[%c0_135, %c64_136], %679 {strides = array<i32>} : memref<1x256xf32, #tpu.memory_space<vmem>>, vector<1x16xf32>,
    %681 = vector.extract_strided_slice %670 {offsets = [5, 0], sizes = [1, 16], strides = [1, 1]} : vector<16x16xf32> to vector<1x16xf32>
    %c0_137 = arith.constant 0 : index
    %c80_138 = arith.constant 80 : index
    %682 = vector.load %arg6[%c0_137, %c80_138] : memref<1x256xf32, #tpu.memory_space<vmem>>, vector<1x16xf32>
    tpu.vector_store %arg6[%c0_137, %c80_138], %681 {strides = array<i32>} : memref<1x256xf32, #tpu.memory_space<vmem>>, vector<1x16xf32>,
    %683 = vector.extract_strided_slice %670 {offsets = [6, 0], sizes = [1, 16], strides = [1, 1]} : vector<16x16xf32> to vector<1x16xf32>
    %c0_139 = arith.constant 0 : index
    %c96_140 = arith.constant 96 : index
    %684 = vector.load %arg6[%c0_139, %c96_140] : memref<1x256xf32, #tpu.memory_space<vmem>>, vector<1x16xf32>
    tpu.vector_store %arg6[%c0_139, %c96_140], %683 {strides = array<i32>} : memref<1x256xf32, #tpu.memory_space<vmem>>, vector<1x16xf32>,
    %685 = vector.extract_strided_slice %670 {offsets = [7, 0], sizes = [1, 16], strides = [1, 1]} : vector<16x16xf32> to vector<1x16xf32>
    %c0_141 = arith.constant 0 : index
    %c112 = arith.constant 112 : index
    %686 = vector.load %arg6[%c0_141, %c112] : memref<1x256xf32, #tpu.memory_space<vmem>>, vector<1x16xf32>
    tpu.vector_store %arg6[%c0_141, %c112], %685 {strides = array<i32>} : memref<1x256xf32, #tpu.memory_space<vmem>>, vector<1x16xf32>,
    %687 = vector.extract_strided_slice %670 {offsets = [8, 0], sizes = [1, 16], strides = [1, 1]} : vector<16x16xf32> to vector<1x16xf32>
    %c0_142 = arith.constant 0 : index
    %c128 = arith.constant 128 : index
    %688 = vector.load %arg6[%c0_142, %c128] : memref<1x256xf32, #tpu.memory_space<vmem>>, vector<1x16xf32>
    tpu.vector_store %arg6[%c0_142, %c128], %687 {strides = array<i32>} : memref<1x256xf32, #tpu.memory_space<vmem>>, vector<1x16xf32>,
    %689 = vector.extract_strided_slice %670 {offsets = [9, 0], sizes = [1, 16], strides = [1, 1]} : vector<16x16xf32> to vector<1x16xf32>
    %c0_143 = arith.constant 0 : index
    %c144 = arith.constant 144 : index
    %690 = vector.load %arg6[%c0_143, %c144] : memref<1x256xf32, #tpu.memory_space<vmem>>, vector<1x16xf32>
    tpu.vector_store %arg6[%c0_143, %c144], %689 {strides = array<i32>} : memref<1x256xf32, #tpu.memory_space<vmem>>, vector<1x16xf32>,
    %691 = vector.extract_strided_slice %670 {offsets = [10, 0], sizes = [1, 16], strides = [1, 1]} : vector<16x16xf32> to vector<1x16xf32>
    %c0_144 = arith.constant 0 : index
    %c160 = arith.constant 160 : index
    %692 = vector.load %arg6[%c0_144, %c160] : memref<1x256xf32, #tpu.memory_space<vmem>>, vector<1x16xf32>
    tpu.vector_store %arg6[%c0_144, %c160], %691 {strides = array<i32>} : memref<1x256xf32, #tpu.memory_space<vmem>>, vector<1x16xf32>,
    %693 = vector.extract_strided_slice %670 {offsets = [11, 0], sizes = [1, 16], strides = [1, 1]} : vector<16x16xf32> to vector<1x16xf32>
    %c0_145 = arith.constant 0 : index
    %c176 = arith.constant 176 : index
    %694 = vector.load %arg6[%c0_145, %c176] : memref<1x256xf32, #tpu.memory_space<vmem>>, vector<1x16xf32>
    tpu.vector_store %arg6[%c0_145, %c176], %693 {strides = array<i32>} : memref<1x256xf32, #tpu.memory_space<vmem>>, vector<1x16xf32>,
    %695 = vector.extract_strided_slice %670 {offsets = [12, 0], sizes = [1, 16], strides = [1, 1]} : vector<16x16xf32> to vector<1x16xf32>
    %c0_146 = arith.constant 0 : index
    %c192 = arith.constant 192 : index
    %696 = vector.load %arg6[%c0_146, %c192] : memref<1x256xf32, #tpu.memory_space<vmem>>, vector<1x16xf32>
    tpu.vector_store %arg6[%c0_146, %c192], %695 {strides = array<i32>} : memref<1x256xf32, #tpu.memory_space<vmem>>, vector<1x16xf32>,
    %697 = vector.extract_strided_slice %670 {offsets = [13, 0], sizes = [1, 16], strides = [1, 1]} : vector<16x16xf32> to vector<1x16xf32>
    %c0_147 = arith.constant 0 : index
    %c208 = arith.constant 208 : index
    %698 = vector.load %arg6[%c0_147, %c208] : memref<1x256xf32, #tpu.memory_space<vmem>>, vector<1x16xf32>
    tpu.vector_store %arg6[%c0_147, %c208], %697 {strides = array<i32>} : memref<1x256xf32, #tpu.memory_space<vmem>>, vector<1x16xf32>,
    %699 = vector.extract_strided_slice %670 {offsets = [14, 0], sizes = [1, 16], strides = [1, 1]} : vector<16x16xf32> to vector<1x16xf32>
    %c0_148 = arith.constant 0 : index
    %c224 = arith.constant 224 : index
    %700 = vector.load %arg6[%c0_148, %c224] : memref<1x256xf32, #tpu.memory_space<vmem>>, vector<1x16xf32>
    tpu.vector_store %arg6[%c0_148, %c224], %699 {strides = array<i32>} : memref<1x256xf32, #tpu.memory_space<vmem>>, vector<1x16xf32>,
    %701 = vector.extract_strided_slice %670 {offsets = [15, 0], sizes = [1, 16], strides = [1, 1]} : vector<16x16xf32> to vector<1x16xf32>
    %c0_149 = arith.constant 0 : index
    %c240 = arith.constant 240 : index
    %702 = vector.load %arg6[%c0_149, %c240] : memref<1x256xf32, #tpu.memory_space<vmem>>, vector<1x16xf32>
    tpu.vector_store %arg6[%c0_149, %c240], %701 {strides = array<i32>} : memref<1x256xf32, #tpu.memory_space<vmem>>, vector<1x16xf32>,
    %c0_150 = arith.constant 0 : index
    %c0_151 = arith.constant 0 : index
    %c0_152 = arith.constant 0 : index
    %703 = vector.load %arg1[%c0_150, %c0_151, %c0_152] : memref<1x4x256xf32, #tpu.memory_space<vmem>>, vector<1x4x256xf32>
    %704 = vector.shape_cast %703 : vector<1x4x256xf32> to vector<4x256xf32>
    %c0_153 = arith.constant 0 : index
    %c0_154 = arith.constant 0 : index
    %705 = vector.load %arg6[%c0_153, %c0_154] : memref<1x256xf32, #tpu.memory_space<vmem>>, vector<1x256xf32>
    %706 = vector.broadcast %705 : vector<1x256xf32> to vector<4x256xf32>
    %707 = arith.mulf %704, %706 : vector<4x256xf32>
    %c0_155 = arith.constant 0 : index
    %c0_156 = arith.constant 0 : index
    %c0_157 = arith.constant 0 : index
    %708 = vector.load %arg4[%c0_155, %c0_156, %c0_157] : memref<1x4x256xf32, #tpu.memory_space<vmem>>, vector<1x4x256xf32>
    %709 = vector.shape_cast %708 : vector<1x4x256xf32> to vector<4x256xf32>
    %710 = vector.shape_cast %707 : vector<4x256xf32> to vector<1x4x256xf32>
    tpu.vector_store %arg4[%c0_155, %c0_156, %c0_157], %710 {strides = array<i32>} : memref<1x4x256xf32, #tpu.memory_space<vmem>>, vector<1x4x256xf32>,
    return
  }
  func.func @transform_0(%arg0: i32) -> (i32, i32, i32) {
    %c0_i32 = arith.constant 0 : i32
    %c0_i32_0 = arith.constant 0 : i32
    %c0_i32_1 = arith.constant 0 : i32
    return %arg0, %c0_i32, %c0_i32_0 : i32, i32, i32
  }
  func.func @transform_1(%arg0: i32) -> i32 {
    %c0_i32 = arith.constant 0 : i32
    %c0_i32_0 = arith.constant 0 : i32
    return %c0_i32 : i32
  }
  func.func @transform_2(%arg0: i32) -> i32 {
    %c0_i32 = arith.constant 0 : i32
    %c0_i32_0 = arith.constant 0 : i32
    return %c0_i32 : i32
  }
  func.func @transform_3(%arg0: i32) -> (i32, i32, i32) {
    %c0_i32 = arith.constant 0 : i32
    %c0_i32_0 = arith.constant 0 : i32
    %c0_i32_1 = arith.constant 0 : i32
    return %arg0, %c0_i32, %c0_i32_0 : i32, i32, i32
  }
}

</mosaic_0001>

<bundles_post_ra>
// kernel: spatial_attention_forward.1
= control target key start
LH: loop header
LB: loop body
LE: loop exit
PB: predicated region body
PF: predicated region fallthrough
CT: control target
= control target key end

     0   :  { %s5094_s0 = inlined_call_operand.vmem [shape: f32[2,4,256], index: 0, kind: input, shape index: {}]   ;;  %s5095_s1 = inlined_call_operand.vmem [shape: f32[98], index: 1, kind: input, shape index: {}]   ;;  %s5096_s2 = inlined_call_operand.<no memory space> [shape: f32[1], index: 2, kind: input, shape index: {}]   ;;  %s5097_s3 = inlined_call_operand.vmem [shape: f32[2,4,256], index: 3, kind: output, shape index: {}]  }
   0x1   :  { %8 = sst [smem:[#allocation4]] %s5096_s2 }
   0x2   :  { %9 = vsyncpa [#allocation6], 0  ;;  %s2754_s14 = smov 0  }
   0x3 LB: > { %s2514_s15 = sadd.s32 4294967295, %s2706_s14   ;;  %p2516_p0 = scmp.ge.s32.totalorder %s2706_s14, 1  ;;  %s2706_s14 = sphi %s2754_s14, %s15_s14  }
   0x4   : > { %p114_p1 = scmp.lt.s32.totalorder %s2706_s14, 3  ;;  %s126_s18 = sshll.u32 %s5095_s1, 4  ;;  %s127_s18 = int_to_ptr.vmem [resolvable:$true] %s126_s18 }
   0x5   : > { %p2634_p3 = scmp.eq.s32.totalorder %s2514_s15, 0  ;;  %s2708_s2 = smov [#allocation5]  }
   0x6   : > { %p115_p2 = pnand %p2516_p0, %p114_p1 }
   0x8   : > { %p2630_p4 = pneg %p115_p2  ;;  %150 = sbr.rel (%p115_p2) target bundleno = 1039 (0x40f), region = 32 }
   0xa   : > { %p2631_p5 = pnand %p2634_p3, %p2630_p4 }
   0xc   : > { %2633 = dma.vmem_to_smem (!%p2631_p5), %s127_s18, 16, %s2708_s2, [#allocation6]  }
   0xd   : > { %2701 = dma.done.wait (%p2634_p3), [#allocation6], 16  }
   0xe   : > { %2703 = vsyncadd (%p2634_p3), [#allocation6], 4294967280 }
   0xf   : > { %157 = sfence }
  0x10   : > { %p176_p6 = scmp.lt.s32.totalorder %s2514_s15, 1  ;;  %vm5215_vm0 = vcmask 1043456   ;;  %s2709_s23 = smov 115   ;;  %vm239_vm1 = vcmask 23552   ;;  %vm244_vm2 = vcmask 179352   ;;  %v2717_v35 = vmov 0.0  }
  0x11   : > { %s2710_s24 = smov 3   ;;  %s2711_s25 = smov 99   ;;  %240 = vst.msk [vmem:[#allocation2 + $0x3] sm:$0xff] %vm239_vm1, %v2717_v35  ;;  %vm253_vm3 = vcmask 147480   ;;  %vm234_vm4 = vcmask 174080   ;;  %vm484_vm5 = vcmask 1046528  }
  0x12   : > { %s5602_s15 = smov (!%p176_p6, %s2514_s15), 1  ;;  %s2712_s26 = smov 51   ;;  %245 = vst.msk [vmem:[#allocation2 + $0x3] sm:$0xff] %vm244_vm2, %v2717_v35  ;;  %vm628_vm6 = vcmask 1045504   ;;  %vm1059_vm7 = vcmask 1042432   ;;  %vm772_vm8 = vcmask 1044480  }
  0x13   : > { %s5104_s19 = sshll.u32 %s5602_s15, 3  ;;  %s2713_s27 = smov 83   ;;  %241 = vst.msk [vmem:[#allocation2 + $0xb] sm:$0xff] %vm239_vm1, %v2717_v35  ;;  %vm1203_vm9 = vcmask 1041408  }
  0x14   : > { %s2773_s22 = scalar_lea.vmem %s5094_s0, %s5104_s19  ;;  %s2714_s28 = smov 67   ;;  %242 = vst.msk [vmem:[#allocation2 + $0x1b] sm:$0xff] %vm239_vm1, %v2717_v35 }
  0x15   : > { %v189_v0 = vld [vmem:[%s2773_s22] sm:$0xff]  ;;  %s2715_s29 = smov 35   ;;  %s2716_s30 = smov 19   ;;  %243 = vst.msk [vmem:[#allocation2 + $0x23] sm:$0xff] %vm239_vm1, %v2717_v35 }
  0x16   : > { %191 = vst [vmem:[#allocation1] ss:$2 sm:$0xff] %v189_v0  ;;  %s2818_s4 = sld [smem:[#allocation5 + $0x2]]  ;;  %s2718_s6 = smov 126  }
  0x17   : > { %246 = vst.msk [vmem:[#allocation2 + $0xb] sm:$0xff] %vm244_vm2, %v2717_v35  ;;  %s2820_s5 = sld [smem:[#allocation5 + $0x1]]  ;;  %s2719_s7 = smov 127  }
  0x18   : > { %247 = vst.msk [vmem:[#allocation2 + $0x1b] sm:$0xff] %vm244_vm2, %v2717_v35  ;;  %s2527_s8 = sld [smem:[#allocation5 + $0x3]]  ;;  %s2720_s11 = smov 125  }
  0x19   : > { %248 = vst.msk [vmem:[#allocation2 + $0x23] sm:$0xff] %vm244_vm2, %v2717_v35  ;;  %s2852_s9 = sld [smem:[#allocation5 + $0x5]]  ;;  %s5107_s17 = smov 123  }
  0x1a   : > { %235 = vst.msk [vmem:[#allocation2] sm:$0x7] %vm234_vm4, %v2717_v35  ;;  %s2854_s10 = sld [smem:[#allocation5 + $0x4]]  ;;  %s5105_s18 = smov 124  }
  0x1b   : > { %236 = vst.msk [vmem:[#allocation2 + $0x18] sm:$0x7] %vm234_vm4, %v2717_v35  ;;  %s2868_s12 = sld [smem:[#allocation5 + $0x6]]  ;;  %s2723_s20 = smov 122  }
  0x1c   : > { %237 = vst.msk [vmem:[#allocation2 + $0x13] sm:$0x7] %vm234_vm4, %v2717_v35  ;;  %v407_v45 = vstv %s2818_s4  ;;  %s2533_s13 = sld [smem:[#allocation5 + $0x9]] }
  0x1d   : > { %v192_v1 = vld.sshfl [vmem:[#allocation1] sm:$0xff pattern:$0x75316420]  ;;  %v193_v2 = vld.sshfl [vmem:[#allocation1 + $0x8] sm:$0xff pattern:$0x75316420]  ;;  %v393_v46 = vstv %s2820_s5 }
  0x1e   : > { %v197_v3 = vsel %vm5215_vm0, %v192_v1, 0.0  ;;  %213 = vst [vmem:[#allocation1] ss:$2 sm:$0xff] %v189_v0  ;;  %v204_v18 = vsel %vm5215_vm0, %v193_v2, 0.0  ;;  %s2532_s16 = sld [smem:[#allocation5 + $0x8]] }
  0x1f   : > { %v198_v4 = vrot.slane %v197_v3, 4  ;;  %v205_v20 = vrot.slane %v204_v18, 4  ;;  %238 = vst.msk [vmem:[#allocation2 + $0x2b] sm:$0x7] %vm234_vm4, %v2717_v35  ;;  %s2534_s2 = sld [smem:[#allocation5 + $0xa]] }
  0x20   : > { %s2536_s21 = sld [smem:[#allocation5 + $0xc]] }
  0x21   : > { %v199_v5 = vadd.f32 %v198_v4, %v197_v3  ;;  %v206_v22 = vadd.f32 %v205_v20, %v204_v18  ;;  %s2936_s4 = sld [smem:[#allocation5 + $0x12]] }
  0x22   : > { %s2961_s5 = sld [smem:[#allocation5]] }
  0x23   : > { %v200_v6 = vrot.slane %v199_v5, 2  ;;  %v207_v25 = vrot.slane %v206_v22, 2  ;;  %s3528_s19 = sld [smem:[#allocation5 + $0x5e]] }
  0x25   : > { %v201_v7 = vadd.f32 %v200_v6, %v199_v5  ;;  %v214_v8 = vld.sshfl [vmem:[#allocation1] sm:$0xff pattern:$0x75316420]  ;;  %v215_v21 = vld.sshfl [vmem:[#allocation1 + $0x8] sm:$0xff pattern:$0x75316420]  ;;  %v208_v27 = vadd.f32 %v207_v25, %v206_v22  ;;  %v516_v22 = vstv %s2533_s13  ;;  %v537_v35 = vstv %s2534_s2 }
  0x26   : > { %v218_v9 = vsel %vm5215_vm0, %v214_v8, -inf  ;;  %v225_v23 = vsel %vm5215_vm0, %v215_v21, -inf  ;;  %v421_v8 = vstv %s2527_s8  ;;  %s2965_s8 = sld [smem:[#allocation5 + $0x14]] }
  0x27   : > { %v202_v10 = vrot.slane %v201_v7, 1  ;;  %v219_v11 = vrot.slane %v218_v9, 4  ;;  %v226_v24 = vrot.slane %v225_v23, 4  ;;  %v209_v29 = vrot.slane %v208_v27, 1  ;;  %s2995_s13 = sld [smem:[#allocation5 + $0x1a]] }
  0x28   : > { %s3005_s2 = sld [smem:[#allocation5 + $0x1b]] }
  0x29   : > { %v203_v12 = vadd.f32 %v202_v10, %v201_v7  ;;  %v220_v13 = vmax.f32 %v218_v9, %v219_v11  ;;  %v227_v26 = vmax.f32 %v225_v23, %v226_v24  ;;  %v210_v31 = vadd.f32 %v209_v29, %v208_v27 }
  0x2a   : > { %v495_v23 = vstv %s2532_s16  ;;  %s3000_s16 = sld [smem:[#allocation5 + $0x19]] }
  0x2b   : > { %v232_v14 = vmul.f32 0.25, %v203_v12  ;;  %v221_v15 = vrot.slane %v220_v13, 2  ;;  %v228_v28 = vrot.slane %v227_v26, 2  ;;  %v233_v33 = vmul.f32 0.25, %v210_v31 }
  0x2c   : > { %v449_v12 = vstv %s2852_s9  ;;  %s2968_s9 = sld [smem:[#allocation5 + $0x17]] }
  0x2d   : > { %261 = vrot.lane.b32.xlu1 %v232_v14, %s2709_s23  ;;  %250 = vrot.lane.b32.xlu0 %v232_v14, %s2710_s24  ;;  %v222_v16 = vmax.f32 %v220_v13, %v221_v15  ;;  %v229_v30 = vmax.f32 %v227_v26, %v228_v28  ;;  %v435_v13 = vstv %s2854_s10  ;;  %s2971_s10 = sld [smem:[#allocation5 + $0x16]] }
  0x2e   : > { %269 = vrot.lane.b32.xlu2 %v232_v14, %s2711_s25 }
  0x2f   : > { %v223_v17 = vrot.slane %v222_v16, 1  ;;  %v230_v32 = vrot.slane %v229_v30, 1 }
  0x31   : > { %v224_v19 = vmax.f32 %v222_v16, %v223_v17  ;;  %v231_v34 = vmax.f32 %v229_v30, %v230_v32 }
  0x35   : > { %293 = vrot.lane.b32.xlu1 %v232_v14, %s2712_s26  ;;  %277 = vrot.lane.b32.xlu0 %v232_v14, %s2713_s27 }
  0x36   : > { %285 = vrot.lane.b32.xlu2 %v232_v14, %s2714_s28 }
  0x3d   : > { %265 = vrot.lane.b32.xlu1 %v224_v19, %s2709_s23  ;;  %301 = vrot.lane.b32.xlu0 %v232_v14, %s2715_s29 }
  0x3e   : > { %309 = vrot.lane.b32.xlu2 %v232_v14, %s2716_s30 }
  0x45   : > { %281 = vrot.lane.b32.xlu1 %v224_v19, %s2713_s27  ;;  %256 = vrot.lane.b32.xlu0 %v224_v19, %s2710_s24 }
  0x46   : > { %273 = vrot.lane.b32.xlu2 %v224_v19, %s2711_s25 }
  0x4d   : > { %305 = vrot.lane.b32.xlu1 %v224_v19, %s2715_s29  ;;  %289 = vrot.lane.b32.xlu0 %v224_v19, %s2714_s28 }
  0x4e   : > { %297 = vrot.lane.b32.xlu2 %v224_v19, %s2712_s26 }
  0x55   : > { %318 = vrot.lane.b32.xlu1 %v233_v33, %s2710_s24  ;;  %313 = vrot.lane.b32.xlu0 %v224_v19, %s2716_s30  ;;  %v463_v19 = vstv %s2868_s12  ;;  %s2980_s12 = sld [smem:[#allocation5 + $0x18]] }
  0x56   : > { %323 = vrot.lane.b32.xlu2 %v231_v34, %s2710_s24  ;;  %s2537_s24 = sld [smem:[#allocation5 + $0xd]] }
  0x5d   : > { %331 = vrot.lane.b32.xlu1 %v231_v34, %s2709_s23  ;;  %327 = vrot.lane.b32.xlu0 %v233_v33, %s2709_s23  ;;  %s2535_s23 = sld [smem:[#allocation5 + $0xb]] }
  0x5e   : > { %335 = vrot.lane.b32.xlu2 %v233_v33, %s2711_s25 }
  0x65   : > { %343 = vrot.lane.b32.xlu1 %v233_v33, %s2713_s27  ;;  %339 = vrot.lane.b32.xlu0 %v231_v34, %s2711_s25  ;;  %s2540_s25 = sld [smem:[#allocation5 + $0x10]] }
  0x66   : > { %347 = vrot.lane.b32.xlu2 %v231_v34, %s2713_s27  ;;  %s2541_s27 = sld [smem:[#allocation5 + $0x11]] }
  0x6d   : > { %355 = vrot.lane.b32.xlu1 %v231_v34, %s2714_s28  ;;  %351 = vrot.lane.b32.xlu0 %v233_v33, %s2714_s28  ;;  %s2564_s28 = sld [smem:[#allocation5 + $0x28]] }
  0x6e   : > { %359 = vrot.lane.b32.xlu2 %v233_v33, %s2712_s26 }
  0x75   : > { %367 = vrot.lane.b32.xlu1 %v233_v33, %s2715_s29  ;;  %363 = vrot.lane.b32.xlu0 %v231_v34, %s2712_s26  ;;  %s2539_s26 = sld [smem:[#allocation5 + $0xf]] }
  0x76   : > { %371 = vrot.lane.b32.xlu2 %v231_v34, %s2715_s29  ;;  %s2562_s29 = sld [smem:[#allocation5 + $0x26]] }
  0x7d   : > { %379 = vrot.lane.b32.xlu1 %v231_v34, %s2716_s30  ;;  %375 = vrot.lane.b32.xlu0 %v233_v33, %s2716_s30  ;;  %s2933_s30 = sld [smem:[#allocation5 + $0x13]] }
  0x88   : > { %v270_v36 = vpop.permute.xlu2 %269 }
  0x89   : > { %272 = vst.msk [vmem:[#allocation2 + $0x5] sm:$0x1] %vm253_vm3, %v270_v36 }
  0x90   : > { %v286_v37 = vpop.permute.xlu2 %285 }
  0x91   : > { %288 = vst.msk [vmem:[#allocation2 + $0x7] sm:$0x1] %vm253_vm3, %v286_v37 }
  0x98   : > { %v310_v38 = vpop.permute.xlu2 %309 }
  0x99   : > { %312 = vst.msk [vmem:[#allocation2 + $0xa] sm:$0x1] %vm253_vm3, %v310_v38 }
  0x9f   : > { %v262_v39 = vpop.permute.xlu1 %261  ;;  %v251_v40 = vpop.permute.xlu0 %250 }
  0xa0   : > { %264 = vst.msk [vmem:[#allocation2 + $0x4] sm:$0x1] %vm253_vm3, %v262_v39  ;;  %v274_v41 = vpop.permute.xlu2 %273 }
  0xa1   : > { %254 = vst.msk [vmem:[#allocation2 + $0x3] sm:$0x1] %vm253_vm3, %v251_v40 }
  0xa2   : > { %276 = vst.msk [vmem:[#allocation2 + $0x1d] sm:$0x1] %vm253_vm3, %v274_v41 }
  0xa7   : > { %v294_v42 = vpop.permute.xlu1 %293  ;;  %v278_v43 = vpop.permute.xlu0 %277 }
  0xa8   : > { %296 = vst.msk [vmem:[#allocation2 + $0x8] sm:$0x1] %vm253_vm3, %v294_v42  ;;  %v298_v44 = vpop.permute.xlu2 %297 }
  0xa9   : > { %280 = vst.msk [vmem:[#allocation2 + $0x6] sm:$0x1] %vm253_vm3, %v278_v43 }
  0xaa   : > { %300 = vst.msk [vmem:[#allocation2 + $0x20] sm:$0x1] %vm253_vm3, %v298_v44 }
  0xaf   : > { %v266_v47 = vpop.permute.xlu1 %265  ;;  %v302_v48 = vpop.permute.xlu0 %301 }
  0xb0   : > { %v2827_v49 = vld [vmem:[#allocation2] sm:$0xff]  ;;  %268 = vst.msk [vmem:[#allocation2 + $0x1c] sm:$0x1] %vm253_vm3, %v266_v47  ;;  %v324_v50 = vpop.permute.xlu2 %323  ;;  %v558_v47 = vstv %s2535_s23  ;;  %s3012_s23 = sld [smem:[#allocation5 + $0x1d]] }
  0xb1   : > { %304 = vst.msk [vmem:[#allocation2 + $0x9] sm:$0x1] %vm253_vm3, %v302_v48  ;;  %v408_v51 = vmul.f32 %v407_v45, %v2827_v49  ;;  %v394_v52 = vmul.f32 %v393_v46, %v2827_v49  ;;  %v450_v16 = vmul.f32 %v449_v12, %v2827_v49  ;;  %v436_v17 = vmul.f32 %v435_v13, %v2827_v49 }
  0xb2   : > { %326 = vst.msk [vmem:[#allocation2 + $0x23] sm:$0x1] %vm253_vm3, %v324_v50  ;;  %v422_v18 = vmul.f32 %v421_v8, %v2827_v49  ;;  %v517_v27 = vmul.f32 %v516_v22, %v2827_v49  ;;  %v496_v28 = vmul.f32 %v495_v23, %v2827_v49  ;;  %v464_v34 = vmul.f32 %v463_v19, %v2827_v49 }
  0xb3   : > { %412 = vrot.lane.b32.xlu1 %v408_v51, %s2718_s6  ;;  %398 = vrot.lane.b32.xlu2 %v394_v52, %s2719_s7 }
  0xb4   : > { %v523_v32 = vrot.slane %v517_v27, 1  ;;  %v502_v33 = vrot.slane %v496_v28, 1  ;;  %v2938_v28 = vstv %s2564_s28  ;;  %s3036_s28 = sld [smem:[#allocation5 + $0x22]] }
  0xb7   : > { %v282_v53 = vpop.permute.xlu1 %281  ;;  %v257_v54 = vpop.permute.xlu0 %256 }
  0xb8   : > { %284 = vst.msk [vmem:[#allocation2 + $0x1e] sm:$0x1] %vm253_vm3, %v282_v53  ;;  %v336_v55 = vpop.permute.xlu2 %335 }
  0xb9   : > { %260 = vst.msk [vmem:[#allocation2 + $0x1b] sm:$0x1] %vm253_vm3, %v257_v54 }
  0xba   : > { %338 = vst.msk [vmem:[#allocation2 + $0xd] sm:$0x1] %vm253_vm3, %v336_v55  ;;  %v559_v55 = vmul.f32 %v558_v47, %v2827_v49 }
  0xbf   : > { %v306_v56 = vpop.permute.xlu1 %305  ;;  %v290_v57 = vpop.permute.xlu0 %289 }
  0xc0   : > { %308 = vst.msk [vmem:[#allocation2 + $0x21] sm:$0x1] %vm253_vm3, %v306_v56  ;;  %v348_v58 = vpop.permute.xlu2 %347  ;;  %v538_v56 = vmul.f32 %v537_v35, %v2827_v49 }
  0xc1   : > { %292 = vst.msk [vmem:[#allocation2 + $0x1f] sm:$0x1] %vm253_vm3, %v290_v57 }
  0xc2   : > { %350 = vst.msk [vmem:[#allocation2 + $0x26] sm:$0x1] %vm253_vm3, %v348_v58 }
  0xc7   : > { %v319_v59 = vpop.permute.xlu1 %318  ;;  %v314_v60 = vpop.permute.xlu0 %313 }
  0xc8   : > { %321 = vst.msk [vmem:[#allocation2 + $0xb] sm:$0x1] %vm253_vm3, %v319_v59  ;;  %v360_v61 = vpop.permute.xlu2 %359 }
  0xc9   : > { %316 = vst.msk [vmem:[#allocation2 + $0x22] sm:$0x1] %vm253_vm3, %v314_v60  ;;  %v565_v60 = vrot.slane %v559_v55, 1 }
  0xca   : > { %362 = vst.msk [vmem:[#allocation2 + $0x10] sm:$0x1] %vm253_vm3, %v360_v61  ;;  %v544_v61 = vrot.slane %v538_v56, 1 }
  0xcf   : > { %v332_v62 = vpop.permute.xlu1 %331  ;;  %v328_v63 = vpop.permute.xlu0 %327 }
  0xd0   : > { %334 = vst.msk [vmem:[#allocation2 + $0x24] sm:$0x1] %vm253_vm3, %v332_v62  ;;  %v372_v0 = vpop.permute.xlu2 %371  ;;  %v600_v62 = vstv %s2537_s24  ;;  %s3014_s24 = sld [smem:[#allocation5 + $0x1f]] }
  0xd1   : > { %330 = vst.msk [vmem:[#allocation2 + $0xc] sm:$0x1] %vm253_vm3, %v328_v63 }
  0xd2   : > { %374 = vst.msk [vmem:[#allocation2 + $0x29] sm:$0x1] %vm253_vm3, %v372_v0 }
  0xd7   : > { %v344_v1 = vpop.permute.xlu1 %343  ;;  %v340_v2 = vpop.permute.xlu0 %339 }
  0xd8   : > { %346 = vst.msk [vmem:[#allocation2 + $0xe] sm:$0x1] %vm253_vm3, %v344_v1 }
  0xd9   : > { %342 = vst.msk [vmem:[#allocation2 + $0x25] sm:$0x1] %vm253_vm3, %v340_v2 }
  0xdf   : > { %v356_v3 = vpop.permute.xlu1 %355  ;;  %v352_v4 = vpop.permute.xlu0 %351 }
  0xe0   : > { %358 = vst.msk [vmem:[#allocation2 + $0x27] sm:$0x1] %vm253_vm3, %v356_v3 }
  0xe1   : > { %354 = vst.msk [vmem:[#allocation2 + $0xf] sm:$0x1] %vm253_vm3, %v352_v4 }
  0xe7   : > { %v368_v5 = vpop.permute.xlu1 %367  ;;  %v364_v6 = vpop.permute.xlu0 %363 }
  0xe8   : > { %v2856_v7 = vld [vmem:[#allocation2 + $0x8] sm:$0xff]  ;;  %370 = vst.msk [vmem:[#allocation2 + $0x11] sm:$0x1] %vm253_vm3, %v368_v5 }
  0xe9   : > { %366 = vst.msk [vmem:[#allocation2 + $0x28] sm:$0x1] %vm253_vm3, %v364_v6  ;;  %v423_v9 = vmul.f32 %v421_v8, %v2856_v7  ;;  %v409_v10 = vmul.f32 %v407_v45, %v2856_v7  ;;  %v395_v11 = vmul.f32 %v393_v46, %v2856_v7  ;;  %v465_v20 = vmul.f32 %v463_v19, %v2856_v7 }
  0xea   : > { %v451_v21 = vmul.f32 %v449_v12, %v2856_v7  ;;  %v437_v24 = vmul.f32 %v435_v13, %v2856_v7  ;;  %v518_v25 = vmul.f32 %v516_v22, %v2856_v7  ;;  %v497_v26 = vmul.f32 %v495_v23, %v2856_v7 }
  0xeb   : > { %428 = vrot.lane.b32.xlu1 %v423_v9, %s2720_s11  ;;  %414 = vrot.lane.b32.xlu2 %v409_v10, %s2718_s6  ;;  %v539_v41 = vmul.f32 %v537_v35, %v2856_v7  ;;  %v579_v46 = vstv %s2536_s21  ;;  %v560_v52 = vmul.f32 %v558_v47, %v2856_v7  ;;  %v602_v5 = vmul.f32 %v600_v62, %v2856_v7  ;;  %s3008_s21 = sld [smem:[#allocation5 + $0x1e]] }
  0xec   : > { %400 = vrot.lane.b32.xlu0 %v395_v11, %s2719_s7  ;;  %v524_v29 = vrot.slane %v518_v25, 1  ;;  %v503_v30 = vrot.slane %v497_v26, 1  ;;  %v581_v51 = vmul.f32 %v579_v46, %v2856_v7  ;;  %v580_v54 = vmul.f32 %v579_v46, %v2827_v49 }
  0xed   : > { %v545_v45 = vrot.slane %v539_v41, 1  ;;  %v566_v58 = vrot.slane %v560_v52, 1  ;;  %v608_v10 = vrot.slane %v602_v5, 1  ;;  %v660_v11 = vstv %s2540_s25  ;;  %s3016_s25 = sld [smem:[#allocation5 + $0x21]] }
  0xee   : > { %v525_v36 = vsel %vm484_vm5, %v523_v32, %v524_v29  ;;  %v504_v37 = vsel %vm484_vm5, %v502_v33, %v503_v30  ;;  %v587_v57 = vrot.slane %v581_v51, 1  ;;  %v586_v59 = vrot.slane %v580_v54, 1 }
  0xef   : > { %v380_v14 = vpop.permute.xlu1 %379  ;;  %v376_v15 = vpop.permute.xlu0 %375  ;;  %v567_v0 = vsel %vm484_vm5, %v565_v60, %v566_v58  ;;  %v546_v3 = vsel %vm484_vm5, %v544_v61, %v545_v45  ;;  %v662_v12 = vmul.f32 %v660_v11, %v2856_v7  ;;  %v639_v13 = vstv %s2539_s26  ;;  %s3019_s26 = sld [smem:[#allocation5 + $0x20]] }
  0xf0   : > { %382 = vst.msk [vmem:[#allocation2 + $0x2a] sm:$0x1] %vm253_vm3, %v380_v14  ;;  %v588_v63 = vsel %vm484_vm5, %v586_v59, %v587_v57  ;;  %v640_v19 = vmul.f32 %v639_v13, %v2827_v49  ;;  %v681_v25 = vstv %s2541_s27  ;;  %v723_v51 = vstv %s2933_s30  ;;  %s3029_s27 = sld [smem:[#allocation5 + $0x7]] }
  0xf1   : > { %378 = vst.msk [vmem:[#allocation2 + $0x12] sm:$0x1] %vm253_vm3, %v376_v15  ;;  %v702_v52 = vstv %s2936_s4  ;;  %v2990_v56 = vmul.f32 %v723_v51, %v2856_v7  ;;  %v724_v59 = vmul.f32 %v723_v51, %v2827_v49  ;;  %v682_v61 = vmul.f32 %v681_v25, %v2827_v49  ;;  %s3058_s30 = sld [smem:[#allocation5 + $0x24]] }
  0xf2   : > { %v703_v60 = vmul.f32 %v702_v52, %v2827_v49  ;;  %s3077_s4 = sld [smem:[#allocation5 + $0x27]] }
  0xf3   : > { %454 = vrot.lane.b32.xlu1 %v450_v16, %s5107_s17  ;;  %440 = vrot.lane.b32.xlu2 %v436_v17, %s5105_s18  ;;  %v641_v16 = vmul.f32 %v639_v13, %v2856_v7 }
  0xf4   : > { %426 = vrot.lane.b32.xlu0 %v422_v18, %s2720_s11  ;;  %v661_v18 = vmul.f32 %v660_v11, %v2827_v49 }
  0xf8   : > { %v2889_v31 = vld [vmem:[#allocation2 + $0x10] sm:$0x3f] }
  0xf9   : > { %v540_v38 = vmul.f32 %v537_v35, %v2889_v31  ;;  %v519_v39 = vmul.f32 %v516_v22, %v2889_v31  ;;  %v498_v40 = vmul.f32 %v495_v23, %v2889_v31  ;;  %v603_v1 = vmul.f32 %v600_v62, %v2889_v31 }
  0xfa   : > { %v582_v2 = vmul.f32 %v579_v46, %v2889_v31  ;;  %v561_v4 = vmul.f32 %v558_v47, %v2889_v31  ;;  %v647_v22 = vrot.slane %v641_v16, 2  ;;  %v667_v23 = vrot.slane %v661_v18, 2 }
  0xfb   : > { %470 = vrot.lane.b32.xlu1 %v465_v20, %s2723_s20  ;;  %456 = vrot.lane.b32.xlu2 %v451_v21, %s5107_s17  ;;  %v547_v42 = vrot.slane %v540_v38, 1  ;;  %v526_v43 = vrot.slane %v519_v39, 1  ;;  %v505_v44 = vrot.slane %v498_v40, 1  ;;  %v610_v6 = vrot.slane %v603_v1, 1 }
  0xfc   : > { %442 = vrot.lane.b32.xlu0 %v437_v24, %s5105_s18  ;;  %v589_v8 = vrot.slane %v582_v2, 1  ;;  %v568_v9 = vrot.slane %v561_v4, 1  ;;  %v668_v20 = vrot.slane %v662_v12, 2  ;;  %v601_v21 = vmul.f32 %v600_v62, %v2827_v49 }
  0xfd   : > { %v548_v48 = vsel %vm484_vm5, %v545_v45, %v547_v42  ;;  %v527_v50 = vsel %vm484_vm5, %v524_v29, %v526_v43  ;;  %v506_v53 = vsel %vm484_vm5, %v503_v30, %v505_v44  ;;  %v611_v14 = vsel %vm484_vm5, %v608_v10, %v610_v6 }
  0xfe   : > { %v590_v15 = vsel %vm484_vm5, %v587_v57, %v589_v8  ;;  %v569_v17 = vsel %vm484_vm5, %v566_v58, %v568_v9  ;;  %v646_v24 = vrot.slane %v640_v19, 2  ;;  %v669_v26 = vsel %vm628_vm6, %v667_v23, %v668_v20 }
  0xff   : > { %v607_v27 = vrot.slane %v601_v21, 1  ;;  %v2940_v29 = vstv %s2562_s29  ;;  %v684_v32 = vmul.f32 %v681_v25, %v2889_v31  ;;  %v663_v33 = vmul.f32 %v660_v11, %v2889_v31  ;;  %s3050_s29 = sld [smem:[#allocation5 + $0x25]] }
 0x100   : > { %v648_v30 = vsel %vm628_vm6, %v646_v24, %v647_v22  ;;  %v683_v38 = vmul.f32 %v681_v25, %v2856_v7  ;;  %v1157_v39 = vmul.f32 %v2938_v28, %v2889_v31  ;;  %v1115_v40 = vmul.f32 %v2940_v29, %v2889_v31 }
 0x101   : > { %v609_v35 = vsel %vm484_vm5, %v607_v27, %v608_v10  ;;  %v691_v41 = vrot.slane %v684_v32, 2  ;;  %v670_v42 = vrot.slane %v663_v33, 2  ;;  %v2993_v57 = vmul.f32 %v702_v52, %v2856_v7 }
 0x102   : > { %v1164_v44 = vrot.slane %v1157_v39, 5  ;;  %v1122_v47 = vrot.slane %v1115_v40, 5  ;;  %v731_v62 = vrot.slane %v2990_v56, 2  ;;  %v709_v1 = vrot.slane %v703_v60, 2 }
 0x103   : > { %528 = vrot.lane.b32.xlu1 %v525_v36, %s2718_s6  ;;  %507 = vrot.lane.b32.xlu2 %v504_v37, %s2719_s7  ;;  %v642_v36 = vmul.f32 %v639_v13, %v2889_v31  ;;  %v2955_v37 = vmul.f32 %v2940_v29, %v2856_v7  ;;  %v671_v55 = vsel %vm628_vm6, %v668_v20, %v670_v42  ;;  %v688_v2 = vrot.slane %v682_v61, 2 }
 0x104   : > { %468 = vrot.lane.b32.xlu0 %v464_v34, %s2723_s20  ;;  %v2947_v34 = vmul.f32 %v2938_v28, %v2856_v7  ;;  %v726_v8 = vmul.f32 %v723_v51, %v2889_v31  ;;  %v705_v10 = vmul.f32 %v702_v52, %v2889_v31  ;;  %v387_v11 = vstv %s2961_s5  ;;  %s3325_s5 = sld [smem:[#allocation5 + $0x4a]] }
 0x105   : > { %5221 = vst [vmem:[#allocation8_spill] sm:$0xff] %v2955_v37  ;;  %v649_v45 = vrot.slane %v642_v36, 2  ;;  %v5098_v46 = vrot.slane %v2955_v37, 5  ;;  %v3039_v13 = vstv %s2968_s9  ;;  %v3048_v16 = vstv %s2995_s13  ;;  %s3148_s9 = sld [smem:[#allocation5 + $0xe]] }
 0x106   : > { %v5099_v43 = vrot.slane %v2947_v34, 5  ;;  %v733_v18 = vrot.slane %v726_v8, 2  ;;  %v3053_v19 = vstv %s3000_s16  ;;  %v3056_v20 = vstv %s3005_s2  ;;  %s3200_s13 = sld [smem:[#allocation5 + $0x29]] }
 0x107   : > { %v650_v58 = vsel %vm628_vm6, %v647_v22, %v649_v45  ;;  %v712_v21 = vrot.slane %v705_v10, 2  ;;  %v3061_v22 = vstv %s3008_s21  ;;  %v3064_v23 = vstv %s3012_s23  ;;  %s3281_s16 = sld [smem:[#allocation5 + $0x23]] }
 0x108   : > { %v3067_v24 = vstv %s3014_s24  ;;  %v3082_v33 = vmul.f32 %v3048_v16, %v2827_v49  ;;  %v3089_v36 = vstv %s3019_s26  ;;  %v734_v39 = vsel %vm628_vm6, %v731_v62, %v733_v18  ;;  %s3286_s2 = sld [smem:[#allocation5 + $0x43]] }
 0x109   : > { %v3097_v40 = vmul.f32 %v3039_v13, %v2856_v7  ;;  %v3112_v45 = vmul.f32 %v3061_v22, %v2827_v49  ;;  %v3175_v10 = vstv %s3077_s4  ;;  %s3297_s21 = sld [smem:[#allocation5 + $0x2a]] }
 0x10a   : > { %5224 = vst [vmem:[#allocation11_spill] sm:$0xff] %v3175_v10  ;;  %s3299_s23 = sld [smem:[#allocation5 + $0x4c]] }
 0x10b   : > { %551 = vrot.lane.b32.xlu1 %v548_v48, %s2720_s11  ;;  %530 = vrot.lane.b32.xlu2 %v527_v50, %s2718_s6  ;;  %v689_v48 = vrot.slane %v683_v38, 2  ;;  %v2976_v50 = vsel %vm1059_vm7, %v5099_v43, %v1164_v44  ;;  %v812_v60 = vrot.slane %v3097_v40, 3  ;;  %s3310_s24 = sld [smem:[#allocation5 + $0x4b]] }
 0x10c   : > { %509 = vrot.lane.b32.xlu0 %v506_v53, %s2719_s7  ;;  %5222 = vst [vmem:[#allocation9_spill] sm:$0xff] %v2976_v50  ;;  %v2985_v53 = vsel %vm1059_vm7, %v5098_v46, %v1122_v47  ;;  %v3115_v47 = vstv %s3029_s27  ;;  %s3348_s26 = sld [smem:[#allocation5 + $0x4f]] }
 0x10d   : > { %5223 = vst [vmem:[#allocation10_spill] sm:$0xff] %v2985_v53  ;;  %v692_v54 = vsel %vm628_vm6, %v689_v48, %v691_v41  ;;  %v690_v9 = vsel %vm628_vm6, %v688_v2, %v689_v48  ;;  %v3120_v48 = vmul.f32 %v387_v11, %v2827_v49  ;;  %v3146_v2 = vmul.f32 %v3056_v20, %v2827_v49  ;;  %s3371_s27 = sld [smem:[#allocation5 + $0x4e]] }
 0x10e   : > { %s3419_s4 = sld [smem:[#allocation5 + $0x57]] }
 0x113   : > { %591 = vrot.lane.b32.xlu1 %v588_v63, %s5107_s17  ;;  %570 = vrot.lane.b32.xlu2 %v567_v0, %s5105_s18  ;;  %v710_v63 = vrot.slane %v2993_v57, 2  ;;  %v730_v0 = vrot.slane %v724_v59, 2  ;;  %v874_v57 = vrot.slane %v3082_v33, 3  ;;  %v3132_v59 = vmul.f32 %v3064_v23, %v2827_v49 }
 0x114   : > { %549 = vrot.lane.b32.xlu0 %v546_v3, %s2720_s11  ;;  %v744_v3 = vstv %s2965_s8  ;;  %s3091_s8 = sld [smem:[#allocation5 + $0x2b]]  ;;  %v5233_v33 = vrot.slane %v3146_v2, 3 }
 0x115   : > { %v732_v4 = vsel %vm628_vm6, %v730_v0, %v731_v62  ;;  %v711_v5 = vsel %vm628_vm6, %v709_v1, %v710_v63  ;;  %v747_v6 = vmul.f32 %v744_v3, %v2889_v31  ;;  %v3034_v12 = vmul.f32 %v744_v3, %v2856_v7 }
 0x116   : > { %v745_v32 = vmul.f32 %v744_v3, %v2827_v49  ;;  %v713_v42 = vsel %vm628_vm6, %v710_v63, %v712_v21  ;;  %v3137_v62 = vstv %s3050_s29  ;;  %v3140_v63 = vstv %s3058_s30  ;;  %s3399_s29 = sld [smem:[#allocation5 + $0x52]] }
 0x117   : > { %v752_v25 = vrot.slane %v3034_v12, 2  ;;  %v3168_v8 = vmul.f32 %v3137_v62, %v2827_v49  ;;  %v950_v1 = vmul.f32 %v3061_v22, %v2889_v31  ;;  %s3409_s30 = sld [smem:[#allocation5 + $0x51]] }
 0x118   : > { %v751_v56 = vrot.slane %v745_v32, 2 }
 0x11a   : > { %v3178_v12 = vstv %s3091_s8  ;;  %s3426_s8 = sld [smem:[#allocation5 + $0x56]] }
 0x11b   : > { %614 = vrot.lane.b32.xlu1 %v611_v14, %s2723_s20  ;;  %593 = vrot.lane.b32.xlu2 %v590_v15, %s5107_s17  ;;  %v3042_v14 = vstv %s2971_s10  ;;  %v3045_v15 = vstv %s2980_s12  ;;  %5225 = vst [vmem:[#allocation12_spill] sm:$0xff] %v3178_v12  ;;  %s3180_s10 = sld [smem:[#allocation5 + $0x2e]] }
 0x11c   : > { %572 = vrot.lane.b32.xlu0 %v569_v17, %s5105_s18  ;;  %v754_v17 = vrot.slane %v747_v6, 2  ;;  %v784_v27 = vmul.f32 %v3042_v14, %v2827_v49  ;;  %v3101_v41 = vmul.f32 %v3042_v14, %v2856_v7  ;;  %v3108_v44 = vmul.f32 %v3045_v15, %v2827_v49  ;;  %s3188_s12 = sld [smem:[#allocation5 + $0x2c]] }
 0x11d   : > { %v3164_v6 = vmul.f32 %v3115_v47, %v2827_v49  ;;  %v828_v21 = vmul.f32 %v3045_v15, %v2889_v31  ;;  %v786_v32 = vmul.f32 %v3042_v14, %v2889_v31  ;;  %v3212_v14 = vmul.f32 %v3178_v12, %v2827_v49 }
 0x11e   : > { %v755_v38 = vsel %vm628_vm6, %v752_v25, %v754_v17  ;;  %v790_v52 = vrot.slane %v784_v27, 3  ;;  %v791_v61 = vrot.slane %v3101_v41, 3  ;;  %v832_v0 = vrot.slane %v3108_v44, 3 }
 0x11f   : > { %v753_v27 = vsel %vm628_vm6, %v751_v56, %v752_v25  ;;  %v3208_v25 = vmul.f32 %v3175_v10, %v2827_v49  ;;  %v835_v56 = vrot.slane %v828_v21, 3  ;;  %v793_v46 = vrot.slane %v786_v32, 3 }
 0x120   : > { %v792_v18 = vsel %vm772_vm8, %v790_v52, %v791_v61  ;;  %v3234_v21 = vmul.f32 %v2940_v29, %v2827_v49  ;;  %v848_v32 = vmul.f32 %v3053_v19, %v2856_v7 }
 0x121   : > { %v3242_v43 = vstv %s3180_s10  ;;  %v794_v29 = vsel %vm772_vm8, %v791_v61, %v793_v46  ;;  %v971_v46 = vmul.f32 %v3067_v24, %v2889_v31  ;;  %s3447_s10 = sld [smem:[#allocation5 + $0x38]] }
 0x122   : > { %5227 = vst [vmem:[#allocation14_spill] sm:$0xff] %v3234_v21 }
 0x123   : > { %672 = vrot.lane.b32.xlu1 %v669_v26, %s2718_s6  ;;  %651 = vrot.lane.b32.xlu2 %v648_v30, %s2719_s7  ;;  %v805_v26 = vmul.f32 %v3039_v13, %v2827_v49  ;;  %v3075_v30 = vstv %s3016_s25  ;;  %5228 = vst [vmem:[#allocation15_spill] sm:$0xff] %v3242_v43  ;;  %s3335_s25 = sld [smem:[#allocation5 + $0x50]] }
 0x124   : > { %612 = vrot.lane.b32.xlu0 %v609_v35, %s2723_s20  ;;  %v3086_v35 = vmul.f32 %v3053_v19, %v2827_v49  ;;  %v3152_v3 = vmul.f32 %v3075_v30, %v2827_v49 }
 0x125   : > { %v811_v51 = vrot.slane %v805_v26, 3  ;;  %v807_v26 = vmul.f32 %v3039_v13, %v2889_v31  ;;  %v827_v13 = vmul.f32 %v3045_v15, %v2856_v7  ;;  %v3221_v15 = vmul.f32 %v2938_v28, %v2827_v49 }
 0x126   : > { %v890_v28 = vmul.f32 %v3056_v20, %v2856_v7 }
 0x127   : > { %v813_v17 = vsel %vm772_vm8, %v811_v51, %v812_v60  ;;  %v833_v51 = vrot.slane %v827_v13, 3  ;;  %v3619_v53 = vstv %s3447_s10  ;;  %s2545_s10 = sld [smem:[#allocation5 + $0x15]] }
 0x129   : > { %v836_v13 = vsel %vm772_vm8, %v833_v51, %v835_v56  ;;  %v3261_v56 = vstv %s3200_s13  ;;  %s3472_s13 = sld [smem:[#allocation5 + $0x59]] }
 0x12a   : > { %5230 = vst [vmem:[#allocation17_spill] sm:$0xff] %v3261_v56 }
 0x12b   : > { %695 = vrot.lane.b32.xlu1 %v692_v54, %s2720_s11  ;;  %674 = vrot.lane.b32.xlu2 %v671_v55, %s2718_s6  ;;  %v3124_v54 = vstv %s3036_s28  ;;  %v3126_v55 = vpop.permute.xlu2 %398  ;;  %s3384_s28 = sld [smem:[#allocation5 + $0x53]] }
 0x12c   : > { %653 = vrot.lane.b32.xlu0 %v650_v58, %s2719_s7 }
 0x133   : > { %735 = vrot.lane.b32.xlu1 %v732_v4, %s5107_s17  ;;  %714 = vrot.lane.b32.xlu2 %v711_v5, %s5105_s18  ;;  %v3156_v4 = vmul.f32 %v3089_v36, %v2827_v49  ;;  %v3160_v5 = vmul.f32 %v3067_v24, %v2827_v49 }
 0x134   : > { %693 = vrot.lane.b32.xlu0 %v690_v9, %s2720_s11  ;;  %v3172_v9 = vmul.f32 %v3140_v63, %v2827_v49 }
 0x13b   : > { %758 = vrot.lane.b32.xlu1 %v755_v38, %s2723_s20  ;;  %737 = vrot.lane.b32.xlu2 %v734_v39, %s5107_s17  ;;  %v3198_v39 = vmul.f32 %v3124_v54, %v2827_v49  ;;  %v3228_v38 = vstv %s3148_s9  ;;  %v3250_v49 = vmul.f32 %v3061_v22, %v2856_v7  ;;  %v978_v22 = vrot.slane %v971_v46, 4  ;;  %s3437_s9 = sld [smem:[#allocation5 + $0x55]] }
 0x13c   : > { %716 = vrot.lane.b32.xlu0 %v713_v42, %s5105_s18  ;;  %5226 = vst [vmem:[#allocation13_spill] sm:$0xff] %v3228_v38  ;;  %v891_v42 = vmul.f32 %v3056_v20, %v2889_v31 }
 0x13d   : > { %v955_v40 = vrot.slane %v3250_v49, 4 }
 0x143   : > { %816 = vrot.lane.b32.xlu1 %v813_v17, %s2718_s6  ;;  %795 = vrot.lane.b32.xlu2 %v792_v18, %s2719_s7  ;;  %v814_v17 = vrot.slane %v807_v26, 3  ;;  %v869_v26 = vmul.f32 %v3048_v16, %v2856_v7  ;;  %v896_v18 = vrot.slane %v890_v28, 3 }
 0x144   : > { %756 = vrot.lane.b32.xlu0 %v753_v27, %s2723_s20  ;;  %v3258_v27 = vstv %s3188_s12  ;;  %s3457_s12 = sld [smem:[#allocation5 + $0x5a]] }
 0x145   : > { %v3214_v41 = vpop.permute.xlu2 %414  ;;  %v815_v52 = vsel %vm772_vm8, %v812_v60, %v814_v17  ;;  %5229 = vst [vmem:[#allocation16_spill] sm:$0xff] %v3258_v27  ;;  %v870_v60 = vmul.f32 %v3048_v16, %v2889_v31  ;;  %v849_v17 = vmul.f32 %v3053_v19, %v2889_v31  ;;  %v875_v20 = vrot.slane %v869_v26, 3 }
 0x146   : > { %v854_v19 = vrot.slane %v848_v32, 3  ;;  %v898_v26 = vrot.slane %v891_v42, 3  ;;  %v929_v16 = vmul.f32 %v3064_v23, %v2889_v31  ;;  %v3295_v32 = vmul.f32 %v3089_v36, %v2856_v7 }
 0x147   : > { %v877_v28 = vrot.slane %v870_v60, 3  ;;  %v856_v49 = vrot.slane %v849_v17, 3  ;;  %v876_v44 = vsel %vm772_vm8, %v874_v57, %v875_v20  ;;  %v5232_v17 = vrot.slane %v3112_v45, 4 }
 0x148   : > { %v3323_v57 = vsel %vm772_vm8, %v5233_v33, %v896_v18  ;;  %v936_v46 = vrot.slane %v929_v16, 4  ;;  %v5100_v45 = vrot.slane %v3295_v32, 4  ;;  %v480_v33 = vmul.f32 %v3115_v47, %v2889_v31 }
 0x149   : > { %v857_v2 = vsel %vm772_vm8, %v854_v19, %v856_v49  ;;  %v3369_v49 = vstv %s3281_s16  ;;  %s3487_s16 = sld [smem:[#allocation5 + $0x58]] }
 0x14a   : > { %5237 = vst [vmem:[#allocation18_spill] sm:$0xff] %v3369_v49  ;;  %v3622_v50 = vstv %s3457_s12  ;;  %s4185_s12 = sld [smem:[#allocation5 + $0x36]] }
 0x14b   : > { %839 = vrot.lane.b32.xlu1 %v836_v13, %s2720_s11  ;;  %818 = vrot.lane.b32.xlu2 %v815_v52, %s2718_s6  ;;  %v928_v52 = vmul.f32 %v3064_v23, %v2856_v7  ;;  %v970_v13 = vmul.f32 %v3067_v24, %v2856_v7  ;;  %v834_v24 = vsel %vm772_vm8, %v832_v0, %v833_v51  ;;  %v5231_v51 = vrot.slane %v3086_v35, 3 }
 0x14c   : > { %797 = vrot.lane.b32.xlu0 %v794_v29, %s2719_s7  ;;  %v3278_v29 = vmul.f32 %v3075_v30, %v2856_v7  ;;  %v3307_v0 = vmul.f32 %v387_v11, %v2856_v7  ;;  %v957_v11 = vrot.slane %v950_v1, 4  ;;  %v899_v35 = vsel %vm772_vm8, %v896_v18, %v898_v26  ;;  %v3350_v26 = vpop.permute.xlu1 %412  ;;  %5278 = vst [vmem:[#allocation46_spill] sm:$0xff] %v3622_v50 }
 0x14d   : > { %v3272_v61 = vpop.permute.xlu2 %440  ;;  %v934_v58 = vrot.slane %v928_v52, 4  ;;  %v976_v23 = vrot.slane %v970_v13, 4  ;;  %v855_v60 = vsel %vm772_vm8, %v5231_v51, %v854_v19  ;;  %v3318_v52 = vsel %vm5215_vm0, %v5232_v17, %v955_v40 }
 0x14e   : > { %v5101_v42 = vrot.slane %v3278_v29, 4  ;;  %v3333_v13 = vmul.f32 %v3115_v47, %v2856_v7  ;;  %v878_v1 = vsel %vm772_vm8, %v875_v20, %v877_v28  ;;  %v5235_v20 = vrot.slane %v3152_v3, 4 }
 0x14f   : > { %v3346_v16 = vsel %vm5215_vm0, %v976_v23, %v978_v22  ;;  %v1034_v28 = vmul.f32 %v3124_v54, %v2889_v31  ;;  %v3374_v22 = vsel %vm5215_vm0, %v955_v40, %v957_v11  ;;  %v1033_v3 = vmul.f32 %v3124_v54, %v2856_v7 }
 0x150   : > { %v3359_v19 = vsel %vm5215_vm0, %v5235_v20, %v5101_v42  ;;  %v5239_v40 = vrot.slane %v3156_v4, 4  ;;  %v486_v54 = vrot.slane %v3333_v13, 1  ;;  %v1072_v11 = vmul.f32 %v3140_v63, %v2856_v7  ;;  %v3439_v42 = vld [vmem:[#allocation2 + $0x20] sm:$0xff] }
 0x151   : > { %v1055_v4 = vmul.f32 %v3369_v49, %v2889_v31  ;;  %v1094_v13 = vmul.f32 %v3137_v62, %v2889_v31  ;;  %v1073_v47 = vmul.f32 %v3140_v63, %v2889_v31  ;;  %v3423_v20 = vmul.f32 %v3178_v12, %v2856_v7 }
 0x152   : > { %v3394_v17 = vsel %vm5215_vm0, %v5239_v40, %v5100_v45  ;;  %v404_v40 = vadd.f32 %v3126_v55, %v3120_v48  ;;  %v1078_v55 = vrot.slane %v1072_v11, 5  ;;  %v5245_v11 = vrot.slane %v3278_v29, 4 }
 0x153   : > { %879 = vrot.lane.b32.xlu1 %v876_v44, %s5107_s17  ;;  %858 = vrot.lane.b32.xlu2 %v855_v60, %s5105_s18  ;;  %v5234_v44 = vrot.slane %v3132_v59, 4  ;;  %v5236_v59 = vrot.slane %v3160_v5, 4  ;;  %v1013_v60 = vmul.f32 %v3075_v30, %v2889_v31  ;;  %v3382_v5 = vmul.f32 %v3369_v49, %v2856_v7  ;;  %5241 = vst [vmem:[#allocation21_spill] sm:$0xff] %v3423_v20 }
 0x154   : > { %837 = vrot.lane.b32.xlu0 %v834_v24, %s2720_s11  ;;  %v992_v30 = vmul.f32 %v3089_v36, %v2889_v31  ;;  %v3413_v36 = vmul.f32 %v3175_v10, %v2856_v7  ;;  %v3481_v29 = vmul.f32 %v3228_v38, %v2889_v31  ;;  %v3610_v12 = vstv %s3419_s4  ;;  %s4153_s4 = sld [smem:[#allocation5 + $0x35]] }
 0x155   : > { %v3343_v18 = vsel %vm5215_vm0, %v5234_v44, %v934_v58  ;;  %v3352_v51 = vpop.permute.xlu2 %456  ;;  %v3364_v24 = vsel %vm5215_vm0, %v5236_v59, %v976_v23  ;;  %5238 = vst [vmem:[#allocation19_spill] sm:$0xff] %v3382_v5  ;;  %v3387_v23 = vsel %vm5215_vm0, %v934_v58, %v936_v46  ;;  %v1093_v58 = vmul.f32 %v3137_v62, %v2856_v7 }
 0x156   : > { %v1041_v46 = vrot.slane %v1034_v28, 4  ;;  %5240 = vst [vmem:[#allocation20_spill] sm:$0xff] %v3413_v36  ;;  %v1020_v44 = vrot.slane %v1013_v60, 4  ;;  %v5102_v59 = vrot.slane %v3382_v5, 5  ;;  %v1063_v28 = vrot.slane %v1055_v4, 5 }
 0x157   : > { %v5242_v62 = vrot.slane %v3164_v6, 1  ;;  %v1039_v60 = vrot.slane %v1033_v3, 4  ;;  %v999_v45 = vrot.slane %v992_v30, 4  ;;  %v488_v4 = vrot.slane %v480_v33, 1  ;;  %5249 = vst [vmem:[#allocation26_spill] sm:$0xff] %v3481_v29 }
 0x158   : > { %v1099_v48 = vrot.slane %v1093_v58, 5  ;;  %v1101_v30 = vrot.slane %v1094_v13, 5  ;;  %v1080_v33 = vrot.slane %v1073_v47, 5  ;;  %v5248_v13 = vrot.slane %v3295_v32, 4  ;;  %5277 = vst [vmem:[#allocation45_spill] sm:$0xff] %v3610_v12 }
 0x159   : > { %v3435_v63 = vsel %vm484_vm5, %v5242_v62, %v486_v54  ;;  %v3454_v3 = vsel %vm5215_vm0, %v1039_v60, %v1041_v46  ;;  %v3470_v46 = vstv %s3286_s2  ;;  %v5251_v32 = vrot.slane %v3168_v8, 5  ;;  %s3507_s2 = sld [smem:[#allocation5 + $0x3f]] }
 0x15a   : > { %5247 = vst [vmem:[#allocation25_spill] sm:$0xff] %v3470_v46  ;;  %v3477_v47 = vsel %vm5215_vm0, %v5248_v13, %v999_v45  ;;  %v5252_v13 = vrot.slane %v3172_v9, 5  ;;  %v5255_v8 = vrot.slane %v3208_v25, 5  ;;  %v3519_v9 = vsel %vm1059_vm7, %v1099_v48, %v1101_v30 }
 0x15b   : > { %902 = vrot.lane.b32.xlu1 %v899_v35, %s2723_s20  ;;  %881 = vrot.lane.b32.xlu2 %v878_v1, %s5107_s17  ;;  %v3445_v35 = vsel %vm1059_vm7, %v5102_v59, %v1063_v28  ;;  %v3462_v28 = vsel %vm5215_vm0, %v5245_v11, %v1020_v44  ;;  %v3467_v59 = vmul.f32 %v3228_v38, %v2856_v7  ;;  %v5261_v25 = vrot.slane %v3212_v14, 6  ;;  %s3578_s17 = sld [smem:[#allocation5 + $0x61]] }
 0x15c   : > { %860 = vrot.lane.b32.xlu0 %v857_v2, %s5105_s18  ;;  %5243 = vst [vmem:[#allocation22_spill] sm:$0xff] %v3445_v35  ;;  %v3485_v44 = vmul.f32 %v3470_v46, %v3439_v42  ;;  %v3490_v11 = vsel %vm484_vm5, %v486_v54, %v488_v4  ;;  %v3495_v45 = vsel %vm1059_vm7, %v5251_v32, %v1099_v48  ;;  %v5253_v2 = vrot.slane %v3198_v39, 4  ;;  %v3509_v35 = vld [vmem:[#allocation2 + $0x28] sm:$0x3f]  ;;  %s3548_s18 = sld [smem:[#allocation5 + $0x5d]] }
 0x15d   : > { %v3449_v6 = vpop.permute.xlu1 %428  ;;  %v3451_v1 = vpop.permute.xlu2 %507  ;;  %5246 = vst [vmem:[#allocation24_spill] sm:$0xff] %v3467_v59  ;;  %v3500_v62 = vsel %vm1059_vm7, %v5252_v13, %v1078_v55  ;;  %v5254_v54 = vrot.slane %v3413_v36, 5  ;;  %v3522_v32 = vsel %vm1059_vm7, %v1078_v55, %v1080_v33  ;;  %v3526_v39 = vmul.f32 %v3242_v43, %v2856_v7 }
 0x15e   : > { %5244 = vst [vmem:[#allocation23_spill] sm:$0xff] %v3451_v1  ;;  %v401_v58 = vpop.permute.xlu0 %400  ;;  %v3505_v5 = vsel %vm5215_vm0, %v5253_v2, %v1039_v60  ;;  %v5260_v60 = vrot.slane %v3423_v20, 6  ;;  %v5263_v48 = vrot.slane %v2947_v34, 5  ;;  %v5264_v55 = vrot.slane %v3221_v15, 5 }
 0x15f   : > { %5250 = vst [vmem:[#allocation27_spill] sm:$0xff] %v3485_v44  ;;  %v3516_v4 = vsel %vm1059_vm7, %v5255_v8, %v5254_v54  ;;  %v3546_v13 = vstv %s3297_s21  ;;  %v3551_v14 = vadd.f32 %v3350_v26, %v404_v40  ;;  %s3563_s21 = sld [smem:[#allocation5 + $0x5c]]  ;;  %v3571_v26 = vstv %s3310_s24 }
 0x160   : > { %5256 = vst [vmem:[#allocation28_spill] sm:$0xff] %v3516_v4  ;;  %v3535_v2 = vsel %vm1203_vm9, %v5261_v25, %v5260_v60  ;;  %v3542_v30 = vsel %vm1059_vm7, %v5264_v55, %v5263_v48  ;;  %v3561_v54 = vmul.f32 %v3546_v13, %v2856_v7  ;;  %v1659_v40 = vmul.f32 %v3470_v46, %v3509_v35  ;;  %s3606_s24 = sld [smem:[#allocation5 + $0x5f]] }
 0x161   : > { %5257 = vst [vmem:[#allocation29_spill] sm:$0xff] %v3519_v9  ;;  %v3588_v60 = vstv %s3348_s26  ;;  %v3591_v25 = vstv %s3371_s27  ;;  %v1199_v48 = vmul.f32 %v3546_v13, %v2889_v31  ;;  %v3598_v33 = vstv %s3384_s28  ;;  %s3783_s26 = sld [smem:[#allocation5 + $0x5b]] }
 0x162   : > { %5258 = vst [vmem:[#allocation30_spill] sm:$0xff] %v3522_v32  ;;  %v3601_v34 = vstv %s3399_s29  ;;  %v3604_v15 = vstv %s3409_s30  ;;  %v1666_v49 = vrot.slane %v1659_v40, 2  ;;  %v3613_v31 = vstv %s3426_s8  ;;  %s4059_s27 = sld [smem:[#allocation5 + $0x2f]] }
 0x163   : > { %5259 = vst [vmem:[#allocation31_spill] sm:$0xff] %v3526_v39  ;;  %959 = vrot.lane.b32.xlu1 %v3318_v52, %s2718_s6  ;;  %938 = vrot.lane.b32.xlu2 %v3343_v18, %s2719_s7  ;;  %v3568_v52 = vstv %s3299_s23  ;;  %v3574_v18 = vstv %s3325_s5  ;;  %s3595_s23 = sld [smem:[#allocation5 + $0x60]]  ;;  %v5279_v40 = vrot.slane %v3485_v44, 2  ;;  %v405_v10 = vadd.f32 %v401_v58, %v3307_v0  ;;  %s5302_s5 = smov 123  }
 0x164   : > { %5262 = vst [vmem:[#allocation32_spill] sm:$0xff] %v3535_v2  ;;  %900 = vrot.lane.b32.xlu0 %v3323_v57, %s2723_s20  ;;  %v3585_v57 = vstv %s3335_s25  ;;  %v3616_v46 = vstv %s3437_s9  ;;  %v3631_v20 = vstv %s3472_s13  ;;  %v3643_v59 = vmul.f32 %v3568_v52, %v3439_v42  ;;  %s5303_s25 = smov 124   ;;  %s4066_s28 = sld [smem:[#allocation5 + $0x2d]] }
 0x165   : > { %5265 = vst [vmem:[#allocation33_spill] sm:$0xff] %v3542_v30  ;;  %v3580_v7 = vpop.permute.xlu1 %454  ;;  %v3582_v8 = vpop.permute.xlu2 %530  ;;  %v3627_v36 = vsel %vm628_vm6, %v5279_v40, %v1666_v49  ;;  %v3634_v38 = vstv %s3487_s16  ;;  %v3647_v49 = vmul.f32 %v3571_v26, %v3439_v42  ;;  %v3650_v40 = vstv %s3507_s2  ;;  %s4114_s29 = sld [smem:[#allocation5 + $0x32]] }
 0x166   : > { %5266 = vst [vmem:[#allocation34_spill] sm:$0xff] %v3546_v13  ;;  %v427_v55 = vpop.permute.xlu0 %426  ;;  %v1207_v13 = vrot.slane %v1199_v48, 6  ;;  %v5283_v48 = vrot.slane %v3561_v54, 6  ;;  %v3653_v0 = vstv %s3528_s19  ;;  %v3661_v58 = vmul.f32 %v3574_v18, %v3439_v42  ;;  %s3715_s19 = sld [smem:[#allocation5 + $0x46]] }
 0x167   : > { %5267 = vst [vmem:[#allocation35_spill] sm:$0xff] %v3561_v54  ;;  %v3689_v54 = vstv %s3563_s21  ;;  %v419_v44 = vadd.f32 %v3214_v41, %v405_v10  ;;  %v3701_v56 = vstv %s3578_s17  ;;  %v3710_v10 = vmul.f32 %v3610_v12, %v3439_v42  ;;  %s3741_s17 = sld [smem:[#allocation5 + $0x4d]] }
 0x168   : > { %5268 = vst [vmem:[#allocation36_spill] sm:$0xff] %v3568_v52  ;;  %v3639_v39 = vsel %vm1203_vm9, %v5283_v48, %v1207_v13  ;;  %v3665_v13 = vmul.f32 %v3585_v57, %v3439_v42  ;;  %v3669_v48 = vmul.f32 %v3588_v60, %v3439_v42  ;;  %v3713_v41 = vstv %s3606_s24  ;;  %s2572_s30 = sld [smem:[#allocation5 + $0x30]] }
 0x169   : > { %5269 = vst [vmem:[#allocation37_spill] sm:$0xff] %v3571_v26  ;;  %v3704_v30 = vstv %s3595_s23  ;;  %v3722_v9 = vmul.f32 %v3613_v31, %v3439_v42  ;;  %v3729_v1 = vmul.f32 %v3616_v46, %v3439_v42  ;;  %v3735_v32 = vmul.f32 %v3619_v53, %v3439_v42  ;;  %s4159_s8 = sld [smem:[#allocation5 + $0x33]] }
 0x16a   : > { %5270 = vst [vmem:[#allocation38_spill] sm:$0xff] %v3574_v18  ;;  %v432_v4 = vadd.f32 %v427_v55, %v3551_v14  ;;  %v3747_v21 = vmul.f32 %v3631_v20, %v3439_v42  ;;  %v3762_v55 = vmul.f32 %v3650_v40, %v3439_v42  ;;  %v3766_v27 = vmul.f32 %v3653_v0, %v3439_v42  ;;  %s2581_s9 = sld [smem:[#allocation5 + $0x39]] }
 0x16b   : > { %5271 = vst [vmem:[#allocation39_spill] sm:$0xff] %v3582_v8  ;;  %982 = vrot.lane.b32.xlu1 %v3346_v16, %s2720_s11  ;;  %961 = vrot.lane.b32.xlu2 %v3374_v22, %s2718_s6  ;;  %v3678_v16 = vmul.f32 %v3591_v25, %v3439_v42  ;;  %v3682_v22 = vmul.f32 %v3598_v33, %v3439_v42  ;;  %s4189_s13 = sld [smem:[#allocation5 + $0x34]] }
 0x16c   : > { %5272 = vst [vmem:[#allocation40_spill] sm:$0xff] %v3585_v57  ;;  %940 = vrot.lane.b32.xlu0 %v3387_v23, %s2719_s7  ;;  %v3698_v23 = vmul.f32 %v3604_v15, %v3439_v42  ;;  %v3739_v8 = vmul.f32 %v3622_v50, %v3439_v42  ;;  %v1924_v37 = vmul.f32 %v3585_v57, %v3509_v35  ;;  %s4195_s16 = sld [smem:[#allocation5 + $0x3c]] }
 0x16d   : > { %5273 = vst [vmem:[#allocation41_spill] sm:$0xff] %v3588_v60  ;;  %v3692_v29 = vpop.permute.xlu1 %470  ;;  %v3694_v43 = vpop.permute.xlu2 %570  ;;  %s4206_s2 = sld [smem:[#allocation5 + $0x3a]] }
 0x16e   : > { %5274 = vst [vmem:[#allocation42_spill] sm:$0xff] %v3591_v25  ;;  %v443_v2 = vpop.permute.xlu0 %442  ;;  %s4228_s21 = sld [smem:[#allocation5 + $0x37]] }
 0x16f   : > { %5275 = vst [vmem:[#allocation43_spill] sm:$0xff] %v3598_v33  ;;  %s4233_s23 = sld [smem:[#allocation5 + $0x40]] }
 0x170   : > { %5276 = vst [vmem:[#allocation44_spill] sm:$0xff] %v3604_v15  ;;  %s4241_s24 = sld [smem:[#allocation5 + $0x3d]] }
 0x171   : > { %5280 = vst [vmem:[#allocation47_spill] sm:$0xff] %v3627_v36  ;;  %v3686_v36 = vmul.f32 %v3601_v34, %v3439_v42 }
 0x172   : > { %5281 = vst [vmem:[#allocation48_spill] sm:$0xff] %v3631_v20 }
 0x173   : > { %5282 = vst [vmem:[#allocation49_spill] sm:$0xff] %v3634_v38  ;;  %1022 = vrot.lane.b32.xlu1 %v3359_v19, %s5302_s5  ;;  %1001 = vrot.lane.b32.xlu2 %v3394_v17, %s5303_s25  ;;  %v3777_v17 = vmul.f32 %v3689_v54, %v3439_v42 }
 0x174   : > { %5284 = vst [vmem:[#allocation50_spill] sm:$0xff] %v3639_v39  ;;  %v3672_v39 = vstv %s3548_s18  ;;  %s3753_s18 = sld [smem:[#allocation5 + $0x54]]  ;;  %980 = vrot.lane.b32.xlu0 %v3364_v24, %s2720_s11 }
 0x175   : > { %5285 = vst [vmem:[#allocation51_spill] sm:$0xff] %v3643_v59  ;;  %v3773_v19 = vmul.f32 %v3672_v39, %v3439_v42  ;;  %v3785_v14 = vpop.permute.xlu1 %528  ;;  %v3787_v24 = vpop.permute.xlu2 %593 }
 0x176   : > { %5286 = vst [vmem:[#allocation52_spill] sm:$0xff] %v3650_v40  ;;  %v3793_v40 = vmul.f32 %v3704_v30, %v3439_v42 }
 0x177   : > { %5287 = vst [vmem:[#allocation53_spill] sm:$0xff] %v3653_v0 }
 0x178   : > { %5288 = vst [vmem:[#allocation54_spill] sm:$0xff] %v3661_v58 }
 0x179   : > { %5289 = vst [vmem:[#allocation55_spill] sm:$0xff] %v3665_v13 }
 0x17a   : > { %5290 = vst [vmem:[#allocation56_spill] sm:$0xff] %v3672_v39  ;;  %v3797_v39 = vmul.f32 %v3713_v41, %v3439_v42 }
 0x17b   : > { %5291 = vst [vmem:[#allocation57_spill] sm:$0xff] %v3686_v36  ;;  %v3828_v36 = vstv %s3753_s18  ;;  %1045 = vrot.lane.b32.xlu1 %v3454_v3, %s2723_s20  ;;  %1024 = vrot.lane.b32.xlu2 %v3462_v28, %s5302_s5  ;;  %s4283_s18 = sld [smem:[#allocation5 + $0x41]] }
 0x17c   : > { %5292 = vst [vmem:[#allocation58_spill] sm:$0xff] %v3689_v54  ;;  %1003 = vrot.lane.b32.xlu0 %v3477_v47, %s5303_s25  ;;  %v3849_v28 = vmul.f32 %v3828_v36, %v3439_v42  ;;  %v5322_v47 = vrot.slane %v3661_v58, 3 }
 0x17d   : > { %5293 = vst [vmem:[#allocation59_spill] sm:$0xff] %v3694_v43  ;;  %v433_v43 = vadd.f32 %v3449_v6, %v419_v44  ;;  %v3751_v6 = vmul.f32 %v3634_v38, %v3439_v42 }
 0x17e   : > { %5294 = vst [vmem:[#allocation60_spill] sm:$0xff] %v3701_v56 }
 0x17f   : > { %5295 = vst [vmem:[#allocation61_spill] sm:$0xff] %v3704_v30  ;;  %v447_v44 = vadd.f32 %v443_v2, %v433_v43  ;;  %v3781_v2 = vmul.f32 %v3701_v56, %v3439_v42  ;;  %v446_v56 = vadd.f32 %v3272_v61, %v432_v4  ;;  %v3825_v4 = vstv %s3741_s17  ;;  %s4277_s17 = sld [smem:[#allocation5 + $0x42]] }
 0x180   : > { %5296 = vst [vmem:[#allocation62_spill] sm:$0xff] %v3713_v41  ;;  %v3845_v3 = vmul.f32 %v3825_v4, %v3439_v42 }
 0x181   : > { %5297 = vst [vmem:[#allocation63_spill] sm:$0xff] %v3722_v9  ;;  %v469_v9 = vpop.permute.xlu0 %468  ;;  %v461_v43 = vadd.f32 %v3352_v51, %v447_v44  ;;  %v1802_v44 = vmul.f32 %v3574_v18, %v3509_v35  ;;  %v460_v61 = vadd.f32 %v3580_v7, %v446_v56  ;;  %v5317_v56 = vrot.slane %v3643_v59, 3 }
 0x182   : > { %5298 = vst [vmem:[#allocation64_spill] sm:$0xff] %v3735_v32 }
 0x183   : > { %5299 = vst [vmem:[#allocation65_spill] sm:$0xff] %v3739_v8  ;;  %v475_v41 = vadd.f32 %v3692_v29, %v461_v43  ;;  %v1809_v18 = vrot.slane %v1802_v44, 3  ;;  %v3852_v29 = vstv %s3783_s26  ;;  %v3856_v43 = vpop.permute.xlu2 %651  ;;  %v5324_v44 = vrot.slane %v3665_v13, 4  ;;  %1103 = vrot.lane.b32.xlu1 %v3495_v45, %s2718_s6  ;;  %1082 = vrot.lane.b32.xlu2 %v3500_v62, %s2719_s7  ;;  %s2586_s26 = sld [smem:[#allocation5 + $0x3e]] }
 0x184   : > { %5300 = vst [vmem:[#allocation66_spill] sm:$0xff] %v3747_v21  ;;  %v3870_v51 = vmul.f32 %v3852_v29, %v3439_v42  ;;  %1043 = vrot.lane.b32.xlu0 %v3505_v5, %s2723_s20  ;;  %v5339_v45 = vrot.slane %v3729_v1, 5  ;;  %v1966_v62 = vmul.f32 %v3601_v34, %v3509_v35  ;;  %v2046_v5 = vmul.f32 %v3613_v31, %v3509_v35 }
 0x185   : > { %5301 = vst [vmem:[#allocation67_spill] sm:$0xff] %v3751_v6 }
 0x186   : > { %5304 = vst [vmem:[#allocation68_spill] sm:$0xff] %v3762_v55 }
 0x187   : > { %5305 = vst [vmem:[#allocation69_spill] sm:$0xff] %v3766_v27 }
 0x188   : > { %5306 = vst [vmem:[#allocation70_spill] sm:$0xff] %v3773_v19 }
 0x189   : > { %5307 = vst [vmem:[#allocation71_spill] sm:$0xff] %v3777_v17 }
 0x18a   : > { %5308 = vst [vmem:[#allocation72_spill] sm:$0xff] %v3781_v2 }
 0x18b   : > { %5309 = vst [vmem:[#allocation73_spill] sm:$0xff] %v3785_v14  ;;  %v1844_v14 = vmul.f32 %v3568_v52, %v3509_v35  ;;  %v1931_v52 = vrot.slane %v1924_v37, 4  ;;  %v3854_v37 = vpop.permute.xlu1 %551 }
 0x18c   : > { %5310 = vst [vmem:[#allocation74_spill] sm:$0xff] %v3787_v24  ;;  %v3803_v24 = vstv %s3715_s19  ;;  %s4251_s19 = sld [smem:[#allocation5 + $0x3b]] }
 0x18d   : > { %5311 = vst [vmem:[#allocation75_spill] sm:$0xff] %v3793_v40  ;;  %v3810_v30 = vmul.f32 %v3803_v24, %v3439_v42  ;;  %v1851_v32 = vrot.slane %v1844_v14, 3  ;;  %v474_v14 = vadd.f32 %v469_v9, %v460_v61  ;;  %v1882_v9 = vmul.f32 %v3591_v25, %v3509_v35 }
 0x18e   : > { %5312 = vst [vmem:[#allocation76_spill] sm:$0xff] %v3797_v39  ;;  %v1823_v61 = vmul.f32 %v3571_v26, %v3509_v35 }
 0x18f   : > { %5313 = vst [vmem:[#allocation77_spill] sm:$0xff] %v3803_v24  ;;  %v3841_v7 = vsel %vm772_vm8, %v5317_v56, %v1851_v32  ;;  %v3861_v32 = vsel %vm772_vm8, %v5322_v47, %v1809_v18  ;;  %v3866_v56 = vsel %vm5215_vm0, %v5324_v44, %v1931_v52  ;;  %v1987_v18 = vmul.f32 %v3598_v33, %v3509_v35 }
 0x190   : > { %5314 = vst [vmem:[#allocation78_spill] sm:$0xff] %v3810_v30  ;;  %v1945_v47 = vmul.f32 %v3604_v15, %v3509_v35  ;;  %v493_v52 = vadd.f32 %v3490_v11, %v475_v41  ;;  %v1903_v44 = vmul.f32 %v3588_v60, %v3509_v35  ;;  %v1889_v13 = vrot.slane %v1882_v9, 4 }
 0x191   : > { %5315 = vst [vmem:[#allocation79_spill] sm:$0xff] %v3825_v4  ;;  %v1830_v25 = vrot.slane %v1823_v61, 3  ;;  %v1994_v57 = vrot.slane %v1987_v18, 4  ;;  %v492_v33 = vadd.f32 %v3435_v63, %v474_v14  ;;  %v5327_v11 = vrot.slane %v3678_v16, 4 }
 0x192   : > { %5316 = vst [vmem:[#allocation80_spill] sm:$0xff] %v3828_v36  ;;  %v1952_v58 = vrot.slane %v1945_v47, 4  ;;  %v1910_v59 = vrot.slane %v1903_v44, 4  ;;  %v5329_v60 = vrot.slane %v3647_v49, 3  ;;  %v5331_v9 = vrot.slane %v3682_v22, 4 }
 0x193   : > { %5318 = vst [vmem:[#allocation81_spill] sm:$0xff] %v3841_v7  ;;  %v510_v7 = vpop.permute.xlu0 %509  ;;  %v3891_v41 = vsel %vm5215_vm0, %v5327_v11, %v1889_v13  ;;  %v5333_v63 = vrot.slane %v3698_v23, 4  ;;  %v5337_v13 = vrot.slane %v3710_v10, 5  ;;  %v3936_v18 = vpop.permute.xlu1 %591  ;;  %v2168_v47 = vmul.f32 %v3689_v54, %v3509_v35 }
 0x194   : > { %5319 = vst [vmem:[#allocation82_spill] sm:$0xff] %v3845_v3  ;;  %v3901_v61 = vsel %vm5215_vm0, %v5331_v9, %v1994_v57  ;;  %v1973_v11 = vrot.slane %v1966_v62, 4  ;;  %v2053_v57 = vrot.slane %v2046_v5, 5  ;;  %v5347_v62 = vrot.slane %v3751_v6, 5 }
 0x195   : > { %5320 = vst [vmem:[#allocation83_spill] sm:$0xff] %v3849_v28  ;;  %v3906_v14 = vsel %vm5215_vm0, %v5333_v63, %v1952_v58  ;;  %v4246_v6 = vstv %s4195_s16  ;;  %s2595_s16 = sld [smem:[#allocation5 + $0x47]] }
 0x196   : > { %5321 = vst [vmem:[#allocation84_spill] sm:$0xff] %v3852_v29 }
 0x197   : > { %5323 = vst [vmem:[#allocation85_spill] sm:$0xff] %v3861_v32  ;;  %v2025_v32 = vmul.f32 %v3616_v46, %v3509_v35 }
 0x198   : > { %5325 = vst [vmem:[#allocation86_spill] sm:$0xff] %v3866_v56  ;;  %v2067_v56 = vmul.f32 %v3610_v12, %v3509_v35  ;;  %v3896_v12 = vsel %vm772_vm8, %v5329_v60, %v1830_v25  ;;  %v5335_v60 = vrot.slane %v3669_v48, 4 }
 0x199   : > { %5326 = vst [vmem:[#allocation87_spill] sm:$0xff] %v3870_v51  ;;  %v2032_v15 = vrot.slane %v2025_v32, 5  ;;  %v514_v32 = vadd.f32 %v510_v7, %v493_v52  ;;  %v2088_v7 = vmul.f32 %v3634_v38, %v3509_v35  ;;  %v2109_v52 = vmul.f32 %v3631_v20, %v3509_v35 }
 0x19a   : > { %v2074_v26 = vrot.slane %v2067_v56, 5  ;;  %5328 = vst [vmem:[#allocation88_spill] sm:$0xff] %v3891_v41  ;;  %v3915_v25 = vsel %vm5215_vm0, %v5335_v60, %v1910_v59  ;;  %v2130_v59 = vmul.f32 %v3622_v50, %v3509_v35  ;;  %v1436_v60 = vmul.f32 %v3619_v53, %v3509_v35 }
 0x19b   : > { %5330 = vst [vmem:[#allocation89_spill] sm:$0xff] %v3896_v12  ;;  %v3928_v58 = vsel %vm1059_vm7, %v5339_v45, %v2032_v15  ;;  %v2210_v15 = vmul.f32 %v3653_v0, %v3509_v35  ;;  %v3948_v44 = vpop.permute.xlu0 %549  ;;  %v2095_v63 = vrot.slane %v2088_v7, 5  ;;  %v5345_v12 = vrot.slane %v3739_v8, 5 }
 0x19c   : > { %5332 = vst [vmem:[#allocation90_spill] sm:$0xff] %v3901_v61  ;;  %v3921_v56 = vsel %vm1059_vm7, %v5337_v13, %v2074_v26  ;;  %v3938_v26 = vpop.permute.xlu2 %674  ;;  %v2137_v9 = vrot.slane %v2130_v59, 5  ;;  %v5341_v13 = vld [vmem:[#allocation39_spill] sm:$0xff]  ;;  %v2116_v7 = vrot.slane %v2109_v52, 5  ;;  %v4328_v38 = vstv %s4277_s17 }
 0x19d   : > { %5334 = vst [vmem:[#allocation91_spill] sm:$0xff] %v3906_v14  ;;  %v535_v45 = vadd.f32 %v5341_v13, %v514_v32  ;;  %v3966_v59 = vsel %vm1059_vm7, %v5347_v62, %v2095_v63  ;;  %v5349_v32 = vld [vmem:[#allocation23_spill] sm:$0xff]  ;;  %v5357_v63 = vrot.slane %v3747_v21, 5  ;;  %v5359_v62 = vld [vmem:[#allocation60_spill] sm:$0xff] }
 0x19e   : > { %5336 = vst [vmem:[#allocation92_spill] sm:$0xff] %v3915_v25  ;;  %v5342_v25 = vld [vmem:[#allocation57_spill] sm:$0xff]  ;;  %v3961_v41 = vsel %vm1059_vm7, %v5345_v12, %v2137_v9  ;;  %v513_v5 = vadd.f32 %v5349_v32, %v492_v33  ;;  %v5355_v12 = vrot.slane %v3777_v17, 6  ;;  %v1443_v33 = vrot.slane %v1436_v60, 1  ;;  %v5360_v32 = vld [vmem:[#allocation62_spill] sm:$0xff] }
 0x19f   : > { %5338 = vst [vmem:[#allocation93_spill] sm:$0xff] %v3921_v56  ;;  %v2175_v56 = vrot.slane %v2168_v47, 6  ;;  %v5343_v14 = vrot.slane %v5342_v25, 4  ;;  %v3987_v52 = vsel %vm1059_vm7, %v5357_v63, %v2116_v7  ;;  %v5364_v60 = vld [vmem:[#allocation61_spill] sm:$0xff] }
 0x1a0   : > { %5340 = vst [vmem:[#allocation94_spill] sm:$0xff] %v3928_v58  ;;  %v2217_v58 = vrot.slane %v2210_v15, 6  ;;  %v5350_v15 = vld [vmem:[#allocation63_spill] sm:$0xff]  ;;  %v2252_v63 = vmul.f32 %v5364_v60, %v3509_v35  ;;  %v1722_v60 = vmul.f32 %v3803_v24, %v3509_v35  ;;  %v5374_v24 = vrot.slane %v3773_v19, 6 }
 0x1a1   : > { %v3956_v61 = vsel %vm5215_vm0, %v5343_v14, %v1973_v11  ;;  %5346 = vst [vmem:[#allocation57_spill] sm:$0xff] %v3961_v41  ;;  %v5351_v47 = vrot.slane %v5350_v15, 5  ;;  %v5353_v14 = vrot.slane %v3766_v27, 6  ;;  %v3982_v9 = vsel %vm1203_vm9, %v5355_v12, %v2175_v56  ;;  %v5363_v12 = vld [vmem:[#allocation56_spill] sm:$0xff]  ;;  %v615_v41 = vpop.permute.xlu1 %614 }
 0x1a2   : > { %5344 = vst [vmem:[#allocation39_spill] sm:$0xff] %v3956_v61  ;;  %v556_v56 = vadd.f32 %v3854_v37, %v535_v45  ;;  %v5369_v37 = vld [vmem:[#allocation52_spill] sm:$0xff]  ;;  %v4165_v19 = vstv %s2572_s30  ;;  %s2592_s30 = sld [smem:[#allocation5 + $0x44]] }
 0x1a3   : > { %5348 = vst [vmem:[#allocation95_spill] sm:$0xff] %v3966_v59  ;;  %v3972_v13 = vsel %vm1059_vm7, %v5351_v47, %v2053_v57  ;;  %v3977_v11 = vsel %vm1203_vm9, %v5353_v14, %v2217_v58  ;;  %v2273_v57 = vmul.f32 %v5359_v62, %v3509_v35  ;;  %v2231_v47 = vmul.f32 %v5360_v32, %v3509_v35  ;;  %v5361_v58 = vld [vmem:[#allocation28_spill] sm:$0xff]  ;;  %v5362_v14 = vld [vmem:[#allocation29_spill] sm:$0xff]  ;;  %v573_v62 = vpop.permute.xlu0 %572 }
 0x1a4   : > { %5352 = vst [vmem:[#allocation23_spill] sm:$0xff] %v3972_v13  ;;  %1145 = vrot.lane.b32.xlu1 %v5361_v58, %s5303_s25  ;;  %1105 = vrot.lane.b32.xlu2 %v5362_v14, %s2718_s6  ;;  %v1579_v45 = vmul.f32 %v5369_v37, %v3509_v35  ;;  %v4012_v61 = vpop.permute.xlu2 %714  ;;  %v2259_v32 = vrot.slane %v2252_v63, 6  ;;  %v577_v63 = vadd.f32 %v573_v62, %v556_v56  ;;  %v5380_v56 = vld [vmem:[#allocation74_spill] sm:$0xff] }
 0x1a5   : > { %5354 = vst [vmem:[#allocation63_spill] sm:$0xff] %v3977_v11  ;;  %v5366_v11 = vld [vmem:[#allocation64_spill] sm:$0xff]  ;;  %v2280_v59 = vrot.slane %v2273_v57, 6  ;;  %v2238_v14 = vrot.slane %v2231_v47, 6  ;;  %v5372_v57 = vrot.slane %v3797_v39, 6  ;;  %v2151_v62 = vmul.f32 %v3852_v29, %v3509_v35 }
 0x1a6   : > { %5356 = vst [vmem:[#allocation96_spill] sm:$0xff] %v3982_v9  ;;  %v2189_v9 = vmul.f32 %v5363_v12, %v3509_v35  ;;  %v5367_v13 = vrot.slane %v5366_v11, 1  ;;  %v4334_v11 = vstv %s2586_s26 }
 0x1a7   : > { %5358 = vst [vmem:[#allocation97_spill] sm:$0xff] %v3987_v52  ;;  %v5365_v52 = vld [vmem:[#allocation30_spill] sm:$0xff]  ;;  %v4026_v47 = vsel %vm1203_vm9, %v5372_v57, %v2238_v14 }
 0x1a8   : > { %1084 = vrot.lane.b32.xlu0 %v5365_v52, %s2719_s7  ;;  %v4008_v58 = vsel %vm484_vm5, %v5367_v13, %v1443_v33  ;;  %v2196_v7 = vrot.slane %v2189_v9, 6  ;;  %v1865_v52 = vmul.f32 %v3825_v4, %v3509_v35  ;;  %v5370_v13 = vrot.slane %v3781_v2, 6  ;;  %5373 = vst [vmem:[#allocation30_spill] sm:$0xff] %v4026_v47 }
 0x1a9   : > { %5368 = vst [vmem:[#allocation28_spill] sm:$0xff] %v4008_v58  ;;  %v1586_v58 = vrot.slane %v1579_v45, 2  ;;  %v2008_v9 = vmul.f32 %v3828_v36, %v3509_v35  ;;  %v5376_v2 = vrot.slane %v3793_v40, 6  ;;  %v598_v36 = vadd.f32 %v5380_v56, %v577_v63  ;;  %v5392_v56 = vld [vmem:[#allocation73_spill] sm:$0xff] }
 0x1aa   : > { %v4021_v33 = vsel %vm1203_vm9, %v5370_v13, %v2280_v59  ;;  %v4033_v4 = vsel %vm1203_vm9, %v5374_v24, %v2196_v7  ;;  %v1729_v13 = vrot.slane %v1722_v60, 3  ;;  %v1872_v45 = vrot.slane %v1865_v52, 4  ;;  %v5381_v24 = vld [vmem:[#allocation8_spill] sm:$0xff] }
 0x1ab   : > { %5371 = vst [vmem:[#allocation29_spill] sm:$0xff] %v4021_v33  ;;  %v4038_v59 = vsel %vm1203_vm9, %v5376_v2, %v2259_v32  ;;  %v5378_v33 = vrot.slane %v3762_v55, 2  ;;  %v2015_v57 = vrot.slane %v2008_v9, 5  ;;  %v5382_v7 = vrot.slane %v5381_v24, 5  ;;  %v4053_v32 = vld [vmem:[#allocation2 + $0x8] sm:$0xff]  ;;  %v5385_v60 = vld [vmem:[#allocation16_spill] sm:$0xff] }
 0x1ac   : > { %5375 = vst [vmem:[#allocation98_spill] sm:$0xff] %v4033_v4  ;;  %v5383_v4 = vld [vmem:[#allocation14_spill] sm:$0xff]  ;;  %v2158_v63 = vrot.slane %v2151_v62, 6  ;;  %v534_v24 = vadd.f32 %v5392_v56, %v513_v5 }
 0x1ad   : > { %5377 = vst [vmem:[#allocation99_spill] sm:$0xff] %v4038_v59  ;;  %v4043_v14 = vsel %vm628_vm6, %v5378_v33, %v1586_v58  ;;  %v5384_v47 = vrot.slane %v5383_v4, 5  ;;  %v4057_v59 = vmul.f32 %v4053_v32, %v5385_v60  ;;  %v5386_v58 = vrot.slane %v3810_v30, 3 }
 0x1ae   : > { %5379 = vst [vmem:[#allocation100_spill] sm:$0xff] %v4043_v14  ;;  %v5388_v4 = vrot.slane %v3845_v3, 4  ;;  %v613_v14 = vpop.permute.xlu0 %612  ;;  %v4119_v3 = vstv %s4059_s27  ;;  %s2552_s27 = sld [smem:[#allocation5 + $0x1c]] }
 0x1af   : > { %v1121_v2 = vsel %vm1059_vm7, %v5384_v47, %v5382_v7  ;;  %v4064_v35 = vsel %vm772_vm8, %v5386_v58, %v1729_v13  ;;  %v5390_v47 = vrot.slane %v3849_v28, 5  ;;  %v5393_v13 = vld [vmem:[#allocation32_spill] sm:$0xff]  ;;  %v5394_v7 = vld [vmem:[#allocation33_spill] sm:$0xff]  ;;  %v5403_v28 = vld [vmem:[#allocation31_spill] sm:$0xff]  ;;  %v4129_v30 = vmul.f32 %v4053_v32, %v4119_v3 }
 0x1b0   : > { %5387 = vst [vmem:[#allocation74_spill] sm:$0xff] %v4064_v35  ;;  %v4072_v33 = vsel %vm5215_vm0, %v5388_v4, %v1872_v45  ;;  %1226 = vrot.lane.b32.xlu1 %v5393_v13, %s2719_s7  ;;  %1166 = vrot.lane.b32.xlu2 %v5394_v7, %s5302_s5  ;;  %v5395_v58 = vld [vmem:[#allocation17_spill] sm:$0xff]  ;;  %v619_v45 = vadd.f32 %v615_v41, %v598_v36  ;;  %v5399_v13 = vld [vmem:[#allocation24_spill] sm:$0xff]  ;;  %v4108_v35 = vpop.permute.xlu2 %737 }
 0x1b1   : > { %5389 = vst [vmem:[#allocation8_spill] sm:$0xff] %v4072_v33  ;;  %v4077_v9 = vsel %vm1059_vm7, %v5390_v47, %v2015_v57  ;;  %v4086_v52 = vmul.f32 %v4053_v32, %v5395_v58  ;;  %1124 = vrot.lane.b32.xlu0 %v1121_v2, %s2720_s11  ;;  %v4089_v4 = vld [vmem:[#allocation2] sm:$0xff]  ;;  %v5396_v57 = vld [vmem:[#allocation15_spill] sm:$0xff]  ;;  %v5401_v33 = vrot.slane %v3870_v51, 6  ;;  %v555_v41 = vadd.f32 %v3948_v44, %v534_v24  ;;  %v4106_v2 = vpop.permute.xlu1 %672 }
 0x1b2   : > { %5391 = vst [vmem:[#allocation14_spill] sm:$0xff] %v4077_v9  ;;  %v1278_v62 = vmul.f32 %v4089_v4, %v5396_v57  ;;  %v1236_v5 = vmul.f32 %v4089_v4, %v5385_v60  ;;  %v5397_v47 = vld [vmem:[#allocation26_spill] sm:$0xff]  ;;  %v5400_v9 = vrot.slane %v5399_v13, 2  ;;  %v1176_v29 = vmul.f32 %v4089_v4, %v5395_v58  ;;  %v5404_v24 = vld [vmem:[#allocation59_spill] sm:$0xff] }
 0x1b3   : > { %v5398_v56 = vrot.slane %v5397_v47, 2  ;;  %v4103_v36 = vsel %vm1203_vm9, %v5401_v33, %v2158_v63  ;;  %v5167_v33 = vrot.slane %v4086_v52, 5  ;;  %v5406_v27 = vrot.slane %v5399_v13, 2  ;;  %5411 = vst [vmem:[#allocation17_spill] sm:$0xff] %v4328_v38 }
 0x1b4   : > { %5402 = vst [vmem:[#allocation16_spill] sm:$0xff] %v4103_v36  ;;  %v1284_v63 = vrot.slane %v1278_v62, 6  ;;  %v1242_v44 = vrot.slane %v1236_v5, 6  ;;  %v576_v36 = vadd.f32 %v5404_v24, %v555_v41  ;;  %v1182_v51 = vrot.slane %v1176_v29, 5  ;;  %v5405_v41 = vld [vmem:[#allocation13_spill] sm:$0xff] }
 0x1b5   : > { %v633_v7 = vsel %vm628_vm6, %v5400_v9, %v5398_v56  ;;  %v5166_v9 = vrot.slane %v5403_v28, 6  ;;  %v5168_v56 = vrot.slane %v4057_v59, 6  ;;  %v4132_v62 = vstv %s4066_s28  ;;  %5413 = vst [vmem:[#allocation26_spill] sm:$0xff] %v4334_v11  ;;  %s2593_s28 = sld [smem:[#allocation5 + $0x45]] }
 0x1b6   : > { %v637_v47 = vadd.f32 %v633_v7, %v619_v45  ;;  %v1184_v29 = vsel %vm1059_vm7, %v1182_v51, %v5167_v33  ;;  %v4141_v5 = vmul.f32 %v4053_v32, %v4132_v62  ;;  %v597_v24 = vadd.f32 %v3936_v18, %v576_v36  ;;  %v654_v33 = vpop.permute.xlu0 %653 }
 0x1b7   : > { %v1286_v45 = vsel %vm1203_vm9, %v1284_v63, %v5166_v9  ;;  %v1244_v7 = vsel %vm1203_vm9, %v1242_v44, %v5168_v56  ;;  %v622_v63 = vmul.f32 %v4089_v4, %v5405_v41  ;;  %v1299_v44 = vmul.f32 %v4089_v4, %v4119_v3  ;;  %v4155_v9 = vld [vmem:[#allocation2 + $0x18] sm:$0xff] }
 0x1b8   : > { %1289 = vrot.lane.b32.xlu1 %v1286_v45, %s5303_s25  ;;  %1247 = vrot.lane.b32.xlu2 %v1244_v7, %s2718_s6  ;;  %v4149_v7 = vpop.permute.xlu2 %795  ;;  %v1257_v51 = vmul.f32 %v4089_v4, %v4132_v62  ;;  %v5175_v41 = vstv %s4114_s29  ;;  %v618_v56 = vadd.f32 %v613_v14, %v597_v24  ;;  %v5178_v39 = vrot.slane %v4141_v5, 6 }
 0x1b9   : > { %1187 = vrot.lane.b32.xlu0 %v1184_v29, %s2723_s20  ;;  %v696_v45 = vpop.permute.xlu1 %695  ;;  %v5180_v29 = vrot.slane %v4129_v30, 6  ;;  %v629_v18 = vrot.slane %v622_v63, 2  ;;  %v1305_v36 = vrot.slane %v1299_v44, 6  ;;  %v1350_v40 = vmul.f32 %v5175_v41, %v4155_v9 }
 0x1ba   : > { %v1263_v17 = vrot.slane %v1257_v51, 6  ;;  %v4180_v13 = vmul.f32 %v4053_v32, %v4165_v19  ;;  %v5176_v44 = vstv %s4153_s4  ;;  %v5177_v51 = vstv %s4159_s8 }
 0x1bb   : > { %v631_v54 = vsel %vm628_vm6, %v629_v18, %v5406_v27  ;;  %v1307_v14 = vsel %vm1203_vm9, %v1305_v36, %v5180_v29  ;;  %v1320_v27 = vmul.f32 %v4089_v4, %v4165_v19  ;;  %v4204_v41 = vstv %s2581_s9  ;;  %s2597_s9 = sld [smem:[#allocation5 + $0x49]] }
 0x1bc   : > { %v636_v24 = vadd.f32 %v631_v54, %v618_v56  ;;  %v1265_v63 = vsel %vm1203_vm9, %v1263_v17, %v5178_v39  ;;  %v658_v54 = vadd.f32 %v654_v33, %v637_v47  ;;  %v5179_v36 = vrot.slane %v4180_v13, 6 }
 0x1bd   : > { %v1392_v47 = vmul.f32 %v5176_v44, %v4155_v9  ;;  %v1364_v33 = vmul.f32 %v5177_v51, %v4155_v9  ;;  %v4221_v44 = vld [vmem:[#allocation2 + $0x10] sm:$0x3f]  ;;  %v5185_v39 = vstv %s4185_s12 }
 0x1be   : > { %v694_v17 = vpop.permute.xlu0 %693  ;;  %v657_v18 = vadd.f32 %v3856_v43, %v636_v24  ;;  %v4210_v43 = vmul.f32 %v4204_v41, %v3439_v42 }
 0x1c0   : > { %1354 = vrot.lane.b32.xlu1 %v1350_v40, %s2719_s7  ;;  %1310 = vrot.lane.b32.xlu2 %v1307_v14, %s5302_s5  ;;  %v4187_v56 = vpop.permute.xlu2 %818  ;;  %v1326_v14 = vrot.slane %v1320_v27, 6  ;;  %v678_v24 = vadd.f32 %v4106_v2, %v657_v18  ;;  %v765_v27 = vstv %s2545_s10  ;;  %s2596_s10 = sld [smem:[#allocation5 + $0x48]] }
 0x1c1   : > { %1268 = vrot.lane.b32.xlu0 %v1265_v63, %s2720_s11  ;;  %v736_v40 = vpop.permute.xlu1 %735  ;;  %v679_v63 = vadd.f32 %v3938_v26, %v658_v54  ;;  %v1451_v54 = vmul.f32 %v4204_v41, %v4155_v9  ;;  %v768_v51 = vmul.f32 %v4221_v44, %v765_v27  ;;  %v767_v29 = vmul.f32 %v4053_v32, %v765_v27 }
 0x1c2   : > { %v1328_v26 = vsel %vm1203_vm9, %v1326_v14, %v5179_v36  ;;  %v699_v2 = vadd.f32 %v694_v17, %v678_v24  ;;  %v5184_v14 = vstv %s4189_s13  ;;  %v766_v0 = vmul.f32 %v4089_v4, %v765_v27 }
 0x1c3   : > { %v1457_v17 = vrot.slane %v1451_v54, 1  ;;  %v776_v24 = vrot.slane %v768_v51, 3  ;;  %v5407_v27 = vrot.slane %v4210_v43, 1  ;;  %v4258_v51 = vmul.f32 %v4246_v6, %v3439_v42 }
 0x1c4   : > { %v720_v55 = vadd.f32 %v4012_v61, %v699_v2 }
 0x1c5   : > { %v1459_v54 = vsel %vm484_vm5, %v1457_v17, %v5407_v27  ;;  %5408 = vst [vmem:[#allocation73_spill] sm:$0xff] %v4258_v51 }
 0x1c8   : > { %1396 = vrot.lane.b32.xlu1 %v1392_v47, %s5303_s25  ;;  %1368 = vrot.lane.b32.xlu2 %v1364_v33, %s2718_s6  ;;  %v4224_v47 = vpop.permute.xlu2 %858  ;;  %v700_v33 = vadd.f32 %v696_v45, %v679_v63  ;;  %v1406_v45 = vmul.f32 %v5185_v39, %v4155_v9  ;;  %v1378_v63 = vmul.f32 %v5184_v14, %v4155_v9 }
 0x1c9   : > { %1331 = vrot.lane.b32.xlu0 %v1328_v26, %s2723_s20  ;;  %v759_v18 = vpop.permute.xlu1 %758  ;;  %v717_v26 = vpop.permute.xlu0 %716  ;;  %v741_v14 = vadd.f32 %v736_v40, %v720_v55 }
 0x1ca   : > { %v721_v12 = vadd.f32 %v717_v26, %v700_v33  ;;  %v4249_v33 = vstv %s4206_s2  ;;  %v774_v26 = vrot.slane %v767_v29, 3 }
 0x1cb   : > { %v4262_v61 = vmul.f32 %v4249_v33, %v3439_v42  ;;  %v1472_v29 = vmul.f32 %v4249_v33, %v4155_v9 }
 0x1cc   : > { %v742_v36 = vadd.f32 %v4108_v35, %v721_v12  ;;  %v1514_v35 = vmul.f32 %v4246_v6, %v4155_v9  ;;  %v777_v2 = vsel %vm772_vm8, %v774_v26, %v776_v24 }
 0x1cd   : > { %v5189_v39 = vrot.slane %v4262_v61, 1  ;;  %v1478_v37 = vrot.slane %v1472_v29, 1 }
 0x1ce   : > { %v763_v12 = vadd.f32 %v759_v18, %v742_v36  ;;  %v773_v18 = vrot.slane %v766_v0, 3  ;;  %v1520_v8 = vrot.slane %v1514_v35, 1  ;;  %v4289_v0 = vstv %s4241_s24 }
 0x1d0   : > { %1462 = vrot.lane.b32.xlu1 %v1459_v54, %s2719_s7  ;;  %1410 = vrot.lane.b32.xlu2 %v1406_v45, %s5302_s5  ;;  %v4272_v27 = vpop.permute.xlu2 %881  ;;  %v5190_v54 = vstv %s4228_s21  ;;  %v781_v36 = vadd.f32 %v777_v2, %v763_v12  ;;  %v775_v24 = vsel %vm772_vm8, %v773_v18, %v774_v26  ;;  %v4286_v12 = vstv %s4233_s23 }
 0x1d1   : > { %1382 = vrot.lane.b32.xlu0 %v1378_v63, %s2720_s11  ;;  %v817_v17 = vpop.permute.xlu1 %816  ;;  %v757_v45 = vpop.permute.xlu0 %756  ;;  %v5188_v63 = vrot.slane %v4258_v51, 1  ;;  %v1420_v55 = vmul.f32 %v5190_v54, %v4155_v9  ;;  %5409 = vst [vmem:[#allocation32_spill] sm:$0xff] %v4286_v12  ;;  %v4292_v2 = vstv %s4251_s19  ;;  %v1480_v26 = vsel %vm484_vm5, %v1478_v37, %v5189_v39 }
 0x1d2   : > { %v762_v21 = vadd.f32 %v757_v45, %v741_v14  ;;  %v4302_v35 = vmul.f32 %v4286_v12, %v3439_v42  ;;  %v4312_v29 = vmul.f32 %v4292_v2, %v3439_v42  ;;  %v1594_v37 = vmul.f32 %v4286_v12, %v4155_v9 }
 0x1d3   : > { %v1522_v14 = vsel %vm484_vm5, %v1520_v8, %v5188_v63  ;;  %v1535_v18 = vmul.f32 %v4289_v0, %v4155_v9  ;;  %v4332_v51 = vstv %s4283_s18 }
 0x1d4   : > { %v780_v40 = vadd.f32 %v775_v24, %v762_v21  ;;  %5410 = vst [vmem:[#allocation33_spill] sm:$0xff] %v4302_v35  ;;  %v4306_v21 = vmul.f32 %v4289_v0, %v3439_v42  ;;  %v5196_v39 = vrot.slane %v4302_v35, 2  ;;  %v1600_v54 = vrot.slane %v1594_v37, 2 }
 0x1d5   : > { %v1541_v12 = vrot.slane %v1535_v18, 1  ;;  %5412 = vst [vmem:[#allocation15_spill] sm:$0xff] %v4332_v51  ;;  %v1636_v37 = vmul.f32 %v4328_v38, %v4155_v9  ;;  %v1615_v18 = vmul.f32 %v4332_v51, %v4155_v9 }
 0x1d6   : > { %v801_v8 = vadd.f32 %v4149_v7, %v780_v40  ;;  %v5198_v7 = vrot.slane %v4306_v21, 1  ;;  %v5197_v40 = vrot.slane %v4312_v29, 1 }
 0x1d8   : > { %1525 = vrot.lane.b32.xlu1 %v1522_v14, %s5303_s25  ;;  %1483 = vrot.lane.b32.xlu2 %v1480_v26, %s2718_s6  ;;  %v4320_v24 = vpop.permute.xlu2 %938  ;;  %v1493_v14 = vmul.f32 %v4292_v2, %v4155_v9  ;;  %v822_v26 = vadd.f32 %v817_v17, %v801_v8  ;;  %v1602_v17 = vsel %vm628_vm6, %v1600_v54, %v5196_v39  ;;  %v1642_v39 = vrot.slane %v1636_v37, 2 }
 0x1d9   : > { %1424 = vrot.lane.b32.xlu0 %v1420_v55, %s2723_s20  ;;  %v840_v45 = vpop.permute.xlu1 %839  ;;  %v798_v63 = vpop.permute.xlu0 %797  ;;  %v4357_v8 = vmul.f32 %v4334_v11, %v3439_v42 }
 0x1da   : > { %v802_v55 = vadd.f32 %v798_v63, %v781_v36  ;;  %v1499_v50 = vrot.slane %v1493_v14, 1  ;;  %v1543_v36 = vsel %vm484_vm5, %v1541_v12, %v5198_v7  ;;  %v4344_v63 = vmul.f32 %v4328_v38, %v3439_v42 }
 0x1db   : > { %5416 = vst [vmem:[#allocation59_spill] sm:$0xff] %v4357_v8 }
 0x1dc   : > { %v823_v20 = vadd.f32 %v4187_v56, %v802_v55  ;;  %5414 = vst [vmem:[#allocation24_spill] sm:$0xff] %v4344_v63  ;;  %v4348_v56 = vmul.f32 %v4332_v51, %v3439_v42  ;;  %v1501_v54 = vsel %vm484_vm5, %v1499_v50, %v5197_v40  ;;  %v1556_v50 = vmul.f32 %v4334_v11, %v4155_v9  ;;  %v5417_v51 = vld [vmem:[#allocation11_spill] sm:$0xff] }
 0x1dd   : > { %v1621_v40 = vrot.slane %v1615_v18, 2  ;;  %v909_v18 = vstv %s2552_s27 }
 0x1de   : > { %5415 = vst [vmem:[#allocation31_spill] sm:$0xff] %v4348_v56  ;;  %v844_v12 = vadd.f32 %v840_v45, %v823_v20  ;;  %v5204_v20 = vrot.slane %v4348_v56, 2  ;;  %v1562_v38 = vrot.slane %v1556_v50, 1 }
 0x1e0   : > { %1605 = vrot.lane.b32.xlu1 %v1602_v17, %s2719_s7  ;;  %1546 = vrot.lane.b32.xlu2 %v1543_v36, %s5302_s5  ;;  %v4364_v55 = vpop.permute.xlu2 %961  ;;  %v5203_v36 = vrot.slane %v4344_v63, 2  ;;  %v1623_v11 = vsel %vm628_vm6, %v1621_v40, %v5204_v20  ;;  %v910_v20 = vmul.f32 %v4089_v4, %v909_v18 }
 0x1e1   : > { %1504 = vrot.lane.b32.xlu0 %v1501_v54, %s2720_s11  ;;  %v880_v14 = vpop.permute.xlu1 %879  ;;  %v838_v17 = vpop.permute.xlu0 %837  ;;  %v5205_v54 = vrot.slane %v4357_v8, 1 }
 0x1e2   : > { %v843_v45 = vadd.f32 %v838_v17, %v822_v26  ;;  %v1644_v35 = vsel %vm628_vm6, %v1642_v39, %v5203_v36  ;;  %v1136_v26 = vmul.f32 %v4221_v44, %v5417_v51  ;;  %v912_v39 = vmul.f32 %v4221_v44, %v909_v18 }
 0x1e3   : > { %v911_v51 = vmul.f32 %v4053_v32, %v909_v18  ;;  %v5423_v18 = vld [vmem:[#allocation10_spill] sm:$0xff] }
 0x1e4   : > { %v864_v7 = vadd.f32 %v4224_v47, %v843_v45  ;;  %v1564_v47 = vsel %vm484_vm5, %v1562_v38, %v5205_v54  ;;  %v1143_v45 = vrot.slane %v1136_v26, 5  ;;  %v919_v36 = vrot.slane %v912_v39, 4 }
 0x1e5   : > { %v4392_v38 = vstv %s2593_s28  ;;  %v917_v63 = vrot.slane %v911_v51, 4 }
 0x1e6   : > { %v885_v37 = vadd.f32 %v880_v14, %v864_v7  ;;  %5418 = vst [vmem:[#allocation13_spill] sm:$0xff] %v4392_v38  ;;  %v4394_v7 = vstv %s2592_s30  ;;  %v5420_v14 = vld [vmem:[#allocation20_spill] sm:$0xff]  ;;  %v4401_v26 = vmul.f32 %v4392_v38, %v3439_v42  ;;  %v1699_v39 = vmul.f32 %v4392_v38, %v4155_v9 }
 0x1e7   : > { %5419 = vst [vmem:[#allocation11_spill] sm:$0xff] %v4394_v7  ;;  %v4405_v32 = vmul.f32 %v4394_v7, %v3439_v42 }
 0x1e8   : > { %1647 = vrot.lane.b32.xlu1 %v1644_v35, %s2720_s11  ;;  %1626 = vrot.lane.b32.xlu2 %v1623_v11, %s2718_s6  ;;  %v4387_v17 = vpop.permute.xlu2 %1001  ;;  %v1705_v8 = vrot.slane %v1699_v39, 2 }
 0x1e9   : > { %1567 = vrot.lane.b32.xlu0 %v1564_v47, %s2723_s20  ;;  %v903_v50 = vpop.permute.xlu1 %902  ;;  %v861_v40 = vpop.permute.xlu0 %860  ;;  %v5421_v47 = vrot.slane %v5420_v14, 5 }
 0x1ea   : > { %v865_v35 = vadd.f32 %v861_v40, %v844_v12  ;;  %v1678_v40 = vmul.f32 %v4394_v7, %v4155_v9 }
 0x1eb   : > { %v1144_v54 = vsel %vm1059_vm7, %v5421_v47, %v1143_v45  ;;  %v920_v45 = vsel %vm5215_vm0, %v917_v63, %v919_v36 }
 0x1ec   : > { %v886_v11 = vadd.f32 %v4272_v27, %v865_v35  ;;  %v5422_v27 = vld [vmem:[#allocation9_spill] sm:$0xff]  ;;  %v1684_v7 = vrot.slane %v1678_v40, 2 }
 0x1ed   : > { %v5424_v35 = vld [vmem:[#allocation25_spill] sm:$0xff] }
 0x1ee   : > { %v907_v12 = vadd.f32 %v903_v50, %v886_v11  ;;  %v1657_v14 = vmul.f32 %v5424_v35, %v4155_v9  ;;  %v5211_v11 = vrot.slane %v4401_v26, 2 }
 0x1f0   : > { %1168 = vrot.lane.b32.xlu1 %v5422_v27, %s5302_s5  ;;  %1147 = vrot.lane.b32.xlu2 %v1144_v54, %s5303_s25  ;;  %v4417_v42 = vpop.permute.xlu2 %1024  ;;  %v924_v47 = vadd.f32 %v920_v45, %v907_v12  ;;  %v916_v54 = vrot.slane %v910_v20, 4  ;;  %v5212_v27 = vrot.slane %v4405_v32, 2  ;;  %v1663_v56 = vrot.slane %v1657_v14, 2 }
 0x1f1   : > { %1126 = vrot.lane.b32.xlu0 %v5423_v18, %s2720_s11  ;;  %v960_v51 = vpop.permute.xlu1 %959  ;;  %v901_v50 = vpop.permute.xlu0 %900  ;;  %v1707_v35 = vsel %vm628_vm6, %v1705_v8, %v5211_v11  ;;  %v1238_v12 = vmul.f32 %v4221_v44, %v5385_v60  ;;  %v1178_v8 = vmul.f32 %v4221_v44, %v5395_v58 }
 0x1f2   : > { %v906_v18 = vadd.f32 %v901_v50, %v885_v37  ;;  %v918_v38 = vsel %vm5215_vm0, %v916_v54, %v917_v63  ;;  %v1686_v20 = vsel %vm628_vm6, %v1684_v7, %v5212_v27  ;;  %v5425_v37 = vld [vmem:[#allocation12_spill] sm:$0xff]  ;;  %v1301_v27 = vmul.f32 %v4221_v44, %v4119_v3 }
 0x1f3   : > { %v1217_v63 = vmul.f32 %v4221_v44, %v5425_v37  ;;  %v1245_v50 = vrot.slane %v1238_v12, 6  ;;  %v4445_v37 = vstv %s2597_s9  ;;  %v5429_v12 = vld [vmem:[#allocation21_spill] sm:$0xff] }
 0x1f4   : > { %v923_v36 = vadd.f32 %v918_v38, %v906_v18  ;;  %v5426_v38 = vld [vmem:[#allocation27_spill] sm:$0xff] }
 0x1f5   : > { %v5427_v39 = vrot.slane %v5426_v38, 2  ;;  %v1224_v18 = vrot.slane %v1217_v63, 6  ;;  %v4448_v38 = vld [vmem:[#allocation2 + $0x20] sm:$0xff]  ;;  %v5430_v63 = vrot.slane %v5429_v12, 6 }
 0x1f6   : > { %v944_v7 = vadd.f32 %v4320_v24, %v923_v36  ;;  %v4452_v58 = vmul.f32 %v4448_v38, %v4445_v37  ;;  %v4454_v24 = vstv %s2596_s10  ;;  %v5428_v36 = vrot.slane %v4057_v59, 6 }
 0x1f7   : > { %v1665_v40 = vsel %vm628_vm6, %v1663_v56, %v5427_v39  ;;  %v4464_v39 = vmul.f32 %v4448_v38, %v4454_v24 }
 0x1f8   : > { %1710 = vrot.lane.b32.xlu1 %v1707_v35, %s2723_s20  ;;  %1689 = vrot.lane.b32.xlu2 %v1686_v20, %s5302_s5  ;;  %v4443_v45 = vpop.permute.xlu2 %1082  ;;  %v965_v14 = vadd.f32 %v960_v51, %v944_v7  ;;  %v1185_v20 = vrot.slane %v1178_v8, 5  ;;  %v1246_v51 = vsel %vm1203_vm9, %v5428_v36, %v1245_v50  ;;  %v1758_v50 = vmul.f32 %v4454_v24, %v4155_v9 }
 0x1f9   : > { %1668 = vrot.lane.b32.xlu0 %v1665_v40, %s5303_s25  ;;  %v983_v60 = vpop.permute.xlu1 %982  ;;  %v941_v54 = vpop.permute.xlu0 %940  ;;  %v5431_v40 = vrot.slane %v4086_v52, 5  ;;  %v1786_v36 = vrot.slane %v4452_v58, 3 }
 0x1fa   : > { %v945_v35 = vadd.f32 %v941_v54, %v924_v47  ;;  %v1225_v47 = vsel %vm1203_vm9, %v5430_v63, %v1224_v18  ;;  %v1779_v54 = vmul.f32 %v4445_v37, %v4155_v9  ;;  %v1764_v63 = vrot.slane %v1758_v50, 3 }
 0x1fb   : > { %v1186_v59 = vsel %vm1059_vm7, %v5431_v40, %v1185_v20 }
 0x1fc   : > { %v966_v56 = vadd.f32 %v4364_v55, %v945_v35  ;;  %v4466_v55 = vstv %s2595_s16  ;;  %v1785_v12 = vrot.slane %v1779_v54, 3  ;;  %v1259_v54 = vmul.f32 %v4221_v44, %v4132_v62 }
 0x1fd   : > { %v4475_v8 = vmul.f32 %v4448_v38, %v4466_v55  ;;  %v1737_v52 = vmul.f32 %v4466_v55, %v4155_v9 }
 0x1fe   : > { %v987_v7 = vadd.f32 %v983_v60, %v966_v56 }
 0x1ff   : > { %v5214_v56 = vrot.slane %v4475_v8, 3  ;;  %v1743_v40 = vrot.slane %v1737_v52, 3 }
 0x200   : > { %1249 = vrot.lane.b32.xlu1 %v1246_v51, %s2718_s6  ;;  %1228 = vrot.lane.b32.xlu2 %v1225_v47, %s2719_s7  ;;  %v4482_v35 = vpop.permute.xlu2 %1105  ;;  %v5213_v51 = vrot.slane %v4464_v39, 3 }
 0x201   : > { %1189 = vrot.lane.b32.xlu0 %v1186_v59, %s2723_s20  ;;  %v1023_v18 = vpop.permute.xlu1 %1022  ;;  %v981_v20 = vpop.permute.xlu0 %980  ;;  %v1787_v59 = vsel %vm772_vm8, %v1785_v12, %v1786_v36 }
 0x202   : > { %v986_v60 = vadd.f32 %v981_v20, %v965_v14  ;;  %v1766_v11 = vsel %vm772_vm8, %v1764_v63, %v5213_v51  ;;  %v1280_v14 = vmul.f32 %v4221_v44, %v5396_v57  ;;  %v1266_v63 = vrot.slane %v1259_v54, 6 }
 0x203   : > { %v5433_v51 = vrot.slane %v5403_v28, 6  ;;  %v5437_v28 = vld [vmem:[#allocation37_spill] sm:$0xff] }
 0x204   : > { %v1007_v47 = vadd.f32 %v4387_v17, %v986_v60  ;;  %v1745_v17 = vsel %vm772_vm8, %v1743_v40, %v5214_v56  ;;  %v1308_v60 = vrot.slane %v1301_v27, 6  ;;  %v1287_v57 = vrot.slane %v1280_v14, 6 }
 0x205   : > { %v5435_v27 = vrot.slane %v4141_v5, 6 }
 0x206   : > { %v1028_v50 = vadd.f32 %v1023_v18, %v1007_v47  ;;  %v1288_v62 = vsel %vm1203_vm9, %v5433_v51, %v1287_v57  ;;  %v5434_v18 = vld [vmem:[#allocation18_spill] sm:$0xff]  ;;  %v1821_v51 = vmul.f32 %v5437_v28, %v4155_v9 }
 0x207   : > { %v1053_v47 = vmul.f32 %v4089_v4, %v5434_v18  ;;  %v5439_v57 = vld [vmem:[#allocation22_spill] sm:$0xff] }
 0x208   : > { %1790 = vrot.lane.b32.xlu1 %v1787_v59, %s2720_s11  ;;  %1769 = vrot.lane.b32.xlu2 %v1766_v11, %s2718_s6  ;;  %v5432_v59 = vrot.slane %v4129_v30, 6  ;;  %v5436_v30 = vld [vmem:[#allocation36_spill] sm:$0xff]  ;;  %v1827_v18 = vrot.slane %v1821_v51, 3  ;;  %v1322_v51 = vmul.f32 %v4221_v44, %v4165_v19  ;;  %v5449_v19 = vrot.slane %v4180_v13, 6 }
 0x209   : > { %1748 = vrot.lane.b32.xlu0 %v1745_v17, %s2719_s7  ;;  %v1046_v52 = vpop.permute.xlu1 %1045  ;;  %v1004_v3 = vpop.permute.xlu0 %1003  ;;  %v1842_v14 = vmul.f32 %v5436_v30, %v4155_v9  ;;  %v1060_v5 = vrot.slane %v1053_v47, 5  ;;  %v5442_v30 = vld [vmem:[#allocation51_spill] sm:$0xff] }
 0x20a   : > { %v4508_v20 = vpop.permute.xlu2 %1166  ;;  %v1008_v12 = vadd.f32 %v1004_v3, %v987_v7  ;;  %v1309_v40 = vsel %vm1203_vm9, %v5432_v59, %v1308_v60  ;;  %v1267_v7 = vsel %vm1203_vm9, %v5435_v27, %v1266_v63  ;;  %v5438_v3 = vld [vmem:[#allocation38_spill] sm:$0xff]  ;;  %v5443_v28 = vrot.slane %v5442_v30, 3 }
 0x20b   : > { %v1800_v60 = vmul.f32 %v5438_v3, %v4155_v9  ;;  %v5444_v3 = vrot.slane %v3647_v49, 3  ;;  %v5452_v30 = vld [vmem:[#allocation42_spill] sm:$0xff] }
 0x20c   : > { %v1029_v11 = vadd.f32 %v4417_v42, %v1008_v12 }
 0x20d   : > { %v1829_v47 = vsel %vm772_vm8, %v1827_v18, %v5444_v3 }
 0x20e   : > { %v1050_v42 = vadd.f32 %v1046_v52, %v1029_v11  ;;  %v5440_v52 = vld [vmem:[#allocation19_spill] sm:$0xff] }
 0x20f   : > { %v5441_v11 = vrot.slane %v5440_v52, 5  ;;  %v5447_v52 = vstv %s4159_s8  ;;  %s2730_s8 = smov 112  }
 0x210   : > { %1312 = vrot.lane.b32.xlu1 %v1309_v40, %s5302_s5  ;;  %1291 = vrot.lane.b32.xlu2 %v1288_v62, %s5303_s25  ;;  %v1068_v12 = vadd.f32 %v5439_v57, %v1050_v42  ;;  %v1848_v62 = vrot.slane %v1842_v14, 3 }
 0x211   : > { %1270 = vrot.lane.b32.xlu0 %v1267_v7, %s2720_s11  ;;  %v1104_v17 = vpop.permute.xlu1 %1103  ;;  %v1044_v59 = vpop.permute.xlu0 %1043  ;;  %v1062_v40 = vsel %vm1059_vm7, %v1060_v5, %v5441_v11  ;;  %v1806_v7 = vrot.slane %v1800_v60, 3  ;;  %v1365_v11 = vmul.f32 %v4448_v38, %v5447_v52 }
 0x212   : > { %v4529_v54 = vpop.permute.xlu2 %1247  ;;  %v1049_v63 = vadd.f32 %v1044_v59, %v1028_v50  ;;  %v1850_v56 = vsel %vm772_vm8, %v1848_v62, %v5443_v28  ;;  %v5445_v50 = vld [vmem:[#allocation54_spill] sm:$0xff]  ;;  %v1880_v28 = vmul.f32 %v5452_v30, %v4155_v9  ;;  %v5460_v30 = vstv %s4185_s12  ;;  %s5599_s12 = sshll.u32 %s5602_s15, 3 }
 0x213   : > { %v5446_v42 = vrot.slane %v5445_v50, 3 }
 0x214   : > { %v1067_v27 = vadd.f32 %v1062_v40, %v1049_v63  ;;  %v5448_v40 = vstv %s4114_s29  ;;  %s4612_s29 = sld [smem:[#allocation5 + $0x31]] }
 0x215   : > { %v1808_v14 = vsel %vm772_vm8, %v1806_v7, %v5446_v42  ;;  %v1351_v62 = vmul.f32 %v4448_v38, %v5448_v40 }
 0x216   : > { %v1088_v60 = vadd.f32 %v4443_v45, %v1067_v27  ;;  %v5450_v45 = vld [vmem:[#allocation40_spill] sm:$0xff] }
 0x218   : > { %1853 = vrot.lane.b32.xlu1 %v1850_v56, %s2723_s20  ;;  %1832 = vrot.lane.b32.xlu2 %v1829_v47, %s5302_s5  ;;  %v1109_v49 = vadd.f32 %v1104_v17, %v1088_v60  ;;  %v1329_v56 = vrot.slane %v1322_v51, 6  ;;  %v1922_v17 = vmul.f32 %v5450_v45, %v4155_v9  ;;  %v5453_v51 = vld [vmem:[#allocation55_spill] sm:$0xff] }
 0x219   : > { %1811 = vrot.lane.b32.xlu0 %v1808_v14, %s5303_s25  ;;  %v1146_v57 = vpop.permute.xlu1 %1145  ;;  %v1886_v14 = vrot.slane %v1880_v28, 4  ;;  %v5454_v60 = vrot.slane %v5453_v51, 4  ;;  %v1407_v28 = vmul.f32 %v4448_v38, %v5460_v30  ;;  %v1964_v51 = vmul.f32 %v3601_v34, %v4155_v9 }
 0x21a   : > { %v4552_v5 = vpop.permute.xlu2 %1310  ;;  %v1085_v59 = vpop.permute.xlu0 %1084  ;;  %v1330_v44 = vsel %vm1203_vm9, %v5449_v19, %v1329_v56  ;;  %v1928_v50 = vrot.slane %v1922_v17, 4  ;;  %v5455_v56 = vrot.slane %v3669_v48, 4  ;;  %v1343_v30 = vstv %s4612_s29 }
 0x21b   : > { %v4554_v63 = vadd.f32 %v1085_v59, %v1068_v12  ;;  %v5451_v12 = vld [vmem:[#allocation41_spill] sm:$0xff] }
 0x21c   : > { %v1901_v18 = vmul.f32 %v5451_v12, %v4155_v9  ;;  %v1930_v59 = vsel %vm5215_vm0, %v1928_v50, %v5454_v60  ;;  %v5458_v12 = vld [vmem:[#allocation35_spill] sm:$0xff] }
 0x21e   : > { %v1907_v13 = vrot.slane %v1901_v18, 4 }
 0x220   : > { %1370 = vrot.lane.b32.xlu1 %v1365_v11, %s2718_s6  ;;  %1356 = vrot.lane.b32.xlu2 %v1351_v62, %s2719_s7  ;;  %v1909_v52 = vsel %vm5215_vm0, %v1907_v13, %v5455_v56  ;;  %v5456_v11 = vld [vmem:[#allocation34_spill] sm:$0xff] }
 0x221   : > { %1333 = vrot.lane.b32.xlu0 %v1330_v44, %s2723_s20  ;;  %v1197_v40 = vmul.f32 %v4089_v4, %v5456_v11  ;;  %v5459_v4 = vrot.slane %v5458_v12, 6 }
 0x222   : > { %v1227_v27 = vpop.permute.xlu1 %1226  ;;  %v4572_v7 = vpop.permute.xlu2 %1368 }
 0x223   : > { %v1125_v3 = vpop.permute.xlu0 %1124  ;;  %v1204_v44 = vrot.slane %v1197_v40, 6 }
 0x224   : > { %v1130_v47 = vadd.f32 %v1125_v3, %v1109_v49  ;;  %v5461_v3 = vstv %s4153_s4  ;;  %s2729_s4 = smov 96  }
 0x225   : > { %v1206_v18 = vsel %vm1203_vm9, %v1204_v44, %v5459_v4 }
 0x226   : > { %v1151_v42 = vadd.f32 %v1146_v57, %v1130_v47  ;;  %v5457_v57 = vrot.slane %v3678_v16, 4  ;;  %v1393_v47 = vmul.f32 %v4448_v38, %v5461_v3 }
 0x228   : > { %1933 = vrot.lane.b32.xlu1 %v1930_v59, %s2720_s11  ;;  %1912 = vrot.lane.b32.xlu2 %v1909_v52, %s2718_s6  ;;  %v1888_v49 = vsel %vm5215_vm0, %v1886_v14, %v5457_v57  ;;  %v1172_v62 = vadd.f32 %v4508_v20, %v1151_v42  ;;  %v5462_v20 = vstv %s4189_s13  ;;  %v5463_v42 = vld [vmem:[#allocation43_spill] sm:$0xff]  ;;  %v5464_v52 = vld [vmem:[#allocation44_spill] sm:$0xff] }
 0x229   : > { %1891 = vrot.lane.b32.xlu0 %v1888_v49, %s2719_s7  ;;  %v1379_v50 = vmul.f32 %v4448_v38, %v5462_v20  ;;  %v1985_v14 = vmul.f32 %v5463_v42, %v4155_v9  ;;  %v1943_v11 = vmul.f32 %v5464_v52, %v4155_v9  ;;  %v1970_v49 = vrot.slane %v1964_v51, 4  ;;  %v5471_v52 = vld [vmem:[#allocation45_spill] sm:$0xff] }
 0x22a   : > { %v1290_v48 = vpop.permute.xlu1 %1289  ;;  %v4591_v19 = vpop.permute.xlu2 %1410  ;;  %v5469_v42 = vrot.slane %v4262_v61, 1 }
 0x22b   : > { %v1188_v45 = vpop.permute.xlu0 %1187  ;;  %v1991_v57 = vrot.slane %v1985_v14, 4  ;;  %v1949_v44 = vrot.slane %v1943_v11, 4  ;;  %v5470_v14 = vrot.slane %v4210_v43, 1  ;;  %v2065_v11 = vmul.f32 %v5471_v52, %v4155_v9 }
 0x22c   : > { %v1193_v17 = vadd.f32 %v1188_v45, %v1172_v62  ;;  %v5465_v45 = vrot.slane %v3682_v22, 4  ;;  %v5467_v22 = vrot.slane %v3698_v23, 4 }
 0x22e   : > { %v1211_v16 = vadd.f32 %v1206_v18, %v1193_v17  ;;  %v1993_v34 = vsel %vm5215_vm0, %v1991_v57, %v5465_v45  ;;  %v5466_v17 = vrot.slane %v5342_v25, 4  ;;  %v1951_v25 = vsel %vm5215_vm0, %v1949_v44, %v5467_v22 }
 0x22f   : > { %v2023_v57 = vmul.f32 %v3616_v46, %v4155_v9  ;;  %v2071_v44 = vrot.slane %v2065_v11, 5 }
 0x230   : > { %1412 = vrot.lane.b32.xlu1 %v1407_v28, %s5302_s5  ;;  %1398 = vrot.lane.b32.xlu2 %v1393_v47, %s5303_s25  ;;  %v1232_v13 = vadd.f32 %v1227_v27, %v1211_v16  ;;  %v1972_v12 = vsel %vm5215_vm0, %v1970_v49, %v5466_v17  ;;  %v4667_v49 = vadd.f32 %v4482_v35, %v4554_v63 }
 0x231   : > { %1384 = vrot.lane.b32.xlu0 %v1379_v50, %s2720_s11  ;;  %v2029_v17 = vrot.slane %v2023_v57, 5  ;;  %v5483_v57 = vld [vmem:[#allocation49_spill] sm:$0xff] }
 0x232   : > { %v1355_v60 = vpop.permute.xlu1 %1354  ;;  %v4614_v59 = vpop.permute.xlu2 %1483  ;;  %v1253_v56 = vadd.f32 %v4529_v54, %v1232_v13  ;;  %v4625_v54 = vld [vmem:[#allocation2 + $0x28] sm:$0x3f]  ;;  %v5468_v13 = vstv %s4228_s21  ;;  %s185_s21 = scalar_lea.vmem %s5097_s3, %s5599_s12 }
 0x233   : > { %v1269_v40 = vpop.permute.xlu0 %1268  ;;  %v1474_v4 = vmul.f32 %v4625_v54, %v4249_v33  ;;  %v1453_v18 = vmul.f32 %v4625_v54, %v4204_v41  ;;  %v1344_v41 = vmul.f32 %v1343_v30, %v4155_v9  ;;  %v1421_v23 = vmul.f32 %v4448_v38, %v5468_v13 }
 0x234   : > { %v1274_v27 = vadd.f32 %v1269_v40, %v1253_v56  ;;  %v2044_v40 = vmul.f32 %v3613_v31, %v4155_v9  ;;  %v1434_v31 = vmul.f32 %v3619_v53, %v4155_v9  ;;  %v1537_v35 = vmul.f32 %v4625_v54, %v4289_v0 }
 0x235   : > { %v1481_v3 = vrot.slane %v1474_v4, 1  ;;  %v1460_v47 = vrot.slane %v1453_v18, 1  ;;  %v5473_v4 = vrot.slane %v5350_v15, 5  ;;  %v1516_v63 = vmul.f32 %v4625_v54, %v4246_v6 }
 0x236   : > { %v1295_v62 = vadd.f32 %v1290_v48, %v1274_v27  ;;  %v2050_v45 = vrot.slane %v2044_v40, 5  ;;  %v5474_v53 = vrot.slane %v3729_v1, 5  ;;  %v1495_v15 = vmul.f32 %v4625_v54, %v4292_v2 }
 0x237   : > { %v1461_v51 = vsel %vm484_vm5, %v5470_v14, %v1460_v47  ;;  %v5475_v47 = vld [vmem:[#allocation64_spill] sm:$0xff] }
 0x238   : > { %1996 = vrot.lane.b32.xlu1 %v1993_v34, %s2723_s20  ;;  %1975 = vrot.lane.b32.xlu2 %v1972_v12, %s5302_s5  ;;  %v1316_v48 = vadd.f32 %v4552_v5, %v1295_v62  ;;  %v1482_v5 = vsel %vm484_vm5, %v5469_v42, %v1481_v3  ;;  %v5472_v12 = vrot.slane %v3710_v10, 5  ;;  %v2052_v46 = vsel %vm1059_vm7, %v2050_v45, %v5473_v4 }
 0x239   : > { %1954 = vrot.lane.b32.xlu0 %v1951_v25, %s5303_s25  ;;  %v2031_v10 = vsel %vm1059_vm7, %v2029_v17, %v5474_v53  ;;  %v1440_v25 = vrot.slane %v1434_v31, 1  ;;  %v1502_v3 = vrot.slane %v1495_v15, 1  ;;  %v5476_v1 = vrot.slane %v5475_v47, 1  ;;  %v5484_v17 = vld [vmem:[#allocation52_spill] sm:$0xff]  ;;  %v5491_v15 = vld [vmem:[#allocation67_spill] sm:$0xff] }
 0x23a   : > { %v1397_v28 = vpop.permute.xlu1 %1396  ;;  %v4639_v16 = vpop.permute.xlu2 %1546  ;;  %v5480_v42 = vrot.slane %v4312_v29, 1  ;;  %v1577_v31 = vmul.f32 %v5484_v17, %v4155_v9 }
 0x23b   : > { %v1332_v33 = vpop.permute.xlu0 %1331 }
 0x23c   : > { %v1337_v20 = vadd.f32 %v1332_v33, %v1316_v48  ;;  %v1544_v48 = vrot.slane %v1537_v35, 1  ;;  %v1583_v47 = vrot.slane %v1577_v31, 2 }
 0x23e   : > { %v1346_v50 = vadd.f32 %v1344_v41, %v1337_v20  ;;  %v1442_v41 = vsel %vm484_vm5, %v1440_v25, %v5476_v1 }
 0x240   : > { %1485 = vrot.lane.b32.xlu1 %v1482_v5, %s2718_s6  ;;  %1464 = vrot.lane.b32.xlu2 %v1461_v51, %s2719_s7  ;;  %v1360_v56 = vadd.f32 %v1355_v60, %v1346_v50  ;;  %v5478_v50 = vld [vmem:[#allocation73_spill] sm:$0xff]  ;;  %v1503_v5 = vsel %vm484_vm5, %v5480_v42, %v1502_v3  ;;  %v5481_v51 = vld [vmem:[#allocation46_spill] sm:$0xff] }
 0x241   : > { %1426 = vrot.lane.b32.xlu0 %v1421_v23, %s2723_s20  ;;  %v5479_v13 = vrot.slane %v5478_v50, 1  ;;  %v5494_v50 = vld [vmem:[#allocation68_spill] sm:$0xff] }
 0x242   : > { %v1463_v61 = vpop.permute.xlu1 %1462  ;;  %v4660_v27 = vpop.permute.xlu2 %1626  ;;  %v1374_v43 = vadd.f32 %v4572_v7, %v1360_v56  ;;  %v2073_v7 = vsel %vm1059_vm7, %v2071_v44, %v5472_v12  ;;  %v5482_v56 = vld [vmem:[#allocation48_spill] sm:$0xff]  ;;  %v5485_v12 = vld [vmem:[#allocation65_spill] sm:$0xff] }
 0x243   : > { %v1383_v60 = vpop.permute.xlu0 %1382  ;;  %v2107_v52 = vmul.f32 %v5482_v56, %v4155_v9 }
 0x244   : > { %v1388_v62 = vadd.f32 %v1383_v60, %v1374_v43  ;;  %v2086_v60 = vmul.f32 %v5483_v57, %v4155_v9 }
 0x246   : > { %v1402_v34 = vadd.f32 %v1397_v28, %v1388_v62  ;;  %v1523_v28 = vrot.slane %v1516_v63, 1  ;;  %v5489_v63 = vld [vmem:[#allocation15_spill] sm:$0xff] }
 0x247   : > { %v1617_v53 = vmul.f32 %v4625_v54, %v5489_v63 }
 0x248   : > { %2076 = vrot.lane.b32.xlu1 %v2073_v7, %s2720_s11  ;;  %2055 = vrot.lane.b32.xlu2 %v2052_v46, %s2718_s6  ;;  %v1416_v18 = vadd.f32 %v4591_v19, %v1402_v34  ;;  %v5477_v19 = vrot.slane %v4306_v21, 1  ;;  %v1524_v23 = vsel %vm484_vm5, %v5479_v13, %v1523_v28  ;;  %v2128_v21 = vmul.f32 %v5481_v51, %v4155_v9  ;;  %v5487_v46 = vld [vmem:[#allocation66_spill] sm:$0xff]  ;;  %v5498_v51 = vld [vmem:[#allocation33_spill] sm:$0xff] }
 0x249   : > { %2034 = vrot.lane.b32.xlu0 %v2031_v10, %s2719_s7  ;;  %v2092_v34 = vrot.slane %v2086_v60, 5  ;;  %v5486_v7 = vrot.slane %v5485_v12, 5  ;;  %v5488_v35 = vrot.slane %v5487_v46, 5  ;;  %v5490_v10 = vld [vmem:[#allocation32_spill] sm:$0xff]  ;;  %v5495_v13 = vrot.slane %v5494_v50, 2 }
 0x24a   : > { %v1526_v22 = vpop.permute.xlu1 %1525  ;;  %v4690_v0 = vpop.permute.xlu2 %1147  ;;  %v1545_v2 = vsel %vm484_vm5, %v5477_v19, %v1544_v48  ;;  %v2134_v44 = vrot.slane %v2128_v21, 5  ;;  %v5493_v48 = vld [vmem:[#allocation26_spill] sm:$0xff]  ;;  %v5499_v21 = vrot.slane %v5498_v51, 2 }
 0x24b   : > { %v1425_v6 = vpop.permute.xlu0 %1424  ;;  %v1558_v28 = vmul.f32 %v4625_v54, %v5493_v48 }
 0x24c   : > { %v1430_v33 = vadd.f32 %v1425_v6, %v1416_v18  ;;  %v2136_v4 = vsel %vm1059_vm7, %v2134_v44, %v5486_v7  ;;  %v1596_v18 = vmul.f32 %v4625_v54, %v5490_v10  ;;  %v5503_v44 = vld [vmem:[#allocation56_spill] sm:$0xff] }
 0x24e   : > { %v1447_v20 = vadd.f32 %v1442_v41, %v1430_v33  ;;  %v1624_v41 = vrot.slane %v1617_v53, 2  ;;  %v5505_v53 = vld [vmem:[#allocation69_spill] sm:$0xff] }
 0x24f   : > { %v5506_v10 = vrot.slane %v5505_v53, 6 }
 0x250   : > { %1548 = vrot.lane.b32.xlu1 %v1545_v2, %s5302_s5  ;;  %1527 = vrot.lane.b32.xlu2 %v1524_v23, %s5303_s25  ;;  %v1468_v14 = vadd.f32 %v1463_v61, %v1447_v20  ;;  %v2113_v61 = vrot.slane %v2107_v52, 5  ;;  %v1603_v20 = vrot.slane %v1596_v18, 2  ;;  %v1565_v2 = vrot.slane %v1558_v28, 1  ;;  %v5512_v28 = vld [vmem:[#allocation17_spill] sm:$0xff] }
 0x251   : > { %1506 = vrot.lane.b32.xlu0 %v1503_v5, %s2720_s11  ;;  %v1585_v23 = vsel %vm628_vm6, %v1583_v47, %v5495_v13 }
 0x252   : > { %v1606_v11 = vpop.permute.xlu1 %1605  ;;  %v4711_v40 = vpop.permute.xlu2 %1689  ;;  %v1489_v43 = vadd.f32 %v4614_v59, %v1468_v14  ;;  %v2115_v59 = vsel %vm1059_vm7, %v2113_v61, %v5488_v35  ;;  %v1604_v56 = vsel %vm628_vm6, %v5499_v21, %v1603_v20  ;;  %v2187_v61 = vmul.f32 %v5503_v44, %v4155_v9  ;;  %v5517_v21 = vld [vmem:[#allocation60_spill] sm:$0xff]  ;;  %v5520_v44 = vld [vmem:[#allocation77_spill] sm:$0xff] }
 0x253   : > { %v1505_v29 = vpop.permute.xlu0 %1504 }
 0x254   : > { %v1510_v62 = vadd.f32 %v1505_v29, %v1489_v43  ;;  %v5500_v43 = vld [vmem:[#allocation59_spill] sm:$0xff]  ;;  %v5502_v29 = vld [vmem:[#allocation53_spill] sm:$0xff]  ;;  %v2193_v35 = vrot.slane %v2187_v61, 6  ;;  %v1720_v61 = vmul.f32 %v5520_v44, %v4155_v9 }
 0x255   : > { %v5501_v57 = vrot.slane %v5500_v43, 1 }
 0x256   : > { %v1531_v45 = vadd.f32 %v1526_v22, %v1510_v62  ;;  %v5492_v22 = vrot.slane %v5491_v15, 5  ;;  %v2208_v62 = vmul.f32 %v5502_v29, %v4155_v9  ;;  %v5507_v15 = vld [vmem:[#allocation70_spill] sm:$0xff] }
 0x257   : > { %v1566_v60 = vsel %vm484_vm5, %v5501_v57, %v1565_v2 }
 0x258   : > { %2139 = vrot.lane.b32.xlu1 %v2136_v4, %s2723_s20  ;;  %2118 = vrot.lane.b32.xlu2 %v2115_v59, %s5302_s5  ;;  %v2094_v25 = vsel %vm1059_vm7, %v2092_v34, %v5492_v22  ;;  %v1552_v6 = vadd.f32 %v4639_v16, %v1531_v45  ;;  %v5496_v16 = vld [vmem:[#allocation31_spill] sm:$0xff]  ;;  %v2214_v46 = vrot.slane %v2208_v62, 6  ;;  %v5508_v22 = vrot.slane %v5507_v15, 6  ;;  %v5526_v15 = vld [vmem:[#allocation76_spill] sm:$0xff] }
 0x259   : > { %2097 = vrot.lane.b32.xlu0 %v2094_v25, %s5303_s25  ;;  %v5497_v5 = vrot.slane %v5496_v16, 2  ;;  %v5514_v16 = vld [vmem:[#allocation47_spill] sm:$0xff] }
 0x25a   : > { %v1648_v33 = vpop.permute.xlu1 %1647  ;;  %v4737_v3 = vpop.permute.xlu2 %1228  ;;  %v2216_v18 = vsel %vm1203_vm9, %v2214_v46, %v5506_v10  ;;  %v2195_v25 = vsel %vm1203_vm9, %v2193_v35, %v5508_v22  ;;  %v1726_v10 = vrot.slane %v1720_v61, 3  ;;  %v5527_v22 = vrot.slane %v5526_v15, 6 }
 0x25b   : > { %v1568_v1 = vpop.permute.xlu0 %1567  ;;  %v1625_v14 = vsel %vm628_vm6, %v5497_v5, %v1624_v41  ;;  %v5515_v5 = vld [vmem:[#allocation24_spill] sm:$0xff] }
 0x25c   : > { %v1573_v19 = vadd.f32 %v1568_v1, %v1552_v6  ;;  %v5509_v6 = vld [vmem:[#allocation11_spill] sm:$0xff] }
 0x25e   : > { %v1590_v42 = vadd.f32 %v1585_v23, %v1573_v19  ;;  %v5513_v23 = vrot.slane %v4405_v32, 2 }
 0x260   : > { %v1611_v52 = vadd.f32 %v1606_v11, %v1590_v42  ;;  %1628 = vrot.lane.b32.xlu1 %v1625_v14, %s2718_s6  ;;  %1607 = vrot.lane.b32.xlu2 %v1604_v56, %s2719_s7  ;;  %v5504_v11 = vld [vmem:[#allocation58_spill] sm:$0xff]  ;;  %v5516_v14 = vrot.slane %v5515_v5, 2  ;;  %v2271_v56 = vmul.f32 %v5517_v21, %v4155_v9 }
 0x261   : > { %1569 = vrot.lane.b32.xlu0 %v1566_v60, %s2723_s20  ;;  %v2166_v17 = vmul.f32 %v5504_v11, %v4155_v9  ;;  %v5519_v60 = vld [vmem:[#allocation62_spill] sm:$0xff] }
 0x262   : > { %v1169_v45 = vpop.permute.xlu1 %1168  ;;  %v4758_v34 = vpop.permute.xlu2 %1769  ;;  %v1632_v31 = vadd.f32 %v4660_v27, %v1611_v52  ;;  %v1680_v27 = vmul.f32 %v4625_v54, %v5509_v6  ;;  %v2229_v29 = vmul.f32 %v5519_v60, %v4155_v9  ;;  %v2277_v11 = vrot.slane %v2271_v56, 6  ;;  %v5528_v6 = vld [vmem:[#allocation13_spill] sm:$0xff] }
 0x263   : > { %v1127_v12 = vpop.permute.xlu0 %1126  ;;  %v2172_v63 = vrot.slane %v2166_v17, 6 }
 0x264   : > { %v1131_v7 = vadd.f32 %v1127_v12, %v4667_v49  ;;  %v1653_v4 = vadd.f32 %v1648_v33, %v1632_v31  ;;  %v5510_v49 = vld [vmem:[#allocation71_spill] sm:$0xff]  ;;  %v1638_v33 = vmul.f32 %v4625_v54, %v5512_v28  ;;  %v1687_v19 = vrot.slane %v1680_v27, 2  ;;  %v5521_v31 = vld [vmem:[#allocation50_spill] sm:$0xff] }
 0x265   : > { %v5511_v48 = vrot.slane %v5510_v49, 6  ;;  %v2235_v35 = vrot.slane %v2229_v29, 6  ;;  %v1701_v27 = vmul.f32 %v4625_v54, %v5528_v6  ;;  %v5536_v29 = vld [vmem:[#allocation86_spill] sm:$0xff]  ;;  %v2680_v6 = vld [vmem:[#allocation2 + $0x18] sm:$0xff] }
 0x266   : > { %v1152_v59 = vadd.f32 %v4690_v0, %v1131_v7  ;;  %v1645_v50 = vrot.slane %v1638_v33, 2  ;;  %v1688_v42 = vsel %vm628_vm6, %v5513_v23, %v1687_v19  ;;  %v5522_v7 = vld [vmem:[#allocation72_spill] sm:$0xff]  ;;  %v5531_v23 = vrot.slane %v4475_v8, 3 }
 0x267   : > { %v2174_v0 = vsel %vm1203_vm9, %v2172_v63, %v5511_v48  ;;  %v5529_v48 = vld [vmem:[#allocation78_spill] sm:$0xff] }
 0x268   : > { %2219 = vrot.lane.b32.xlu1 %v2216_v18, %s2720_s11  ;;  %2198 = vrot.lane.b32.xlu2 %v2195_v25, %s2718_s6  ;;  %v1173_v47 = vadd.f32 %v1169_v45, %v1152_v59  ;;  %v1646_v51 = vsel %vm628_vm6, %v5516_v14, %v1645_v50  ;;  %v5524_v59 = vld [vmem:[#allocation75_spill] sm:$0xff]  ;;  %v1781_v18 = vmul.f32 %v4625_v54, %v4445_v37  ;;  %v5530_v37 = vrot.slane %v5529_v48, 3 }
 0x269   : > { %2177 = vrot.lane.b32.xlu0 %v2174_v0, %s2719_s7  ;;  %v5525_v63 = vrot.slane %v5524_v59, 6  ;;  %v2237_v25 = vsel %vm1203_vm9, %v2235_v35, %v5527_v22  ;;  %v1708_v50 = vrot.slane %v1701_v27, 2  ;;  %v1760_v14 = vmul.f32 %v4625_v54, %v4454_v24  ;;  %v5545_v22 = vld [vmem:[#allocation57_spill] sm:$0xff]  ;;  %v5547_v27 = vld [vmem:[#allocation79_spill] sm:$0xff] }
 0x26a   : > { %v1711_v1 = vpop.permute.xlu1 %1710  ;;  %v1292_v41 = vpop.permute.xlu2 %1291  ;;  %v1728_v0 = vsel %vm772_vm8, %v1726_v10, %v5530_v37  ;;  %v5548_v37 = vld [vmem:[#allocation23_spill] sm:$0xff] }
 0x26b   : > { %v1669_v20 = vpop.permute.xlu0 %1668  ;;  %v1767_v21 = vrot.slane %v1760_v14, 3 }
 0x26c   : > { %v1674_v2 = vadd.f32 %v1669_v20, %v1653_v4  ;;  %v5523_v4 = vrot.slane %v5522_v7, 6  ;;  %v1788_v20 = vrot.slane %v1781_v18, 3 }
 0x26e   : > { %v1695_v13 = vadd.f32 %v4711_v40, %v1674_v2  ;;  %v5518_v40 = vld [vmem:[#allocation61_spill] sm:$0xff]  ;;  %v2279_v46 = vsel %vm1203_vm9, %v2277_v11, %v5523_v4  ;;  %v5541_v4 = vld [vmem:[#allocation92_spill] sm:$0xff] }
 0x26f   : > { %v2250_v32 = vmul.f32 %v5518_v40, %v4155_v9  ;;  %v1739_v9 = vmul.f32 %v4625_v54, %v4466_v55  ;;  %v5535_v40 = vrot.slane %v4464_v39, 3  ;;  %v1345_v39 = vmul.f32 %v4448_v38, %v1343_v30  ;;  %v5543_v38 = vld [vmem:[#allocation94_spill] sm:$0xff]  ;;  %v5544_v30 = vld [vmem:[#allocation39_spill] sm:$0xff] }
 0x270   : > { %1691 = vrot.lane.b32.xlu1 %v1688_v42, %s5302_s5  ;;  %1670 = vrot.lane.b32.xlu2 %v5514_v16, %s5303_s25  ;;  %v1716_v52 = vadd.f32 %v1711_v1, %v1695_v13  ;;  %v5532_v16 = vrot.slane %v4401_v26, 2  ;;  %v5534_v26 = vld [vmem:[#allocation85_spill] sm:$0xff] }
 0x271   : > { %1649 = vrot.lane.b32.xlu0 %v1646_v51, %s2720_s11  ;;  %v2256_v17 = vrot.slane %v2250_v32, 6  ;;  %v1746_v19 = vrot.slane %v1739_v9, 3  ;;  %v1768_v24 = vsel %vm772_vm8, %v5535_v40, %v1767_v21  ;;  %v5555_v21 = vld [vmem:[#allocation29_spill] sm:$0xff] }
 0x272   : > { %v1250_v43 = vpop.permute.xlu1 %1249  ;;  %v4796_v57 = vpop.permute.xlu2 %1832  ;;  %v1733_v33 = vadd.f32 %v1728_v0, %v1716_v52  ;;  %v1709_v5 = vsel %vm628_vm6, %v5532_v16, %v1708_v50  ;;  %v5533_v52 = vld [vmem:[#allocation81_spill] sm:$0xff]  ;;  %v5551_v50 = vld [vmem:[#allocation63_spill] sm:$0xff] }
 0x273   : > { %v1190_v62 = vpop.permute.xlu0 %1189  ;;  %v2258_v53 = vsel %vm1203_vm9, %v2256_v17, %v5525_v63  ;;  %v1747_v42 = vsel %vm772_vm8, %v5531_v23, %v1746_v19 }
 0x274   : > { %v1194_v45 = vadd.f32 %v1190_v62, %v1173_v47  ;;  %v5538_v62 = vld [vmem:[#allocation89_spill] sm:$0xff] }
 0x276   : > { %v1212_v12 = vadd.f32 %v5521_v31, %v1194_v45  ;;  %v5539_v31 = vld [vmem:[#allocation90_spill] sm:$0xff] }
 0x278   : > { %2282 = vrot.lane.b32.xlu1 %v2279_v46, %s2723_s20  ;;  %2261 = vrot.lane.b32.xlu2 %v2258_v53, %s5302_s5  ;;  %v1233_v49 = vadd.f32 %v4737_v3, %v1212_v12  ;;  %v1789_v3 = vsel %vm772_vm8, %v1786_v36, %v1788_v20  ;;  %v5540_v12 = vld [vmem:[#allocation91_spill] sm:$0xff]  ;;  %v5542_v53 = vld [vmem:[#allocation93_spill] sm:$0xff] }
 0x279   : > { %2240 = vrot.lane.b32.xlu0 %v2237_v25, %s5303_s25  ;;  %v5546_v25 = vld [vmem:[#allocation95_spill] sm:$0xff] }
 0x27a   : > { %v1791_v55 = vpop.permute.xlu1 %1790  ;;  %v1357_v28 = vpop.permute.xlu2 %1356  ;;  %v1254_v47 = vadd.f32 %v1250_v43, %v1233_v49  ;;  %v1863_v49 = vmul.f32 %v2680_v6, %v5547_v27 }
 0x27b   : > { %v1749_v1 = vpop.permute.xlu0 %1748 }
 0x27c   : > { %v1754_v2 = vadd.f32 %v1749_v1, %v1733_v33 }
 0x27e   : > { %v1775_v13 = vadd.f32 %v4758_v34, %v1754_v2 }
 0x280   : > { %1792 = vrot.lane.b32.xlu1 %v1789_v3, %s2720_s11  ;;  %1750 = vrot.lane.b32.xlu2 %v1747_v42, %s2719_s7  ;;  %v1796_v34 = vadd.f32 %v1791_v55, %v1775_v13  ;;  %v5552_v13 = vld [vmem:[#allocation96_spill] sm:$0xff]  ;;  %v5553_v3 = vld [vmem:[#allocation97_spill] sm:$0xff] }
 0x281   : > { %1712 = vrot.lane.b32.xlu0 %v1709_v5, %s2723_s20 }
 0x282   : > { %v1313_v58 = vpop.permute.xlu1 %1312  ;;  %v1913_v36 = vpop.permute.xlu2 %1912 }
 0x283   : > { %v1271_v51 = vpop.permute.xlu0 %1270 }
 0x284   : > { %v1275_v8 = vadd.f32 %v1271_v51, %v1254_v47  ;;  %v1869_v47 = vrot.slane %v1863_v49, 4  ;;  %v5554_v51 = vld [vmem:[#allocation28_spill] sm:$0xff] }
 0x286   : > { %v1296_v56 = vadd.f32 %v1292_v41, %v1275_v8  ;;  %v5537_v41 = vld [vmem:[#allocation88_spill] sm:$0xff] }
 0x288   : > { %1855 = vrot.lane.b32.xlu1 %v5533_v52, %s2723_s20  ;;  %1813 = vrot.lane.b32.xlu2 %v5534_v26, %s5303_s25  ;;  %v1317_v54 = vadd.f32 %v1313_v58, %v1296_v56  ;;  %v5556_v56 = vld [vmem:[#allocation30_spill] sm:$0xff] }
 0x289   : > { %1771 = vrot.lane.b32.xlu0 %v1768_v24, %s2718_s6  ;;  %v5557_v52 = vld [vmem:[#allocation98_spill] sm:$0xff] }
 0x28a   : > { %v1854_v32 = vpop.permute.xlu1 %1853  ;;  %v1399_v43 = vpop.permute.xlu2 %1398 }
 0x28b   : > { %v1812_v60 = vpop.permute.xlu0 %1811 }
 0x28c   : > { %v1817_v9 = vadd.f32 %v1812_v60, %v1796_v34  ;;  %v5558_v60 = vld [vmem:[#allocation80_spill] sm:$0xff] }
 0x28e   : > { %v1838_v15 = vadd.f32 %v4796_v57, %v1817_v9  ;;  %v5549_v57 = vld [vmem:[#allocation82_spill] sm:$0xff] }
 0x28f   : > { %v5550_v20 = vrot.slane %v5549_v57, 4  ;;  %v5564_v57 = vld [vmem:[#allocation87_spill] sm:$0xff] }
 0x290   : > { %1935 = vrot.lane.b32.xlu1 %v5536_v29, %s2720_s11  ;;  %1893 = vrot.lane.b32.xlu2 %v5537_v41, %s2719_s7  ;;  %v1859_v33 = vadd.f32 %v1854_v32, %v1838_v15  ;;  %v2006_v29 = vmul.f32 %v2680_v6, %v5558_v60 }
 0x291   : > { %1834 = vrot.lane.b32.xlu0 %v5538_v62, %s5302_s5  ;;  %v1871_v19 = vsel %vm5215_vm0, %v1869_v47, %v5550_v20 }
 0x292   : > { %v1371_v44 = vpop.permute.xlu1 %1370  ;;  %v1976_v11 = vpop.permute.xlu2 %1975  ;;  %v1876_v2 = vadd.f32 %v1871_v19, %v1859_v33 }
 0x293   : > { %v1334_v61 = vpop.permute.xlu0 %1333 }
 0x294   : > { %v1338_v45 = vadd.f32 %v1334_v61, %v1317_v54 }
 0x296   : > { %v1347_v17 = vadd.f32 %v1345_v39, %v1338_v45  ;;  %v2012_v39 = vrot.slane %v2006_v29, 5 }
 0x298   : > { %1998 = vrot.lane.b32.xlu1 %v5539_v31, %s2723_s20  ;;  %1956 = vrot.lane.b32.xlu2 %v5540_v12, %s5303_s25  ;;  %v1361_v7 = vadd.f32 %v1357_v28, %v1347_v17  ;;  %v5560_v17 = vld [vmem:[#allocation83_spill] sm:$0xff] }
 0x299   : > { %1914 = vrot.lane.b32.xlu0 %v5541_v4, %s2718_s6  ;;  %v5561_v31 = vrot.slane %v5560_v17, 5 }
 0x29a   : > { %v1934_v46 = vpop.permute.xlu1 %1933  ;;  %v1375_v35 = vadd.f32 %v1371_v44, %v1361_v7  ;;  %v1465_v63 = vpop.permute.xlu2 %1464 }
 0x29b   : > { %v1892_v59 = vpop.permute.xlu0 %1891  ;;  %v2014_v12 = vsel %vm1059_vm7, %v2012_v39, %v5561_v31 }
 0x29c   : > { %v1897_v23 = vadd.f32 %v1892_v59, %v1876_v2 }
 0x29e   : > { %v1918_v58 = vadd.f32 %v1913_v36, %v1897_v23  ;;  %v5559_v36 = vld [vmem:[#allocation99_spill] sm:$0xff] }
 0x2a0   : > { %2078 = vrot.lane.b32.xlu1 %v5542_v53, %s2720_s11  ;;  %2036 = vrot.lane.b32.xlu2 %v5543_v38, %s2719_s7  ;;  %v1939_v26 = vadd.f32 %v1934_v46, %v1918_v58 }
 0x2a1   : > { %1977 = vrot.lane.b32.xlu0 %v5544_v30, %s5302_s5 }
 0x2a2   : > { %v1413_v10 = vpop.permute.xlu1 %1412  ;;  %v2056_v48 = vpop.permute.xlu2 %2055 }
 0x2a3   : > { %v1385_v18 = vpop.permute.xlu0 %1384 }
 0x2a4   : > { %v1389_v0 = vadd.f32 %v1385_v18, %v1375_v35 }
 0x2a6   : > { %v1403_v1 = vadd.f32 %v1399_v43, %v1389_v0 }
 0x2a8   : > { %2141 = vrot.lane.b32.xlu1 %v5545_v22, %s2723_s20  ;;  %2099 = vrot.lane.b32.xlu2 %v5546_v25, %s5303_s25  ;;  %v1417_v16 = vadd.f32 %v1413_v10, %v1403_v1  ;;  %v5562_v25 = vld [vmem:[#allocation100_spill] sm:$0xff] }
 0x2a9   : > { %2057 = vrot.lane.b32.xlu0 %v5548_v37, %s2718_s6  ;;  %v5563_v37 = vld [vmem:[#allocation84_spill] sm:$0xff] }
 0x2aa   : > { %v1997_v55 = vpop.permute.xlu1 %1996  ;;  %v1528_v5 = vpop.permute.xlu2 %1527  ;;  %v2149_v0 = vmul.f32 %v2680_v6, %v5563_v37 }
 0x2ab   : > { %v1955_v28 = vpop.permute.xlu0 %1954 }
 0x2ac   : > { %v1960_v54 = vadd.f32 %v1955_v28, %v1939_v26  ;;  %v2155_v1 = vrot.slane %v2149_v0, 6 }
 0x2ae   : > { %v1981_v43 = vadd.f32 %v1976_v11, %v1960_v54 }
 0x2b0   : > { %2221 = vrot.lane.b32.xlu1 %v5551_v50, %s2720_s11  ;;  %2179 = vrot.lane.b32.xlu2 %v5552_v13, %s2719_s7  ;;  %v2002_v44 = vadd.f32 %v1997_v55, %v1981_v43  ;;  %s2724_s7 = smov 16   ;;  %s2725_s11 = smov 32  }
 0x2b1   : > { %2120 = vrot.lane.b32.xlu0 %v5553_v3, %s5302_s5 }
 0x2b2   : > { %v1486_v42 = vpop.permute.xlu1 %1485  ;;  %v2119_v32 = vpop.permute.xlu2 %2118  ;;  %v2019_v7 = vadd.f32 %v2014_v12, %v2002_v44 }
 0x2b3   : > { %v1427_v14 = vpop.permute.xlu0 %1426 }
 0x2b4   : > { %v1431_v34 = vadd.f32 %v1427_v14, %v1417_v16 }
 0x2b6   : > { %v1448_v8 = vadd.f32 %v5554_v51, %v1431_v34 }
 0x2b8   : > { %2284 = vrot.lane.b32.xlu1 %v5555_v21, %s2723_s20  ;;  %2242 = vrot.lane.b32.xlu2 %v5556_v56, %s5303_s25  ;;  %v1469_v61 = vadd.f32 %v1465_v63, %v1448_v8  ;;  %s2726_s20 = smov 48   ;;  %s2728_s25 = smov 80  }
 0x2b9   : > { %2200 = vrot.lane.b32.xlu0 %v5557_v52, %s2718_s6  ;;  %s4904_s6 = sld [smem:[#allocation4]] }
 0x2ba   : > { %v2077_v40 = vpop.permute.xlu1 %2076  ;;  %v1608_v45 = vpop.permute.xlu2 %1607  ;;  %v1490_v4 = vadd.f32 %v1486_v42, %v1469_v61 }
 0x2bb   : > { %v2035_v24 = vpop.permute.xlu0 %2034 }
 0x2bc   : > { %v2040_v46 = vadd.f32 %v2035_v24, %v2019_v7 }
 0x2be   : > { %v2061_v53 = vadd.f32 %v2056_v48, %v2040_v46  ;;  %v5565_v48 = vrot.slane %v5564_v57, 6 }
 0x2bf   : > { %v2291_v21 = vstv %s4904_s6 }
 0x2c0   : > { %v2082_v10 = vadd.f32 %v2077_v40, %v2061_v53  ;;  %v2157_v20 = vsel %vm1203_vm9, %v2155_v1, %v5565_v48  ;;  %v5568_v1 = vld [vmem:[#allocation14_spill] sm:$0xff] }
 0x2c1   : > { %2263 = vrot.lane.b32.xlu0 %v5559_v36, %s5302_s5  ;;  %v5566_v36 = vld [vmem:[#allocation74_spill] sm:$0xff]  ;;  %s2727_s5 = smov 64  }
 0x2c2   : > { %v1549_v41 = vpop.permute.xlu1 %1548  ;;  %v2199_v30 = vpop.permute.xlu2 %2198 }
 0x2c3   : > { %v1507_v62 = vpop.permute.xlu0 %1506 }
 0x2c4   : > { %v1511_v35 = vadd.f32 %v1507_v62, %v1490_v4 }
 0x2c6   : > { %v1532_v38 = vadd.f32 %v1528_v5, %v1511_v35 }
 0x2c8   : > { %v1553_v9 = vadd.f32 %v1549_v41, %v1532_v38 }
 0x2ca   : > { %v2140_v11 = vpop.permute.xlu1 %2139  ;;  %v1671_v28 = vpop.permute.xlu2 %1670 }
 0x2cb   : > { %v2098_v59 = vpop.permute.xlu0 %2097 }
 0x2cc   : > { %v2103_v63 = vadd.f32 %v2098_v59, %v2082_v10  ;;  %v5567_v10 = vld [vmem:[#allocation8_spill] sm:$0xff] }
 0x2ce   : > { %v2124_v49 = vadd.f32 %v2119_v32, %v2103_v63 }
 0x2d0   : > { %v2145_v47 = vadd.f32 %v2140_v11, %v2124_v49 }
 0x2d2   : > { %v1629_v18 = vpop.permute.xlu1 %1628  ;;  %v2162_v19 = vadd.f32 %v2157_v20, %v2145_v47  ;;  %v2262_v3 = vpop.permute.xlu2 %2261 }
 0x2d3   : > { %v1570_v15 = vpop.permute.xlu0 %1569 }
 0x2d4   : > { %v1574_v22 = vadd.f32 %v1570_v15, %v1553_v9 }
 0x2d6   : > { %v1591_v27 = vadd.f32 %v5562_v25, %v1574_v22 }
 0x2d8   : > { %v1612_v6 = vadd.f32 %v1608_v45, %v1591_v27 }
 0x2da   : > { %v2220_v55 = vpop.permute.xlu1 %2219  ;;  %v1633_v5 = vadd.f32 %v1629_v18, %v1612_v6  ;;  %v1751_v8 = vpop.permute.xlu2 %1750 }
 0x2db   : > { %v2178_v33 = vpop.permute.xlu0 %2177 }
 0x2dc   : > { %v2183_v2 = vadd.f32 %v2178_v33, %v2162_v19 }
 0x2de   : > { %v2204_v23 = vadd.f32 %v2199_v30, %v2183_v2 }
 0x2e0   : > { %v2225_v42 = vadd.f32 %v2220_v55, %v2204_v23 }
 0x2e2   : > { %v1692_v50 = vpop.permute.xlu1 %1691  ;;  %v1814_v29 = vpop.permute.xlu2 %1813 }
 0x2e3   : > { %v1650_v13 = vpop.permute.xlu0 %1649 }
 0x2e4   : > { %v1654_v58 = vadd.f32 %v1650_v13, %v1633_v5 }
 0x2e6   : > { %v1675_v52 = vadd.f32 %v1671_v28, %v1654_v58 }
 0x2e8   : > { %v1696_v32 = vadd.f32 %v1692_v50, %v1675_v52 }
 0x2ea   : > { %v2283_v14 = vpop.permute.xlu1 %2282  ;;  %v1894_v12 = vpop.permute.xlu2 %1893 }
 0x2eb   : > { %v2241_v16 = vpop.permute.xlu0 %2240 }
 0x2ec   : > { %v2246_v34 = vadd.f32 %v2241_v16, %v2225_v42 }
 0x2ee   : > { %v2267_v51 = vadd.f32 %v2262_v3, %v2246_v34  ;;  %v5569_v34 = vld [vmem:[#allocation16_spill] sm:$0xff] }
 0x2f0   : > { %v2288_v56 = vadd.f32 %v2283_v14, %v2267_v51 }
 0x2f2   : > { %v2292_v26 = vadd.f32 %v2291_v21, %v2288_v56  ;;  %v1793_v54 = vpop.permute.xlu1 %1792  ;;  %v1957_v9 = vpop.permute.xlu2 %1956 }
 0x2f3   : > { %v1713_v43 = vpop.permute.xlu0 %1712 }
 0x2f4   : > { %v2294_v40 = vsub.f32 0.0, %v2292_v26  ;;  %v1717_v60 = vadd.f32 %v1713_v43, %v1696_v32 }
 0x2f6   : > { %v2296_v24 = vmul.f32 1.442695, %v2294_v40  ;;  %v1734_v41 = vadd.f32 %v5566_v36, %v1717_v60 }
 0x2f8   : > { %2667 = vpow2.f32 %v2296_v24  ;;  %v1755_v61 = vadd.f32 %v1751_v8, %v1734_v41 }
 0x2fa   : > { %v1856_v44 = vpop.permute.xlu1 %1855  ;;  %v2037_v0 = vpop.permute.xlu2 %2036 }
 0x2fb   : > { %v1772_v45 = vpop.permute.xlu0 %1771 }
 0x2fc   : > { %v1776_v17 = vadd.f32 %v1772_v45, %v1755_v61 }
 0x2fe   : > { %v2668_v62 = vpop.eup %2667  ;;  %v1797_v31 = vadd.f32 %v1793_v54, %v1776_v17  ;;  %v2310_v17 = vlaneseq }
 0x2ff   : > { %v2300_v39 = vadd.f32 1.0, %v2668_v62 }
 0x300   : > { %v1818_v7 = vadd.f32 %v1814_v29, %v1797_v31  ;;  %vm2312_vm10 = vcmp.lt.s32.totalorder %v2310_v17, 16  ;;  %vm4935_vm11 = vcmp.ge.s32.totalorder %v2310_v17, 16  ;;  %vm4940_vm12 = vcmp.lt.s32.totalorder %v2310_v17, 32 }
 0x301   : > { %2669 = vrcp.f32 %v2300_v39  ;;  %vm2324_vm13 = vmand %vm4935_vm11, %vm4940_vm12  ;;  %vm4958_vm14 = vcmp.ge.s32.totalorder %v2310_v17, 32  ;;  %vm4963_vm15 = vcmp.lt.s32.totalorder %v2310_v17, 48  ;;  %vm4977_vm2 = vcmp.ge.s32.totalorder %v2310_v17, 48 }
 0x302   : > { %v1936_v46 = vpop.permute.xlu1 %1935  ;;  %v2100_v50 = vpop.permute.xlu2 %2099  ;;  %vm2334_vm1 = vmand %vm4958_vm14, %vm4963_vm15  ;;  %vm4982_vm3 = vcmp.lt.s32.totalorder %v2310_v17, 64  ;;  %vm4987_vm4 = vcmp.ge.s32.totalorder %v2310_v17, 64  ;;  %vm4992_vm5 = vcmp.lt.s32.totalorder %v2310_v17, 80  ;;  %vm5015_vm8 = vcmp.ge.s32.totalorder %v2310_v17, 80 }
 0x303   : > { %v1835_v35 = vpop.permute.xlu0 %1834  ;;  %vm5217_vm6 = vmand %vm4977_vm2, %vm4982_vm3  ;;  %vm5020_vm9 = vcmp.lt.s32.totalorder %v2310_v17, 96  ;;  %vm5034_vm0 = vcmp.ge.s32.totalorder %v2310_v17, 96 }
 0x304   : > { %v1839_v59 = vadd.f32 %v1835_v35, %v1818_v7  ;;  %vm5216_vm7 = vmand %vm4987_vm4, %vm4992_vm5 }
 0x305   : > { %vm5594_vm11 = vmand %vm4977_vm2, %vm4982_vm3 }
 0x306   : > { %v1860_v38 = vadd.f32 %v1856_v44, %v1839_v59  ;;  %vm5595_vm12 = vmand %vm4987_vm4, %vm4992_vm5 }
 0x307   : > { %v2670_v4 = vpop.eup %2669 }
 0x308   : > { %v2304_v11 = vmul.f32 %v2670_v4, %v2300_v39  ;;  %v1877_v18 = vadd.f32 %v5567_v10, %v1860_v38 }
 0x30a   : > { %v2306_v53 = vsub.f32 2.0, %v2304_v11  ;;  %v1898_v15 = vadd.f32 %v1894_v12, %v1877_v18  ;;  %v1999_v25 = vpop.permute.xlu1 %1998  ;;  %v2180_v14 = vpop.permute.xlu2 %2179 }
 0x30b   : > { %v1915_v63 = vpop.permute.xlu0 %1914 }
 0x30c   : > { %v4910_v30 = vmul.f32 %v2670_v4, %v2306_v53  ;;  %v1919_v22 = vadd.f32 %v1915_v63, %v1898_v15 }
 0x30e   : > { %2316 = vst [vmem:[#allocation1] sm:$0xff] %v4910_v30  ;;  %v1940_v27 = vadd.f32 %v1936_v46, %v1919_v22 }
 0x30f   : > { %2314 = vst.msk [vmem:[#allocation3] sm:$0x1] %vm2312_vm10, %v4910_v30 }
 0x310   : > { %v1961_v37 = vadd.f32 %v1957_v9, %v1940_v27 }
 0x312   : > { %v2079_v47 = vpop.permute.xlu1 %2078  ;;  %v2243_v24 = vpop.permute.xlu2 %2242 }
 0x313   : > { %v1978_v55 = vpop.permute.xlu0 %1977 }
 0x314   : > { %v1982_v28 = vadd.f32 %v1978_v55, %v1961_v37 }
 0x315   : > { %v2318_v49 = vld [vmem:[#allocation1 + $0x1] ss:$9 sm:$0xff] }
 0x316   : > { %2326 = vst [vmem:[#allocation1] sm:$0xff] %v4910_v30  ;;  %2319 = vrot.lane.b32.xlu2 %v2318_v49, %s2724_s7  ;;  %v2003_v33 = vadd.f32 %v1999_v25, %v1982_v28 }
 0x318   : > { %v2020_v57 = vadd.f32 %v5568_v1, %v2003_v33 }
 0x31a   : > { %v2041_v20 = vadd.f32 %v2037_v0, %v2020_v57  ;;  %v2142_v3 = vpop.permute.xlu1 %2141  ;;  %v5592_v57 = vmov 0 }
 0x31b   : > { %v2058_v19 = vpop.permute.xlu0 %2057 }
 0x31c   : > { %v2062_v2 = vadd.f32 %v2058_v19, %v2041_v20 }
 0x31d   : > { %v2328_v48 = vld [vmem:[#allocation1 + $0x2] ss:$9 sm:$0xff] }
 0x31e   : > { %2329 = vrot.lane.b32.xlu1 %v2328_v48, %s2725_s11  ;;  %2336 = vst [vmem:[#allocation1] sm:$0xff] %v4910_v30  ;;  %v2083_v13 = vadd.f32 %v2079_v47, %v2062_v2 }
 0x320   : > { %v2104_v6 = vadd.f32 %v2100_v50, %v2083_v13 }
 0x322   : > { %v2222_v56 = vpop.permute.xlu1 %2221 }
 0x323   : > { %v2121_v42 = vpop.permute.xlu0 %2120 }
 0x324   : > { %v2125_v16 = vadd.f32 %v2121_v42, %v2104_v6 }
 0x325   : > { %v2338_v23 = vld [vmem:[#allocation1 + $0x3] ss:$9 sm:$0xff] }
 0x326   : > { %2339 = vrot.lane.b32.xlu0 %v2338_v23, %s2726_s20  ;;  %2346 = vst [vmem:[#allocation1] sm:$0xff] %v4910_v30  ;;  %v2146_v5 = vadd.f32 %v2142_v3, %v2125_v16 }
 0x328   : > { %v2163_v58 = vadd.f32 %v5569_v34, %v2146_v5  ;;  %v2437_v5 = vld [vmem:[%s2773_s22] sm:$0xff] }
 0x32a   : > { %v2184_v8 = vadd.f32 %v2180_v14, %v2163_v58  ;;  %v2285_v29 = vpop.permute.xlu1 %2284 }
 0x32b   : > { %v2201_v52 = vpop.permute.xlu0 %2200 }
 0x32c   : > { %v2205_v26 = vadd.f32 %v2201_v52, %v2184_v8 }
 0x32d   : > { %v2348_v51 = vld [vmem:[#allocation1 + $0x4] ss:$9 sm:$0xff] }
 0x32e   : > { %2349 = vrot.lane.b32.xlu2 %v2348_v51, %s2727_s5  ;;  %2356 = vst [vmem:[#allocation1] sm:$0xff] %v4910_v30  ;;  %v2226_v40 = vadd.f32 %v2222_v56, %v2205_v26 }
 0x330   : > { %v2247_v54 = vadd.f32 %v2243_v24, %v2226_v40 }
 0x333   : > { %v2264_v43 = vpop.permute.xlu0 %2263 }
 0x334   : > { %v2268_v60 = vadd.f32 %v2264_v43, %v2247_v54 }
 0x335   : > { %v2358_v32 = vld [vmem:[#allocation1 + $0x5] ss:$9 sm:$0xff] }
 0x336   : > { %2359 = vrot.lane.b32.xlu1 %v2358_v32, %s2728_s25  ;;  %2366 = vst [vmem:[#allocation1] sm:$0xff] %v4910_v30  ;;  %v2289_v36 = vadd.f32 %v2285_v29, %v2268_v60 }
 0x338   : > { %v2293_v41 = vadd.f32 %v2291_v21, %v2289_v36 }
 0x33a   : > { %v2295_v62 = vsub.f32 0.0, %v2293_v41 }
 0x33c   : > { %v2298_v61 = vmul.f32 1.442695, %v2295_v62 }
 0x33d   : > { %v2368_v44 = vld [vmem:[#allocation1 + $0x6] ss:$9 sm:$0xff] }
 0x33e   : > { %2369 = vrot.lane.b32.xlu0 %v2368_v44, %s2729_s4  ;;  %2376 = vst [vmem:[#allocation1] sm:$0xff] %v4910_v30  ;;  %2671 = vpow2.f32 %v2298_v61 }
 0x344   : > { %v2672_v39 = vpop.eup %2671 }
 0x345   : > { %v2301_v45 = vadd.f32 1.0, %v2672_v39  ;;  %v2378_v4 = vld [vmem:[#allocation1 + $0x7] ss:$9 sm:$0xff] }
 0x347   : > { %2673 = vrcp.f32 %v2301_v45 }
 0x34d   : > { %v2674_v31 = vpop.eup %2673 }
 0x34e   : > { %v2305_v12 = vmul.f32 %v2674_v31, %v2301_v45 }
 0x350   : > { %v2307_v21 = vsub.f32 2.0, %v2305_v12 }
 0x352   : > { %v2309_v7 = vmul.f32 %v2674_v31, %v2307_v21 }
 0x354   : > { %2388 = vst [vmem:[#allocation1] sm:$0xff] %v2309_v7 }
 0x355   : > { %2386 = vst.msk [vmem:[#allocation3 + $0x1] sm:$0x1] %vm2312_vm10, %v2309_v7  ;;  %vm5218_vm10 = vmand %vm5015_vm8, %vm5020_vm9 }
 0x35b   : > { %v2390_v46 = vld [vmem:[#allocation1 + $0x1] ss:$9 sm:$0xff] }
 0x35c   : > { %2391 = vrot.lane.b32.xlu0 %v2390_v46, %s2724_s7  ;;  %2395 = vst [vmem:[#allocation1] sm:$0xff] %v2309_v7 }
 0x363   : > { %v2397_v35 = vld [vmem:[#allocation1 + $0x2] ss:$9 sm:$0xff] }
 0x364   : > { %2398 = vrot.lane.b32.xlu2 %v2397_v35, %s2725_s11  ;;  %2402 = vst [vmem:[#allocation1] sm:$0xff] %v2309_v7 }
 0x36b   : > { %v2404_v53 = vld [vmem:[#allocation1 + $0x3] ss:$9 sm:$0xff] }
 0x36c   : > { %2405 = vrot.lane.b32.xlu1 %v2404_v53, %s2726_s20  ;;  %2409 = vst [vmem:[#allocation1] sm:$0xff] %v2309_v7 }
 0x370   : > { %v2320_v38 = vpop.permute.xlu2 %2319 }
 0x371   : > { %2325 = vst.msk [vmem:[#allocation3] sm:$0x1] %vm2324_vm13, %v2320_v38 }
 0x373   : > { %v2411_v30 = vld [vmem:[#allocation1 + $0x4] ss:$9 sm:$0xff] }
 0x374   : > { %2412 = vrot.lane.b32.xlu0 %v2411_v30, %s2727_s5  ;;  %2416 = vst [vmem:[#allocation1] sm:$0xff] %v2309_v7 }
 0x37b   : > { %v2418_v10 = vld [vmem:[#allocation1 + $0x5] ss:$9 sm:$0xff] }
 0x37c   : > { %2419 = vrot.lane.b32.xlu2 %v2418_v10, %s2728_s25  ;;  %2423 = vst [vmem:[#allocation1] sm:$0xff] %v2309_v7 }
 0x383   : > { %v2425_v18 = vld [vmem:[#allocation1 + $0x6] ss:$9 sm:$0xff] }
 0x384   : > { %2379 = vrot.lane.b32.xlu2 %v2378_v4, %s2730_s8  ;;  %2426 = vrot.lane.b32.xlu1 %v2425_v18, %s2729_s4  ;;  %2430 = vst [vmem:[#allocation1] sm:$0xff] %v2309_v7 }
 0x388   : > { %v2350_v55 = vpop.permute.xlu2 %2349 }
 0x38b   : > { %v2432_v63 = vld [vmem:[#allocation1 + $0x7] ss:$9 sm:$0xff] }
 0x38c   : > { %2433 = vrot.lane.b32.xlu0 %v2432_v63, %s2730_s8 }
 0x390   : > { %v2330_v22 = vpop.permute.xlu1 %2329 }
 0x391   : > { %2335 = vst.msk [vmem:[#allocation3] sm:$0x1] %vm2334_vm1, %v2330_v22 }
 0x398   : > { %v2340_v0 = vpop.permute.xlu0 %2339 }
 0x399   : > { %2345 = vst.msk [vmem:[#allocation3] sm:$0x1] %vm5217_vm6, %v2340_v0 }
 0x39a   : > { %2355 = vst.msk [vmem:[#allocation3] sm:$0x1] %vm5216_vm7, %v2350_v55  ;;  %vm5039_vm7 = vcmp.lt.s32.totalorder %v2310_v17, 112 }
 0x39b   : > { %v5593_v57 = vsel %vm5039_vm7, 4294967295, %v5592_v57  ;;  %vm5219_vm6 = vmand %vm5034_vm0, %vm5039_vm7 }
 0x39c   : > { %vm5597_vm14 = vnez %v5593_v57 }
 0x39d   : > { %vm5598_vm15 = vmand %vm5034_vm0, %vm5597_vm14 }
 0x3a8   : > { %v2360_v47 = vpop.permute.xlu1 %2359 }
 0x3a9   : > { %2365 = vst.msk [vmem:[#allocation3] sm:$0x1] %vm5218_vm10, %v2360_v47  ;;  %vm2382_vm10 = vcmp.ge.s32.totalorder %v2310_v17, 112 }
 0x3b0   : > { %v2370_v48 = vpop.permute.xlu0 %2369 }
 0x3b1   : > { %2375 = vst.msk [vmem:[#allocation3] sm:$0x1] %vm5219_vm6, %v2370_v48  ;;  %vm2383_vm6 = vcmp.lt.s32.totalorder %v2310_v17, 128 }
 0x3b2   : > { %vm2384_vm7 = vmand %vm2382_vm10, %vm2383_vm6 }
 0x3be   : > { %v2399_v20 = vpop.permute.xlu2 %2398 }
 0x3ce   : > { %v2392_v19 = vpop.permute.xlu0 %2391 }
 0x3cf   : > { %2394 = vst.msk [vmem:[#allocation3 + $0x1] sm:$0x1] %vm2324_vm13, %v2392_v19  ;;  %vm5596_vm13 = vmand %vm5015_vm8, %vm5020_vm9 }
 0x3d0   : > { %2401 = vst.msk [vmem:[#allocation3 + $0x1] sm:$0x1] %vm2334_vm1, %v2399_v20  ;;  %vm5600_vm1 = vcmask 1043456  }
 0x3d6   : > { %v2420_v2 = vpop.permute.xlu2 %2419 }
 0x3de   : > { %v2406_v50 = vpop.permute.xlu1 %2405  ;;  %v2380_v13 = vpop.permute.xlu2 %2379 }
 0x3df   : > { %2408 = vst.msk [vmem:[#allocation3 + $0x1] sm:$0x1] %vm5594_vm11, %v2406_v50 }
 0x3e0   : > { %2385 = vst.msk [vmem:[#allocation3] sm:$0x1] %vm2384_vm7, %v2380_v13 }
 0x3e6   : > { %v2413_v3 = vpop.permute.xlu0 %2412 }
 0x3e7   : > { %2415 = vst.msk [vmem:[#allocation3 + $0x1] sm:$0x1] %vm5595_vm12, %v2413_v3 }
 0x3e8   : > { %2422 = vst.msk [vmem:[#allocation3 + $0x1] sm:$0x1] %vm5596_vm13, %v2420_v2 }
 0x3f6   : > { %v2427_v23 = vpop.permute.xlu1 %2426 }
 0x3f7   : > { %2429 = vst.msk [vmem:[#allocation3 + $0x1] sm:$0x1] %vm5598_vm15, %v2427_v23 }
 0x3fe   : > { %v2434_v6 = vpop.permute.xlu0 %2433 }
 0x3ff   : > { %2436 = vst.msk [vmem:[#allocation3 + $0x1] sm:$0x1] %vm2384_vm7, %v2434_v6 }
 0x406   : > { %v2438_v42 = vld [vmem:[#allocation3] sm:$0x3] }
 0x407   : > { %v2441_v16 = vperm.slane %v2438_v42, 1  ;;  %v2440_v14 = vperm.slane %v2438_v42, 0 }
 0x409   : > { %v2442_v34 = vrot.slane %v2441_v16, 4 }
 0x40b   : > { %v2443_v58 = vsel %vm5600_vm1, %v2440_v14, %v2442_v34 }
 0x40c   : > { %v2445_v51 = vmul.f32 %v2443_v58, %v2437_v5 }
 0x40e   : > { %2446 = vst [vmem:[%s185_s21] sm:$0xff] %v2445_v51 }
 0x40f PF: > { %s15_s14 = sadd.s32 1, %s2706_s14  }
 0x410   : > { %p12_p7 = scmp.ge.s32.totalorder %s15_s14, 4  }
 0x412   :  { %14 = sbr.rel (!%p12_p7) target bundleno = 3 (0x3), region = 83 }
 0x417   :  { %2468 = vsyncpa [#allocation6], 1 }
 0x418   :  { %2470 = vsyncpa [#allocation6 + $0x1], 1 }

</bundles_post_ra>
